<compile_context>
chip_gen: v7x
topology: tpu7x:2x2x1
jax: 0.10.0
libtpu: 0.0.40
codegen_flags: <defaults>
</compile_context>

<pallas_src>
import functools

import jax
import jax.numpy as jnp
from jax import lax
from jax.experimental import pallas as pl
from jax.experimental.pallas import tpu as pltpu

# ----------------------------------------------------------------------------
# Scaled-down DistilBERT-style config
# ----------------------------------------------------------------------------
VOCAB = 100
MAX_POS = 32
HIDDEN = 64           # distilbert: 768
N_HEADS = 2           # distilbert: 12
HEAD_DIM = HIDDEN // N_HEADS
FFN = 128             # distilbert: 3072
N_LAYERS = 2          # distilbert: 6
LSTM_HIDDEN = 32      # module: 256
LSTM_LAYERS = 2
CONV_OUT = 32         # module: 256
CONV_K = 3
LN_EPS = 1e-12

# the fused LSTM stack relies on layer-0 input width (HIDDEN) == layer-1 input width (2*LSTM_HIDDEN)
assert HIDDEN == 2 * LSTM_HIDDEN


# ----------------------------------------------------------------------------
# In-kernel helpers
# ----------------------------------------------------------------------------
def _ln(z, g, b):
    """LayerNorm over the last dim of a value held in vregs (f32)."""
    mu = jnp.mean(z, axis=-1, keepdims=True)
    var = jnp.mean((z - mu) ** 2, axis=-1, keepdims=True)
    return (z - mu) * lax.rsqrt(var + LN_EPS) * g + b


# ----------------------------------------------------------------------------
# Kernel 1: embedding + full transformer encoder stack + Conv1d/max head
#   grid=(N_LAYERS,) "arbitrary"; activation resident in the output block.
# ----------------------------------------------------------------------------
def _encoder_stack_kernel(ids_ref, wemb_ref, pemb_ref, embg_ref, embb_ref, mask_ref,
                          wqkv_ref, bqkv_ref, wo_ref, bo_ref, ln1g_ref, ln1b_ref,
                          w1_ref, b1_ref, w2_ref, b2_ref, ln2g_ref, ln2b_ref,
                          convw_ref, convb_ref,
                          bert_ref, conv_ref, attn_sc,
                          *, bsz, seq, nheads, head_dim):
    hidden = nheads * head_dim
    rows = bsz * seq
    layer = pl.program_id(0)

    # ---- grid step 0 prologue: embedding gather (exact one-hot matmul) + LayerNorm ----
    @pl.when(layer == 0)
    def _():
        ids = ids_ref[...]                                                 # (rows, 1) int32
        vocab_iota = lax.broadcasted_iota(jnp.int32, (rows, wemb_ref.shape[0]), 1)
        onehot = (vocab_iota == ids).astype(jnp.float32)                   # exact row gather
        emb = jnp.dot(onehot, wemb_ref[...], preferred_element_type=jnp.float32)
        emb = emb + pemb_ref[...]
        bert_ref[...] = _ln(emb, embg_ref[...], embb_ref[...])

    # ---- transformer layer `layer` (weights selected by the BlockSpec index_map) ----
    x = bert_ref[...]                                                      # (rows, H) resident f32
    xb = x.astype(jnp.bfloat16)
    # fused Q|K|V projection: one lane-dense (H, 3H) bf16 matmul, f32 accumulate
    qkv = jnp.dot(xb, wqkv_ref[...], preferred_element_type=jnp.float32) + bqkv_ref[...]

    scale = 1.0 / (head_dim ** 0.5)
    for b in range(bsz):                         # static loops: B=2, heads=2 (tiny SxS attention)
        r0 = b * seq
        m_add = mask_ref[b:b + 1, :]                                       # (1, S) additive mask
        qkv_b = qkv[r0:r0 + seq, :]                                        # (S, 3H) tile-aligned rows
        for h in range(nheads):
            q = qkv_b[:, h * head_dim:(h + 1) * head_dim].astype(jnp.bfloat16)
            k = qkv_b[:, hidden + h * head_dim: hidden + (h + 1) * head_dim].astype(jnp.bfloat16)
            v = qkv_b[:, 2 * hidden + h * head_dim: 2 * hidden + (h + 1) * head_dim].astype(jnp.bfloat16)
            s = lax.dot_general(q, k, (((1,), (1,)), ((), ())),
                                preferred_element_type=jnp.float32) * scale   # (S, S) f32
            s = s + m_add
            s = s - jnp.max(s, axis=-1, keepdims=True)
            p = jnp.exp(s)
            p = p * pl.reciprocal(jnp.sum(p, axis=-1, keepdims=True), approx=True)
            ctx = jnp.dot(p.astype(jnp.bfloat16), v, preferred_element_type=jnp.float32)
            # write each head's context directly at its final lane offset (no concatenates)
            attn_sc[r0:r0 + seq, h * head_dim:(h + 1) * head_dim] = ctx

    # output projection + post-LN residual
    a = jnp.dot(attn_sc[...].astype(jnp.bfloat16), wo_ref[...],
                preferred_element_type=jnp.float32) + bo_ref[...]
    x1 = _ln(a + x, ln1g_ref[...], ln1b_ref[...])

    # FFN + post-LN residual
    f = jnp.dot(x1.astype(jnp.bfloat16), w1_ref[...],
                preferred_element_type=jnp.float32) + b1_ref[...]
    # TODO(synk): HF DistilBERT uses exact erf-GELU; tanh approximation used here.
    f = jax.nn.gelu(f)
    f = jnp.dot(f.astype(jnp.bfloat16), w2_ref[...],
                preferred_element_type=jnp.float32) + b2_ref[...]
    x2 = _ln(f + x1, ln2g_ref[...], ln2b_ref[...])
    bert_ref[...] = x2

    # ---- last grid step epilogue: Conv1d(k=3, pad=1) + max over the sequence ----
    @pl.when(layer == pl.num_programs(0) - 1)
    def _():
        xc = x2                                                            # (rows, H) f32 in vregs
        row_idx = lax.broadcasted_iota(jnp.int32, (rows, 1), 0)
        first = row_idx == 0                                               # first row of each batch
        last = row_idx == (seq - 1)                                        # last row of each batch
        for b in range(1, bsz):
            first = jnp.logical_or(first, row_idx == b * seq)
            last = jnp.logical_or(last, row_idx == b * seq + seq - 1)

        acc = jnp.dot(xc.astype(jnp.bfloat16), convw_ref[1],
                      preferred_element_type=jnp.float32)                  # center tap
        prev = pltpu.roll(xc, shift=1, axis=0).astype(jnp.bfloat16)        # row t holds x[t-1] (cyclic)
        c0 = jnp.dot(prev, convw_ref[0], preferred_element_type=jnp.float32)
        acc = acc + jnp.where(first, 0.0, c0)                              # mask cross-batch halo
        nxt = pltpu.roll(xc, shift=rows - 1, axis=0).astype(jnp.bfloat16)  # row t holds x[t+1]
        c2 = jnp.dot(nxt, convw_ref[2], preferred_element_type=jnp.float32)
        acc = acc + jnp.where(last, 0.0, c2)
        acc = acc + convb_ref[...]

        outs = [jnp.max(acc[b * seq:(b + 1) * seq, :], axis=0, keepdims=True)
                for b in range(bsz)]
        conv_ref[...] = jnp.concatenate(outs, axis=0)                      # single (B, Cout) store


def fused_encoder_conv(params, input_ids, attention_mask):
    bsz, seq = input_ids.shape
    rows = bsz * seq
    ids = input_ids.reshape(rows, 1).astype(jnp.int32)
    pos = jnp.tile(params["pos_emb"][:seq], (bsz, 1))                      # (B*S, H)
    mask_add = (1.0 - attention_mask.astype(jnp.float32)) * -1e9           # (B, S)
    enc = params["enc"]

    def full(shape):
        return pl.BlockSpec(shape, lambda l, _n=len(shape): (0,) * _n)

    def per_layer(shape):
        return pl.BlockSpec((None,) + shape, lambda l, _n=len(shape): (l,) + (0,) * _n)

    kernel = functools.partial(_encoder_stack_kernel, bsz=bsz, seq=seq,
                               nheads=N_HEADS, head_dim=HEAD_DIM)
    bert_flat, conv_out = pl.pallas_call(
        kernel,
        grid=(N_LAYERS,),
        in_specs=[
            full((rows, 1)),                       # ids
            full((VOCAB, HIDDEN)),                 # word embedding table
            full((rows, HIDDEN)),                  # tiled positional embedding
            full((1, HIDDEN)), full((1, HIDDEN)),  # embedding LN g, b
            full((bsz, seq)),                      # additive attention mask
            per_layer((HIDDEN, 3 * HIDDEN)),       # wqkv (bf16)
            per_layer((1, 3 * HIDDEN)),            # bqkv
            per_layer((HIDDEN, HIDDEN)),           # wo (bf16)
            per_layer((1, HIDDEN)),                # bo
            per_layer((1, HIDDEN)), per_layer((1, HIDDEN)),   # ln1 g, b
            per_layer((HIDDEN, FFN)),              # w1 (bf16)
            per_layer((1, FFN)),                   # b1
            per_layer((FFN, HIDDEN)),              # w2 (bf16)
            per_layer((1, HIDDEN)),                # b2
            per_layer((1, HIDDEN)), per_layer((1, HIDDEN)),   # ln2 g, b
            full((CONV_K, HIDDEN, CONV_OUT)),      # conv weight (bf16)
            full((1, CONV_OUT)),                   # conv bias
        ],
        out_specs=[pl.BlockSpec((rows, HIDDEN), lambda l: (0, 0)),
                   pl.BlockSpec((bsz, CONV_OUT), lambda l: (0, 0))],
        out_shape=[jax.ShapeDtypeStruct((rows, HIDDEN), jnp.float32),
                   jax.ShapeDtypeStruct((bsz, CONV_OUT), jnp.float32)],
        scratch_shapes=[pltpu.VMEM((rows, HIDDEN), jnp.float32)],          # attention context slab
        compiler_params=pltpu.CompilerParams(dimension_semantics=("arbitrary",)),
    )(ids, params["word_emb"], pos, params["emb_ln_g"], params["emb_ln_b"], mask_add,
      enc["wqkv"], enc["bqkv"], enc["wo"], enc["bo"], enc["ln1_g"], enc["ln1_b"],
      enc["w1"], enc["b1"], enc["w2"], enc["b2"], enc["ln2_g"], enc["ln2_b"],
      params["conv_w"], params["conv_b"])
    return bert_flat, conv_out


# ----------------------------------------------------------------------------
# Kernel 2: full stacked bidirectional LSTM (both directions fused per layer)
#   grid=(LSTM_LAYERS,) "arbitrary"; layer-to-layer sequence carried in VMEM scratch.
# ----------------------------------------------------------------------------
def _bilstm_stack_kernel(x0_ref, wih_ref, whh_ref, b_ref, out_ref,
                         act_sc, gx_sc, h_sc, c_sc, yf_sc, yr_sc,
                         *, bsz, seq, hd):
    """x0:(S*B, 2*hd) time-major, wih:(2*hd, 8*hd)=[Wih_f|Wih_r], whh:(2*hd, 8*hd) block-diag
    [[Whh_f,0],[0,Whh_r]], b:(1, 8*hd)=[b_f|b_r] (each = b_ih+b_hh).  Gate order i,f,g,o."""
    layer = pl.program_id(0)
    g4 = 4 * hd

    @pl.when(layer == 0)
    def _():
        act_sc[...] = x0_ref[...]

    xin = act_sc[...]                                                      # (S*B, 2*hd)
    # Hoisted input projection for BOTH directions: ONE lane-dense (S*B,Din)x(Din,8H) matmul.
    gx_sc[...] = (jnp.dot(xin.astype(jnp.bfloat16), wih_ref[...],
                          preferred_element_type=jnp.float32) + b_ref[...])

    h_sc[...] = jnp.zeros_like(h_sc)
    c_sc[...] = jnp.zeros_like(c_sc)

    def cell(gates, c_prev):                                               # (B,4H),(B,H) -> (B,H)x2
        i = jax.nn.sigmoid(gates[:, 0:hd])
        f = jax.nn.sigmoid(gates[:, hd:2 * hd])
        g = jnp.tanh(gates[:, 2 * hd:3 * hd])
        o = jax.nn.sigmoid(gates[:, 3 * hd:4 * hd])
        c = f * c_prev + i * g
        h = o * jnp.tanh(c)
        return h, c

    def step(t, carry):
        rt = seq - 1 - t
        # one block-diagonal matmul covers both directions' recurrent projections
        gh = jnp.dot(h_sc[...].astype(jnp.bfloat16), whh_ref[...],
                     preferred_element_type=jnp.float32)                   # (B, 8H)
        gxf = gx_sc[pl.ds(t * bsz, bsz)]                                   # forward  time t
        gxr = gx_sc[pl.ds(rt * bsz, bsz)]                                  # reverse  time S-1-t
        c_prev = c_sc[...]
        hf, cf = cell(gxf[:, 0:g4] + gh[:, 0:g4], c_prev[:, 0:hd])
        hr, cr = cell(gxr[:, g4:2 * g4] + gh[:, g4:2 * g4], c_prev[:, hd:2 * hd])
        h_sc[...] = jnp.concatenate([hf, hr], axis=1)
        c_sc[...] = jnp.concatenate([cf, cr], axis=1)
        yf_sc[pl.ds(t * bsz, bsz)] = hf                                    # fwd output at time t
        yr_sc[pl.ds(rt * bsz, bsz)] = hr                                   # rev output at time S-1-t
        return carry

    lax.fori_loop(0, seq, step, 0, unroll=True)

    # layer output sequence [h_fwd | h_rev] per timestep -> input of the next layer
    act_sc[...] = jnp.concatenate([yf_sc[...], yr_sc[...]], axis=1)

    @pl.when(layer == pl.num_programs(0) - 1)
    def _():
        # PyTorch lstm_out[:, -1, :]: last-timestep output of the final layer
        out_ref[...] = act_sc[(seq - 1) * bsz: seq * bsz, :]


def lstm_stack(lstm_params, x0, *, bsz, seq):
    hl = LSTM_HIDDEN
    kernel = functools.partial(_bilstm_stack_kernel, bsz=bsz, seq=seq, hd=hl)
    return pl.pallas_call(
        kernel,
        grid=(LSTM_LAYERS,),
        in_specs=[pl.BlockSpec((seq * bsz, 2 * hl), lambda l: (0, 0)),
                  pl.BlockSpec((None, 2 * hl, 8 * hl), lambda l: (l, 0, 0)),
                  pl.BlockSpec((None, 2 * hl, 8 * hl), lambda l: (l, 0, 0)),
                  pl.BlockSpec((None, 1, 8 * hl), lambda l: (l, 0, 0))],
        out_specs=pl.BlockSpec((bsz, 2 * hl), lambda l: (0, 0)),
        out_shape=jax.ShapeDtypeStruct((bsz, 2 * hl), jnp.float32),
        scratch_shapes=[pltpu.VMEM((seq * bsz, 2 * hl), jnp.float32),      # carried layer sequence
                        pltpu.VMEM((seq * bsz, 8 * hl), jnp.float32),      # hoisted gate inputs
                        pltpu.VMEM((bsz, 2 * hl), jnp.float32),            # h (fwd|rev)
                        pltpu.VMEM((bsz, 2 * hl), jnp.float32),            # c (fwd|rev)
                        pltpu.VMEM((seq * bsz, hl), jnp.float32),          # fwd output sequence
                        pltpu.VMEM((seq * bsz, hl), jnp.float32)],         # rev output sequence
        compiler_params=pltpu.CompilerParams(dimension_semantics=("arbitrary",)),
    )(x0, lstm_params["wih"], lstm_params["whh_bd"], lstm_params["b"])


# ----------------------------------------------------------------------------
# Deterministic parameter construction (synthetic, not a checkpoint load)
# ----------------------------------------------------------------------------
def init_params(key):
    keys = iter(jax.random.split(key, 64))

    def dense(din, dout):
        return 0.02 * jax.random.normal(next(keys), (din, dout), jnp.float32)

    p = {
        "word_emb": 0.02 * jax.random.normal(next(keys), (VOCAB, HIDDEN), jnp.float32),
        "pos_emb": 0.02 * jax.random.normal(next(keys), (MAX_POS, HIDDEN), jnp.float32),
        "emb_ln_g": jnp.ones((1, HIDDEN), jnp.float32),
        "emb_ln_b": jnp.zeros((1, HIDDEN), jnp.float32),
    }

    wqkv, wo, w1, w2 = [], [], [], []
    for _ in range(N_LAYERS):
        wq, wk, wv = dense(HIDDEN, HIDDEN), dense(HIDDEN, HIDDEN), dense(HIDDEN, HIDDEN)
        wqkv.append(jnp.concatenate([wq, wk, wv], axis=1))
        wo.append(dense(HIDDEN, HIDDEN))
        w1.append(dense(HIDDEN, FFN))
        w2.append(dense(FFN, HIDDEN))
    L = N_LAYERS
    p["enc"] = dict(
        wqkv=jnp.stack(wqkv).astype(jnp.bfloat16),
        bqkv=jnp.zeros((L, 1, 3 * HIDDEN), jnp.float32),
        wo=jnp.stack(wo).astype(jnp.bfloat16),
        bo=jnp.zeros((L, 1, HIDDEN), jnp.float32),
        ln1_g=jnp.ones((L, 1, HIDDEN), jnp.float32),
        ln1_b=jnp.zeros((L, 1, HIDDEN), jnp.float32),
        w1=jnp.stack(w1).astype(jnp.bfloat16),
        b1=jnp.zeros((L, 1, FFN), jnp.float32),
        w2=jnp.stack(w2).astype(jnp.bfloat16),
        b2=jnp.zeros((L, 1, HIDDEN), jnp.float32),
        ln2_g=jnp.ones((L, 1, HIDDEN), jnp.float32),
        ln2_b=jnp.zeros((L, 1, HIDDEN), jnp.float32),
    )

    hl = LSTM_HIDDEN
    wih_l, whh_l, b_l = [], [], []
    for layer in range(LSTM_LAYERS):
        din = HIDDEN if layer == 0 else 2 * hl        # both equal 64 (fusion requirement)
        wih_f = 0.02 * jax.random.normal(next(keys), (din, 4 * hl), jnp.float32)
        wih_r = 0.02 * jax.random.normal(next(keys), (din, 4 * hl), jnp.float32)
        whh_f = 0.02 * jax.random.normal(next(keys), (hl, 4 * hl), jnp.float32)
        whh_r = 0.02 * jax.random.normal(next(keys), (hl, 4 * hl), jnp.float32)
        b_f = 0.02 * jax.random.normal(next(keys), (1, 4 * hl), jnp.float32)   # b_ih + b_hh summed
        b_r = 0.02 * jax.random.normal(next(keys), (1, 4 * hl), jnp.float32)
        wih_l.append(jnp.concatenate([wih_f, wih_r], axis=1))                  # (Din, 8H)
        zeros = jnp.zeros((hl, 4 * hl), jnp.float32)
        whh_l.append(jnp.concatenate(                                          # (2H, 8H) block-diag
            [jnp.concatenate([whh_f, zeros], axis=1),
             jnp.concatenate([zeros, whh_r], axis=1)], axis=0))
        b_l.append(jnp.concatenate([b_f, b_r], axis=1))                        # (1, 8H)
    p["lstm"] = dict(wih=jnp.stack(wih_l).astype(jnp.bfloat16),
                     whh_bd=jnp.stack(whh_l).astype(jnp.bfloat16),
                     b=jnp.stack(b_l))

    p["conv_w"] = (0.02 * jax.random.normal(next(keys), (CONV_K, HIDDEN, CONV_OUT),
                                            jnp.float32)).astype(jnp.bfloat16)
    p["conv_b"] = 0.02 * jax.random.normal(next(keys), (1, CONV_OUT), jnp.float32)
    return p


# ----------------------------------------------------------------------------
# Forward pass: 2 pallas_calls + a handful of tiny XLA glue ops
# ----------------------------------------------------------------------------
@jax.jit
def forward(params, input_ids, attention_mask):
    bsz, seq = input_ids.shape
    bert_flat, conv_out = fused_encoder_conv(params, input_ids, attention_mask)
    bert_out = bert_flat.reshape(bsz, seq, HIDDEN)                         # last_hidden_state
    # time-major view for the LSTM (single tiny transpose; everything else stays fused)
    x0 = jnp.transpose(bert_out, (1, 0, 2)).reshape(seq * bsz, HIDDEN)
    lstm_out = lstm_stack(params["lstm"], x0, bsz=bsz, seq=seq)            # lstm_out[:, -1, :]
    return bert_out, lstm_out, conv_out


# ----------------------------------------------------------------------------
if __name__ == "__main__":
    key = jax.random.PRNGKey(0)
    k_params, k_ids = jax.random.split(key)

    B, S = 2, 8
    params = init_params(k_params)
    input_ids = jax.random.randint(k_ids, (B, S), 0, VOCAB, dtype=jnp.int32)
    attention_mask = jnp.ones((B, S), jnp.int32).at[1, S - 2:].set(0)      # pad tail of sample 1

    bert_out, lstm_out, conv_out = forward(params, input_ids, attention_mask)
    jax.block_until_ready((bert_out, lstm_out, conv_out))

    assert bert_out.shape == (B, S, HIDDEN)
    assert lstm_out.shape == (B, 2 * LSTM_HIDDEN)
    assert conv_out.shape == (B, CONV_OUT)
    assert all(bool(jnp.all(jnp.isfinite(t))) for t in (bert_out, lstm_out, conv_out))
    print("KERNEL_OK")
</pallas_src>

<mosaic_0001>
module attributes {stable_mosaic.version = 11 : i64} {
  func.func @_encoder_stack_kernel(%arg0: i32, %arg1: memref<16x1xi32, #tpu.memory_space<vmem>>, %arg2: memref<100x64xf32, #tpu.memory_space<vmem>>, %arg3: memref<16x64xf32, #tpu.memory_space<vmem>>, %arg4: memref<1x64xf32, #tpu.memory_space<vmem>>, %arg5: memref<1x64xf32, #tpu.memory_space<vmem>>, %arg6: memref<2x8xf32, #tpu.memory_space<vmem>>, %arg7: memref<1x64x192xbf16, #tpu.memory_space<vmem>>, %arg8: memref<1x1x192xf32, #tpu.memory_space<vmem>>, %arg9: memref<1x64x64xbf16, #tpu.memory_space<vmem>>, %arg10: memref<1x1x64xf32, #tpu.memory_space<vmem>>, %arg11: memref<1x1x64xf32, #tpu.memory_space<vmem>>, %arg12: memref<1x1x64xf32, #tpu.memory_space<vmem>>, %arg13: memref<1x64x128xbf16, #tpu.memory_space<vmem>>, %arg14: memref<1x1x128xf32, #tpu.memory_space<vmem>>, %arg15: memref<1x128x64xbf16, #tpu.memory_space<vmem>>, %arg16: memref<1x1x64xf32, #tpu.memory_space<vmem>>, %arg17: memref<1x1x64xf32, #tpu.memory_space<vmem>>, %arg18: memref<1x1x64xf32, #tpu.memory_space<vmem>>, %arg19: memref<3x64x32xbf16, #tpu.memory_space<vmem>>, %arg20: memref<1x32xf32, #tpu.memory_space<vmem>>, %arg21: memref<16x64xf32, #tpu.memory_space<vmem>>, %arg22: memref<2x32xf32, #tpu.memory_space<vmem>>, %arg23: memref<16x64xf32, #tpu.memory_space<vmem>>) attributes {dimension_semantics = [#tpu.dimension_semantics<arbitrary>], iteration_bounds = array<i64: 2>, scalar_prefetch = 0 : i64, scratch_operands = 1 : i64, tpu.core_type = #tpu.core_type<tc>, window_params = [{pipeline_mode = #tpu.pipeline_mode<synchronous>, transform_indices = @transform_0, window_bounds = array<i64: 16, 1>}, {pipeline_mode = #tpu.pipeline_mode<synchronous>, transform_indices = @transform_1, window_bounds = array<i64: 100, 64>}, {pipeline_mode = #tpu.pipeline_mode<synchronous>, transform_indices = @transform_2, window_bounds = array<i64: 16, 64>}, {pipeline_mode = #tpu.pipeline_mode<synchronous>, transform_indices = @transform_3, window_bounds = array<i64: 1, 64>}, {pipeline_mode = #tpu.pipeline_mode<synchronous>, transform_indices = @transform_4, window_bounds = array<i64: 1, 64>}, {pipeline_mode = #tpu.pipeline_mode<synchronous>, transform_indices = @transform_5, window_bounds = array<i64: 2, 8>}, {transform_indices = @transform_6, window_bounds = array<i64: 1, 64, 192>}, {transform_indices = @transform_7, window_bounds = array<i64: 1, 1, 192>}, {transform_indices = @transform_8, window_bounds = array<i64: 1, 64, 64>}, {transform_indices = @transform_9, window_bounds = array<i64: 1, 1, 64>}, {transform_indices = @transform_10, window_bounds = array<i64: 1, 1, 64>}, {transform_indices = @transform_11, window_bounds = array<i64: 1, 1, 64>}, {transform_indices = @transform_12, window_bounds = array<i64: 1, 64, 128>}, {transform_indices = @transform_13, window_bounds = array<i64: 1, 1, 128>}, {transform_indices = @transform_14, window_bounds = array<i64: 1, 128, 64>}, {transform_indices = @transform_15, window_bounds = array<i64: 1, 1, 64>}, {transform_indices = @transform_16, window_bounds = array<i64: 1, 1, 64>}, {transform_indices = @transform_17, window_bounds = array<i64: 1, 1, 64>}, {pipeline_mode = #tpu.pipeline_mode<synchronous>, transform_indices = @transform_18, window_bounds = array<i64: 3, 64, 32>}, {pipeline_mode = #tpu.pipeline_mode<synchronous>, transform_indices = @transform_19, window_bounds = array<i64: 1, 32>}, {pipeline_mode = #tpu.pipeline_mode<synchronous>, transform_indices = @transform_20, window_bounds = array<i64: 16, 64>}, {pipeline_mode = #tpu.pipeline_mode<synchronous>, transform_indices = @transform_21, window_bounds = array<i64: 2, 32>}]} {
    %c0_i32 = arith.constant 0 : i32
    %0 = arith.cmpi eq, %arg0, %c0_i32 : i32
    %1 = arith.extui %0 : i1 to i32
    %c0_i32_0 = arith.constant 0 : i32
    %2 = arith.cmpi ne, %1, %c0_i32_0 : i32
    scf.if %2 {
      %c0_89 = arith.constant 0 : index
      %c0_90 = arith.constant 0 : index
      %208 = vector.load %arg1[%c0_89, %c0_90] : memref<16x1xi32, #tpu.memory_space<vmem>>, vector<16x1xi32>
      %209 = tpu.iota {dimensions = array<i32: 1>} : vector<16x100xi32>
      %210 = vector.broadcast %208 : vector<16x1xi32> to vector<16x100xi32>
      %211 = arith.cmpi eq, %209, %210 : vector<16x100xi32>
      %212 = arith.extui %211 : vector<16x100xi1> to vector<16x100xi32>
      %213 = arith.sitofp %212 : vector<16x100xi32> to vector<16x100xf32>
      %c0_91 = arith.constant 0 : index
      %c0_92 = arith.constant 0 : index
      %214 = vector.load %arg2[%c0_91, %c0_92] : memref<100x64xf32, #tpu.memory_space<vmem>>, vector<100x64xf32>
      %cst_93 = arith.constant dense<0.000000e+00> : vector<16x64xf32>
      %215 = tpu.matmul %213, %214, %cst_93 {dimension_numbers = #tpu.dot_dimension_numbers<[1], [0], [0], [1], [0, 0, 1, 1], [], []>} : vector<16x100xf32>, vector<100x64xf32>, vector<16x64xf32> -> vector<16x64xf32>
      %c0_94 = arith.constant 0 : index
      %c0_95 = arith.constant 0 : index
      %216 = vector.load %arg3[%c0_94, %c0_95] : memref<16x64xf32, #tpu.memory_space<vmem>>, vector<16x64xf32>
      %217 = arith.addf %215, %216 : vector<16x64xf32>
      %c0_96 = arith.constant 0 : index
      %c0_97 = arith.constant 0 : index
      %218 = vector.load %arg4[%c0_96, %c0_97] : memref<1x64xf32, #tpu.memory_space<vmem>>, vector<1x64xf32>
      %c0_98 = arith.constant 0 : index
      %c0_99 = arith.constant 0 : index
      %219 = vector.load %arg5[%c0_98, %c0_99] : memref<1x64xf32, #tpu.memory_space<vmem>>, vector<1x64xf32>
      %cst_100 = arith.constant dense<0.000000e+00> : vector<16xf32>
      %220 = vector.multi_reduction <add>, %217, %cst_100 [1] : vector<16x64xf32> to vector<16xf32>
      %221 = vector.shape_cast %220 : vector<16xf32> to vector<16x1xf32>
      %cst_101 = arith.constant 6.400000e+01 : f32
      %222 = vector.broadcast %cst_101 : f32 to vector<16x1xf32>
      %223 = arith.divf %221, %222 : vector<16x1xf32>
      %224 = vector.broadcast %223 : vector<16x1xf32> to vector<16x64xf32>
      %225 = arith.subf %217, %224 : vector<16x64xf32>
      %226 = arith.mulf %225, %225 : vector<16x64xf32>
      %cst_102 = arith.constant dense<0.000000e+00> : vector<16xf32>
      %227 = vector.multi_reduction <add>, %226, %cst_102 [1] : vector<16x64xf32> to vector<16xf32>
      %228 = vector.shape_cast %227 : vector<16xf32> to vector<16x1xf32>
      %cst_103 = arith.constant 6.400000e+01 : f32
      %229 = vector.broadcast %cst_103 : f32 to vector<16x1xf32>
      %230 = arith.divf %228, %229 : vector<16x1xf32>
      %231 = vector.broadcast %223 : vector<16x1xf32> to vector<16x64xf32>
      %232 = arith.subf %217, %231 : vector<16x64xf32>
      %cst_104 = arith.constant 9.99999996E-13 : f32
      %233 = vector.broadcast %cst_104 : f32 to vector<16x1xf32>
      %234 = arith.addf %230, %233 : vector<16x1xf32>
      %235 = math.rsqrt %234 : vector<16x1xf32>
      %236 = vector.broadcast %235 : vector<16x1xf32> to vector<16x64xf32>
      %237 = arith.mulf %232, %236 : vector<16x64xf32>
      %238 = vector.broadcast %218 : vector<1x64xf32> to vector<16x64xf32>
      %239 = arith.mulf %237, %238 : vector<16x64xf32>
      %240 = vector.broadcast %219 : vector<1x64xf32> to vector<16x64xf32>
      %241 = arith.addf %239, %240 : vector<16x64xf32>
      %c0_105 = arith.constant 0 : index
      %c0_106 = arith.constant 0 : index
      %242 = vector.load %arg21[%c0_105, %c0_106] : memref<16x64xf32, #tpu.memory_space<vmem>>, vector<16x64xf32>
      tpu.vector_store %arg21[%c0_105, %c0_106], %241 {strides = array<i32>} : memref<16x64xf32, #tpu.memory_space<vmem>>, vector<16x64xf32>,
    } else {
    }
    %c0 = arith.constant 0 : index
    %c0_1 = arith.constant 0 : index
    %3 = vector.load %arg21[%c0, %c0_1] : memref<16x64xf32, #tpu.memory_space<vmem>>, vector<16x64xf32>
    %4 = arith.truncf %3 : vector<16x64xf32> to vector<16x64xbf16>
    %c0_2 = arith.constant 0 : index
    %c0_3 = arith.constant 0 : index
    %c0_4 = arith.constant 0 : index
    %5 = vector.load %arg7[%c0_2, %c0_3, %c0_4] : memref<1x64x192xbf16, #tpu.memory_space<vmem>>, vector<1x64x192xbf16>
    %6 = vector.shape_cast %5 : vector<1x64x192xbf16> to vector<64x192xbf16>
    %cst = arith.constant dense<0.000000e+00> : vector<16x192xf32>
    %7 = tpu.matmul %4, %6, %cst {dimension_numbers = #tpu.dot_dimension_numbers<[1], [0], [0], [1], [0, 0, 1, 1], [], []>} : vector<16x64xbf16>, vector<64x192xbf16>, vector<16x192xf32> -> vector<16x192xf32>
    %c0_5 = arith.constant 0 : index
    %c0_6 = arith.constant 0 : index
    %c0_7 = arith.constant 0 : index
    %8 = vector.load %arg8[%c0_5, %c0_6, %c0_7] : memref<1x1x192xf32, #tpu.memory_space<vmem>>, vector<1x1x192xf32>
    %9 = vector.shape_cast %8 : vector<1x1x192xf32> to vector<1x192xf32>
    %10 = vector.broadcast %9 : vector<1x192xf32> to vector<16x192xf32>
    %11 = arith.addf %7, %10 : vector<16x192xf32>
    %c0_8 = arith.constant 0 : index
    %c0_9 = arith.constant 0 : index
    %12 = vector.load %arg6[%c0_8, %c0_9] : memref<2x8xf32, #tpu.memory_space<vmem>>, vector<1x8xf32>
    %13 = vector.extract_strided_slice %11 {offsets = [0, 0], sizes = [8, 192], strides = [1, 1]} : vector<16x192xf32> to vector<8x192xf32>
    %14 = vector.extract_strided_slice %13 {offsets = [0, 0], sizes = [8, 32], strides = [1, 1]} : vector<8x192xf32> to vector<8x32xf32>
    %15 = arith.truncf %14 : vector<8x32xf32> to vector<8x32xbf16>
    %16 = vector.extract_strided_slice %13 {offsets = [0, 64], sizes = [8, 32], strides = [1, 1]} : vector<8x192xf32> to vector<8x32xf32>
    %17 = arith.truncf %16 : vector<8x32xf32> to vector<8x32xbf16>
    %18 = vector.extract_strided_slice %13 {offsets = [0, 128], sizes = [8, 32], strides = [1, 1]} : vector<8x192xf32> to vector<8x32xf32>
    %19 = arith.truncf %18 : vector<8x32xf32> to vector<8x32xbf16>
    %cst_10 = arith.constant dense<0.000000e+00> : vector<8x8xf32>
    %20 = tpu.matmul %15, %17, %cst_10 {dimension_numbers = #tpu.dot_dimension_numbers<[1], [1], [0], [0], [0, 0, 1, 0], [], []>} : vector<8x32xbf16>, vector<8x32xbf16>, vector<8x8xf32> -> vector<8x8xf32>
    %cst_11 = arith.constant 0.176776692 : f32
    %21 = vector.broadcast %cst_11 : f32 to vector<8x8xf32>
    %22 = arith.mulf %20, %21 : vector<8x8xf32>
    %23 = vector.broadcast %12 : vector<1x8xf32> to vector<8x8xf32>
    %24 = arith.addf %22, %23 : vector<8x8xf32>
    %cst_12 = arith.constant dense<0xFF800000> : vector<8xf32>
    %25 = vector.multi_reduction <maximumf>, %24, %cst_12 [1] : vector<8x8xf32> to vector<8xf32>
    %26 = vector.shape_cast %25 : vector<8xf32> to vector<8x1xf32>
    %27 = vector.broadcast %26 : vector<8x1xf32> to vector<8x8xf32>
    %28 = arith.subf %24, %27 : vector<8x8xf32>
    %29 = math.exp %28 : vector<8x8xf32>
    %cst_13 = arith.constant dense<0.000000e+00> : vector<8xf32>
    %30 = vector.multi_reduction <add>, %29, %cst_13 [1] : vector<8x8xf32> to vector<8xf32>
    %31 = vector.shape_cast %30 : vector<8xf32> to vector<8x1xf32>
    %32 = tpu.reciprocal %31 {approx = true} : vector<8x1xf32> -> vector<8x1xf32>
    %33 = vector.broadcast %32 : vector<8x1xf32> to vector<8x8xf32>
    %34 = arith.mulf %29, %33 : vector<8x8xf32>
    %35 = arith.truncf %34 : vector<8x8xf32> to vector<8x8xbf16>
    %cst_14 = arith.constant dense<0.000000e+00> : vector<8x32xf32>
    %36 = tpu.matmul %35, %19, %cst_14 {dimension_numbers = #tpu.dot_dimension_numbers<[1], [0], [0], [1], [0, 0, 1, 1], [], []>} : vector<8x8xbf16>, vector<8x32xbf16>, vector<8x32xf32> -> vector<8x32xf32>
    %c0_15 = arith.constant 0 : index
    %c0_16 = arith.constant 0 : index
    %37 = vector.load %arg23[%c0_15, %c0_16] : memref<16x64xf32, #tpu.memory_space<vmem>>, vector<8x32xf32>
    tpu.vector_store %arg23[%c0_15, %c0_16], %36 {strides = array<i32>} : memref<16x64xf32, #tpu.memory_space<vmem>>, vector<8x32xf32>,
    %38 = vector.extract_strided_slice %13 {offsets = [0, 32], sizes = [8, 32], strides = [1, 1]} : vector<8x192xf32> to vector<8x32xf32>
    %39 = arith.truncf %38 : vector<8x32xf32> to vector<8x32xbf16>
    %40 = vector.extract_strided_slice %13 {offsets = [0, 96], sizes = [8, 32], strides = [1, 1]} : vector<8x192xf32> to vector<8x32xf32>
    %41 = arith.truncf %40 : vector<8x32xf32> to vector<8x32xbf16>
    %42 = vector.extract_strided_slice %13 {offsets = [0, 160], sizes = [8, 32], strides = [1, 1]} : vector<8x192xf32> to vector<8x32xf32>
    %43 = arith.truncf %42 : vector<8x32xf32> to vector<8x32xbf16>
    %cst_17 = arith.constant dense<0.000000e+00> : vector<8x8xf32>
    %44 = tpu.matmul %39, %41, %cst_17 {dimension_numbers = #tpu.dot_dimension_numbers<[1], [1], [0], [0], [0, 0, 1, 0], [], []>} : vector<8x32xbf16>, vector<8x32xbf16>, vector<8x8xf32> -> vector<8x8xf32>
    %cst_18 = arith.constant 0.176776692 : f32
    %45 = vector.broadcast %cst_18 : f32 to vector<8x8xf32>
    %46 = arith.mulf %44, %45 : vector<8x8xf32>
    %47 = vector.broadcast %12 : vector<1x8xf32> to vector<8x8xf32>
    %48 = arith.addf %46, %47 : vector<8x8xf32>
    %cst_19 = arith.constant dense<0xFF800000> : vector<8xf32>
    %49 = vector.multi_reduction <maximumf>, %48, %cst_19 [1] : vector<8x8xf32> to vector<8xf32>
    %50 = vector.shape_cast %49 : vector<8xf32> to vector<8x1xf32>
    %51 = vector.broadcast %50 : vector<8x1xf32> to vector<8x8xf32>
    %52 = arith.subf %48, %51 : vector<8x8xf32>
    %53 = math.exp %52 : vector<8x8xf32>
    %cst_20 = arith.constant dense<0.000000e+00> : vector<8xf32>
    %54 = vector.multi_reduction <add>, %53, %cst_20 [1] : vector<8x8xf32> to vector<8xf32>
    %55 = vector.shape_cast %54 : vector<8xf32> to vector<8x1xf32>
    %56 = tpu.reciprocal %55 {approx = true} : vector<8x1xf32> -> vector<8x1xf32>
    %57 = vector.broadcast %56 : vector<8x1xf32> to vector<8x8xf32>
    %58 = arith.mulf %53, %57 : vector<8x8xf32>
    %59 = arith.truncf %58 : vector<8x8xf32> to vector<8x8xbf16>
    %cst_21 = arith.constant dense<0.000000e+00> : vector<8x32xf32>
    %60 = tpu.matmul %59, %43, %cst_21 {dimension_numbers = #tpu.dot_dimension_numbers<[1], [0], [0], [1], [0, 0, 1, 1], [], []>} : vector<8x8xbf16>, vector<8x32xbf16>, vector<8x32xf32> -> vector<8x32xf32>
    %c0_22 = arith.constant 0 : index
    %c32 = arith.constant 32 : index
    %61 = vector.load %arg23[%c0_22, %c32] : memref<16x64xf32, #tpu.memory_space<vmem>>, vector<8x32xf32>
    tpu.vector_store %arg23[%c0_22, %c32], %60 {strides = array<i32>} : memref<16x64xf32, #tpu.memory_space<vmem>>, vector<8x32xf32>,
    %c1 = arith.constant 1 : index
    %c0_23 = arith.constant 0 : index
    %62 = vector.load %arg6[%c1, %c0_23] : memref<2x8xf32, #tpu.memory_space<vmem>>, vector<1x8xf32>
    %63 = vector.extract_strided_slice %11 {offsets = [8, 0], sizes = [8, 192], strides = [1, 1]} : vector<16x192xf32> to vector<8x192xf32>
    %64 = vector.extract_strided_slice %63 {offsets = [0, 0], sizes = [8, 32], strides = [1, 1]} : vector<8x192xf32> to vector<8x32xf32>
    %65 = arith.truncf %64 : vector<8x32xf32> to vector<8x32xbf16>
    %66 = vector.extract_strided_slice %63 {offsets = [0, 64], sizes = [8, 32], strides = [1, 1]} : vector<8x192xf32> to vector<8x32xf32>
    %67 = arith.truncf %66 : vector<8x32xf32> to vector<8x32xbf16>
    %68 = vector.extract_strided_slice %63 {offsets = [0, 128], sizes = [8, 32], strides = [1, 1]} : vector<8x192xf32> to vector<8x32xf32>
    %69 = arith.truncf %68 : vector<8x32xf32> to vector<8x32xbf16>
    %cst_24 = arith.constant dense<0.000000e+00> : vector<8x8xf32>
    %70 = tpu.matmul %65, %67, %cst_24 {dimension_numbers = #tpu.dot_dimension_numbers<[1], [1], [0], [0], [0, 0, 1, 0], [], []>} : vector<8x32xbf16>, vector<8x32xbf16>, vector<8x8xf32> -> vector<8x8xf32>
    %cst_25 = arith.constant 0.176776692 : f32
    %71 = vector.broadcast %cst_25 : f32 to vector<8x8xf32>
    %72 = arith.mulf %70, %71 : vector<8x8xf32>
    %73 = vector.broadcast %62 : vector<1x8xf32> to vector<8x8xf32>
    %74 = arith.addf %72, %73 : vector<8x8xf32>
    %cst_26 = arith.constant dense<0xFF800000> : vector<8xf32>
    %75 = vector.multi_reduction <maximumf>, %74, %cst_26 [1] : vector<8x8xf32> to vector<8xf32>
    %76 = vector.shape_cast %75 : vector<8xf32> to vector<8x1xf32>
    %77 = vector.broadcast %76 : vector<8x1xf32> to vector<8x8xf32>
    %78 = arith.subf %74, %77 : vector<8x8xf32>
    %79 = math.exp %78 : vector<8x8xf32>
    %cst_27 = arith.constant dense<0.000000e+00> : vector<8xf32>
    %80 = vector.multi_reduction <add>, %79, %cst_27 [1] : vector<8x8xf32> to vector<8xf32>
    %81 = vector.shape_cast %80 : vector<8xf32> to vector<8x1xf32>
    %82 = tpu.reciprocal %81 {approx = true} : vector<8x1xf32> -> vector<8x1xf32>
    %83 = vector.broadcast %82 : vector<8x1xf32> to vector<8x8xf32>
    %84 = arith.mulf %79, %83 : vector<8x8xf32>
    %85 = arith.truncf %84 : vector<8x8xf32> to vector<8x8xbf16>
    %cst_28 = arith.constant dense<0.000000e+00> : vector<8x32xf32>
    %86 = tpu.matmul %85, %69, %cst_28 {dimension_numbers = #tpu.dot_dimension_numbers<[1], [0], [0], [1], [0, 0, 1, 1], [], []>} : vector<8x8xbf16>, vector<8x32xbf16>, vector<8x32xf32> -> vector<8x32xf32>
    %c8 = arith.constant 8 : index
    %c0_29 = arith.constant 0 : index
    %87 = vector.load %arg23[%c8, %c0_29] : memref<16x64xf32, #tpu.memory_space<vmem>>, vector<8x32xf32>
    tpu.vector_store %arg23[%c8, %c0_29], %86 {strides = array<i32>} : memref<16x64xf32, #tpu.memory_space<vmem>>, vector<8x32xf32>,
    %88 = vector.extract_strided_slice %63 {offsets = [0, 32], sizes = [8, 32], strides = [1, 1]} : vector<8x192xf32> to vector<8x32xf32>
    %89 = arith.truncf %88 : vector<8x32xf32> to vector<8x32xbf16>
    %90 = vector.extract_strided_slice %63 {offsets = [0, 96], sizes = [8, 32], strides = [1, 1]} : vector<8x192xf32> to vector<8x32xf32>
    %91 = arith.truncf %90 : vector<8x32xf32> to vector<8x32xbf16>
    %92 = vector.extract_strided_slice %63 {offsets = [0, 160], sizes = [8, 32], strides = [1, 1]} : vector<8x192xf32> to vector<8x32xf32>
    %93 = arith.truncf %92 : vector<8x32xf32> to vector<8x32xbf16>
    %cst_30 = arith.constant dense<0.000000e+00> : vector<8x8xf32>
    %94 = tpu.matmul %89, %91, %cst_30 {dimension_numbers = #tpu.dot_dimension_numbers<[1], [1], [0], [0], [0, 0, 1, 0], [], []>} : vector<8x32xbf16>, vector<8x32xbf16>, vector<8x8xf32> -> vector<8x8xf32>
    %cst_31 = arith.constant 0.176776692 : f32
    %95 = vector.broadcast %cst_31 : f32 to vector<8x8xf32>
    %96 = arith.mulf %94, %95 : vector<8x8xf32>
    %97 = vector.broadcast %62 : vector<1x8xf32> to vector<8x8xf32>
    %98 = arith.addf %96, %97 : vector<8x8xf32>
    %cst_32 = arith.constant dense<0xFF800000> : vector<8xf32>
    %99 = vector.multi_reduction <maximumf>, %98, %cst_32 [1] : vector<8x8xf32> to vector<8xf32>
    %100 = vector.shape_cast %99 : vector<8xf32> to vector<8x1xf32>
    %101 = vector.broadcast %100 : vector<8x1xf32> to vector<8x8xf32>
    %102 = arith.subf %98, %101 : vector<8x8xf32>
    %103 = math.exp %102 : vector<8x8xf32>
    %cst_33 = arith.constant dense<0.000000e+00> : vector<8xf32>
    %104 = vector.multi_reduction <add>, %103, %cst_33 [1] : vector<8x8xf32> to vector<8xf32>
    %105 = vector.shape_cast %104 : vector<8xf32> to vector<8x1xf32>
    %106 = tpu.reciprocal %105 {approx = true} : vector<8x1xf32> -> vector<8x1xf32>
    %107 = vector.broadcast %106 : vector<8x1xf32> to vector<8x8xf32>
    %108 = arith.mulf %103, %107 : vector<8x8xf32>
    %109 = arith.truncf %108 : vector<8x8xf32> to vector<8x8xbf16>
    %cst_34 = arith.constant dense<0.000000e+00> : vector<8x32xf32>
    %110 = tpu.matmul %109, %93, %cst_34 {dimension_numbers = #tpu.dot_dimension_numbers<[1], [0], [0], [1], [0, 0, 1, 1], [], []>} : vector<8x8xbf16>, vector<8x32xbf16>, vector<8x32xf32> -> vector<8x32xf32>
    %c8_35 = arith.constant 8 : index
    %c32_36 = arith.constant 32 : index
    %111 = vector.load %arg23[%c8_35, %c32_36] : memref<16x64xf32, #tpu.memory_space<vmem>>, vector<8x32xf32>
    tpu.vector_store %arg23[%c8_35, %c32_36], %110 {strides = array<i32>} : memref<16x64xf32, #tpu.memory_space<vmem>>, vector<8x32xf32>,
    %c0_37 = arith.constant 0 : index
    %c0_38 = arith.constant 0 : index
    %112 = vector.load %arg23[%c0_37, %c0_38] : memref<16x64xf32, #tpu.memory_space<vmem>>, vector<16x64xf32>
    %113 = arith.truncf %112 : vector<16x64xf32> to vector<16x64xbf16>
    %c0_39 = arith.constant 0 : index
    %c0_40 = arith.constant 0 : index
    %c0_41 = arith.constant 0 : index
    %114 = vector.load %arg9[%c0_39, %c0_40, %c0_41] : memref<1x64x64xbf16, #tpu.memory_space<vmem>>, vector<1x64x64xbf16>
    %115 = vector.shape_cast %114 : vector<1x64x64xbf16> to vector<64x64xbf16>
    %cst_42 = arith.constant dense<0.000000e+00> : vector<16x64xf32>
    %116 = tpu.matmul %113, %115, %cst_42 {dimension_numbers = #tpu.dot_dimension_numbers<[1], [0], [0], [1], [0, 0, 1, 1], [], []>} : vector<16x64xbf16>, vector<64x64xbf16>, vector<16x64xf32> -> vector<16x64xf32>
    %c0_43 = arith.constant 0 : index
    %c0_44 = arith.constant 0 : index
    %c0_45 = arith.constant 0 : index
    %117 = vector.load %arg10[%c0_43, %c0_44, %c0_45] : memref<1x1x64xf32, #tpu.memory_space<vmem>>, vector<1x1x64xf32>
    %118 = vector.shape_cast %117 : vector<1x1x64xf32> to vector<1x64xf32>
    %119 = vector.broadcast %118 : vector<1x64xf32> to vector<16x64xf32>
    %120 = arith.addf %116, %119 : vector<16x64xf32>
    %121 = arith.addf %120, %3 : vector<16x64xf32>
    %c0_46 = arith.constant 0 : index
    %c0_47 = arith.constant 0 : index
    %c0_48 = arith.constant 0 : index
    %122 = vector.load %arg11[%c0_46, %c0_47, %c0_48] : memref<1x1x64xf32, #tpu.memory_space<vmem>>, vector<1x1x64xf32>
    %123 = vector.shape_cast %122 : vector<1x1x64xf32> to vector<1x64xf32>
    %c0_49 = arith.constant 0 : index
    %c0_50 = arith.constant 0 : index
    %c0_51 = arith.constant 0 : index
    %124 = vector.load %arg12[%c0_49, %c0_50, %c0_51] : memref<1x1x64xf32, #tpu.memory_space<vmem>>, vector<1x1x64xf32>
    %125 = vector.shape_cast %124 : vector<1x1x64xf32> to vector<1x64xf32>
    %cst_52 = arith.constant dense<0.000000e+00> : vector<16xf32>
    %126 = vector.multi_reduction <add>, %121, %cst_52 [1] : vector<16x64xf32> to vector<16xf32>
    %127 = vector.shape_cast %126 : vector<16xf32> to vector<16x1xf32>
    %cst_53 = arith.constant 6.400000e+01 : f32
    %128 = vector.broadcast %cst_53 : f32 to vector<16x1xf32>
    %129 = arith.divf %127, %128 : vector<16x1xf32>
    %130 = vector.broadcast %129 : vector<16x1xf32> to vector<16x64xf32>
    %131 = arith.subf %121, %130 : vector<16x64xf32>
    %132 = arith.mulf %131, %131 : vector<16x64xf32>
    %cst_54 = arith.constant dense<0.000000e+00> : vector<16xf32>
    %133 = vector.multi_reduction <add>, %132, %cst_54 [1] : vector<16x64xf32> to vector<16xf32>
    %134 = vector.shape_cast %133 : vector<16xf32> to vector<16x1xf32>
    %cst_55 = arith.constant 6.400000e+01 : f32
    %135 = vector.broadcast %cst_55 : f32 to vector<16x1xf32>
    %136 = arith.divf %134, %135 : vector<16x1xf32>
    %137 = vector.broadcast %129 : vector<16x1xf32> to vector<16x64xf32>
    %138 = arith.subf %121, %137 : vector<16x64xf32>
    %cst_56 = arith.constant 9.99999996E-13 : f32
    %139 = vector.broadcast %cst_56 : f32 to vector<16x1xf32>
    %140 = arith.addf %136, %139 : vector<16x1xf32>
    %141 = math.rsqrt %140 : vector<16x1xf32>
    %142 = vector.broadcast %141 : vector<16x1xf32> to vector<16x64xf32>
    %143 = arith.mulf %138, %142 : vector<16x64xf32>
    %144 = vector.broadcast %123 : vector<1x64xf32> to vector<16x64xf32>
    %145 = arith.mulf %143, %144 : vector<16x64xf32>
    %146 = vector.broadcast %125 : vector<1x64xf32> to vector<16x64xf32>
    %147 = arith.addf %145, %146 : vector<16x64xf32>
    %148 = arith.truncf %147 : vector<16x64xf32> to vector<16x64xbf16>
    %c0_57 = arith.constant 0 : index
    %c0_58 = arith.constant 0 : index
    %c0_59 = arith.constant 0 : index
    %149 = vector.load %arg13[%c0_57, %c0_58, %c0_59] : memref<1x64x128xbf16, #tpu.memory_space<vmem>>, vector<1x64x128xbf16>
    %150 = vector.shape_cast %149 : vector<1x64x128xbf16> to vector<64x128xbf16>
    %cst_60 = arith.constant dense<0.000000e+00> : vector<16x128xf32>
    %151 = tpu.matmul %148, %150, %cst_60 {dimension_numbers = #tpu.dot_dimension_numbers<[1], [0], [0], [1], [0, 0, 1, 1], [], []>} : vector<16x64xbf16>, vector<64x128xbf16>, vector<16x128xf32> -> vector<16x128xf32>
    %c0_61 = arith.constant 0 : index
    %c0_62 = arith.constant 0 : index
    %c0_63 = arith.constant 0 : index
    %152 = vector.load %arg14[%c0_61, %c0_62, %c0_63] : memref<1x1x128xf32, #tpu.memory_space<vmem>>, vector<1x1x128xf32>
    %153 = vector.shape_cast %152 : vector<1x1x128xf32> to vector<1x128xf32>
    %154 = vector.broadcast %153 : vector<1x128xf32> to vector<16x128xf32>
    %155 = arith.addf %151, %154 : vector<16x128xf32>
    %156 = arith.mulf %155, %155 : vector<16x128xf32>
    %157 = arith.mulf %155, %156 : vector<16x128xf32>
    %cst_64 = arith.constant 4.471500e-02 : f32
    %158 = vector.broadcast %cst_64 : f32 to vector<16x128xf32>
    %159 = arith.mulf %158, %157 : vector<16x128xf32>
    %160 = arith.addf %155, %159 : vector<16x128xf32>
    %cst_65 = arith.constant 0.797884583 : f32
    %161 = vector.broadcast %cst_65 : f32 to vector<16x128xf32>
    %162 = arith.mulf %161, %160 : vector<16x128xf32>
    %163 = math.tanh %162 : vector<16x128xf32>
    %cst_66 = arith.constant 1.000000e+00 : f32
    %164 = vector.broadcast %cst_66 : f32 to vector<16x128xf32>
    %165 = arith.addf %164, %163 : vector<16x128xf32>
    %cst_67 = arith.constant 5.000000e-01 : f32
    %166 = vector.broadcast %cst_67 : f32 to vector<16x128xf32>
    %167 = arith.mulf %166, %165 : vector<16x128xf32>
    %168 = arith.mulf %155, %167 : vector<16x128xf32>
    %169 = arith.truncf %168 : vector<16x128xf32> to vector<16x128xbf16>
    %c0_68 = arith.constant 0 : index
    %c0_69 = arith.constant 0 : index
    %c0_70 = arith.constant 0 : index
    %170 = vector.load %arg15[%c0_68, %c0_69, %c0_70] : memref<1x128x64xbf16, #tpu.memory_space<vmem>>, vector<1x128x64xbf16>
    %171 = vector.shape_cast %170 : vector<1x128x64xbf16> to vector<128x64xbf16>
    %cst_71 = arith.constant dense<0.000000e+00> : vector<16x64xf32>
    %172 = tpu.matmul %169, %171, %cst_71 {dimension_numbers = #tpu.dot_dimension_numbers<[1], [0], [0], [1], [0, 0, 1, 1], [], []>} : vector<16x128xbf16>, vector<128x64xbf16>, vector<16x64xf32> -> vector<16x64xf32>
    %c0_72 = arith.constant 0 : index
    %c0_73 = arith.constant 0 : index
    %c0_74 = arith.constant 0 : index
    %173 = vector.load %arg16[%c0_72, %c0_73, %c0_74] : memref<1x1x64xf32, #tpu.memory_space<vmem>>, vector<1x1x64xf32>
    %174 = vector.shape_cast %173 : vector<1x1x64xf32> to vector<1x64xf32>
    %175 = vector.broadcast %174 : vector<1x64xf32> to vector<16x64xf32>
    %176 = arith.addf %172, %175 : vector<16x64xf32>
    %177 = arith.addf %176, %147 : vector<16x64xf32>
    %c0_75 = arith.constant 0 : index
    %c0_76 = arith.constant 0 : index
    %c0_77 = arith.constant 0 : index
    %178 = vector.load %arg17[%c0_75, %c0_76, %c0_77] : memref<1x1x64xf32, #tpu.memory_space<vmem>>, vector<1x1x64xf32>
    %179 = vector.shape_cast %178 : vector<1x1x64xf32> to vector<1x64xf32>
    %c0_78 = arith.constant 0 : index
    %c0_79 = arith.constant 0 : index
    %c0_80 = arith.constant 0 : index
    %180 = vector.load %arg18[%c0_78, %c0_79, %c0_80] : memref<1x1x64xf32, #tpu.memory_space<vmem>>, vector<1x1x64xf32>
    %181 = vector.shape_cast %180 : vector<1x1x64xf32> to vector<1x64xf32>
    %cst_81 = arith.constant dense<0.000000e+00> : vector<16xf32>
    %182 = vector.multi_reduction <add>, %177, %cst_81 [1] : vector<16x64xf32> to vector<16xf32>
    %183 = vector.shape_cast %182 : vector<16xf32> to vector<16x1xf32>
    %cst_82 = arith.constant 6.400000e+01 : f32
    %184 = vector.broadcast %cst_82 : f32 to vector<16x1xf32>
    %185 = arith.divf %183, %184 : vector<16x1xf32>
    %186 = vector.broadcast %185 : vector<16x1xf32> to vector<16x64xf32>
    %187 = arith.subf %177, %186 : vector<16x64xf32>
    %188 = arith.mulf %187, %187 : vector<16x64xf32>
    %cst_83 = arith.constant dense<0.000000e+00> : vector<16xf32>
    %189 = vector.multi_reduction <add>, %188, %cst_83 [1] : vector<16x64xf32> to vector<16xf32>
    %190 = vector.shape_cast %189 : vector<16xf32> to vector<16x1xf32>
    %cst_84 = arith.constant 6.400000e+01 : f32
    %191 = vector.broadcast %cst_84 : f32 to vector<16x1xf32>
    %192 = arith.divf %190, %191 : vector<16x1xf32>
    %193 = vector.broadcast %185 : vector<16x1xf32> to vector<16x64xf32>
    %194 = arith.subf %177, %193 : vector<16x64xf32>
    %cst_85 = arith.constant 9.99999996E-13 : f32
    %195 = vector.broadcast %cst_85 : f32 to vector<16x1xf32>
    %196 = arith.addf %192, %195 : vector<16x1xf32>
    %197 = math.rsqrt %196 : vector<16x1xf32>
    %198 = vector.broadcast %197 : vector<16x1xf32> to vector<16x64xf32>
    %199 = arith.mulf %194, %198 : vector<16x64xf32>
    %200 = vector.broadcast %179 : vector<1x64xf32> to vector<16x64xf32>
    %201 = arith.mulf %199, %200 : vector<16x64xf32>
    %202 = vector.broadcast %181 : vector<1x64xf32> to vector<16x64xf32>
    %203 = arith.addf %201, %202 : vector<16x64xf32>
    %c0_86 = arith.constant 0 : index
    %c0_87 = arith.constant 0 : index
    %204 = vector.load %arg21[%c0_86, %c0_87] : memref<16x64xf32, #tpu.memory_space<vmem>>, vector<16x64xf32>
    tpu.vector_store %arg21[%c0_86, %c0_87], %203 {strides = array<i32>} : memref<16x64xf32, #tpu.memory_space<vmem>>, vector<16x64xf32>,
    %c1_i32 = arith.constant 1 : i32
    %205 = arith.cmpi eq, %arg0, %c1_i32 : i32
    %206 = arith.extui %205 : i1 to i32
    %c0_i32_88 = arith.constant 0 : i32
    %207 = arith.cmpi ne, %206, %c0_i32_88 : i32
    scf.if %207 {
      %208 = tpu.iota {dimensions = array<i32: 0>} : vector<16x1xi32>
      %c0_i32_89 = arith.constant 0 : i32
      %209 = vector.broadcast %c0_i32_89 : i32 to vector<16x1xi32>
      %210 = arith.cmpi eq, %208, %209 : vector<16x1xi32>
      %c7_i32 = arith.constant 7 : i32
      %211 = vector.broadcast %c7_i32 : i32 to vector<16x1xi32>
      %212 = arith.cmpi eq, %208, %211 : vector<16x1xi32>
      %c8_i32 = arith.constant 8 : i32
      %213 = vector.broadcast %c8_i32 : i32 to vector<16x1xi32>
      %214 = arith.cmpi eq, %208, %213 : vector<16x1xi32>
      %215 = arith.ori %210, %214 : vector<16x1xi1>
      %c15_i32 = arith.constant 15 : i32
      %216 = vector.broadcast %c15_i32 : i32 to vector<16x1xi32>
      %217 = arith.cmpi eq, %208, %216 : vector<16x1xi32>
      %218 = arith.ori %212, %217 : vector<16x1xi1>
      %219 = arith.truncf %203 : vector<16x64xf32> to vector<16x64xbf16>
      %c1_90 = arith.constant 1 : index
      %c0_91 = arith.constant 0 : index
      %c0_92 = arith.constant 0 : index
      %220 = vector.load %arg19[%c1_90, %c0_91, %c0_92] : memref<3x64x32xbf16, #tpu.memory_space<vmem>>, vector<1x64x32xbf16>
      %221 = vector.shape_cast %220 : vector<1x64x32xbf16> to vector<64x32xbf16>
      %cst_93 = arith.constant dense<0.000000e+00> : vector<16x32xf32>
      %222 = tpu.matmul %219, %221, %cst_93 {dimension_numbers = #tpu.dot_dimension_numbers<[1], [0], [0], [1], [0, 0, 1, 1], [], []>} : vector<16x64xbf16>, vector<64x32xbf16>, vector<16x32xf32> -> vector<16x32xf32>
      %c1_i32_94 = arith.constant 1 : i32
      %223 = tpu.dynamic_rotate %203 by %c1_i32_94 dim 0 : vector<16x64xf32>, i32 -> vector<16x64xf32>
      %224 = arith.truncf %223 : vector<16x64xf32> to vector<16x64xbf16>
      %c0_95 = arith.constant 0 : index
      %c0_96 = arith.constant 0 : index
      %c0_97 = arith.constant 0 : index
      %225 = vector.load %arg19[%c0_95, %c0_96, %c0_97] : memref<3x64x32xbf16, #tpu.memory_space<vmem>>, vector<1x64x32xbf16>
      %226 = vector.shape_cast %225 : vector<1x64x32xbf16> to vector<64x32xbf16>
      %cst_98 = arith.constant dense<0.000000e+00> : vector<16x32xf32>
      %227 = tpu.matmul %224, %226, %cst_98 {dimension_numbers = #tpu.dot_dimension_numbers<[1], [0], [0], [1], [0, 0, 1, 1], [], []>} : vector<16x64xbf16>, vector<64x32xbf16>, vector<16x32xf32> -> vector<16x32xf32>
      %cst_99 = arith.constant 0.000000e+00 : f32
      %228 = vector.shape_cast %215 : vector<16x1xi1> to vector<16x1xi1>
      %229 = vector.broadcast %228 : vector<16x1xi1> to vector<16x32xi1>
      %230 = vector.broadcast %cst_99 : f32 to vector<16x32xf32>
      %231 = arith.select %229, %230, %227 : vector<16x32xi1>, vector<16x32xf32>
      %232 = arith.addf %222, %231 : vector<16x32xf32>
      %c15_i32_100 = arith.constant 15 : i32
      %233 = tpu.dynamic_rotate %203 by %c15_i32_100 dim 0 : vector<16x64xf32>, i32 -> vector<16x64xf32>
      %234 = arith.truncf %233 : vector<16x64xf32> to vector<16x64xbf16>
      %c2 = arith.constant 2 : index
      %c0_101 = arith.constant 0 : index
      %c0_102 = arith.constant 0 : index
      %235 = vector.load %arg19[%c2, %c0_101, %c0_102] : memref<3x64x32xbf16, #tpu.memory_space<vmem>>, vector<1x64x32xbf16>
      %236 = vector.shape_cast %235 : vector<1x64x32xbf16> to vector<64x32xbf16>
      %cst_103 = arith.constant dense<0.000000e+00> : vector<16x32xf32>
      %237 = tpu.matmul %234, %236, %cst_103 {dimension_numbers = #tpu.dot_dimension_numbers<[1], [0], [0], [1], [0, 0, 1, 1], [], []>} : vector<16x64xbf16>, vector<64x32xbf16>, vector<16x32xf32> -> vector<16x32xf32>
      %cst_104 = arith.constant 0.000000e+00 : f32
      %238 = vector.shape_cast %218 : vector<16x1xi1> to vector<16x1xi1>
      %239 = vector.broadcast %238 : vector<16x1xi1> to vector<16x32xi1>
      %240 = vector.broadcast %cst_104 : f32 to vector<16x32xf32>
      %241 = arith.select %239, %240, %237 : vector<16x32xi1>, vector<16x32xf32>
      %242 = arith.addf %232, %241 : vector<16x32xf32>
      %c0_105 = arith.constant 0 : index
      %c0_106 = arith.constant 0 : index
      %243 = vector.load %arg20[%c0_105, %c0_106] : memref<1x32xf32, #tpu.memory_space<vmem>>, vector<1x32xf32>
      %244 = vector.broadcast %243 : vector<1x32xf32> to vector<16x32xf32>
      %245 = arith.addf %242, %244 : vector<16x32xf32>
      %246 = vector.extract_strided_slice %245 {offsets = [0, 0], sizes = [8, 32], strides = [1, 1]} : vector<16x32xf32> to vector<8x32xf32>
      %cst_107 = arith.constant dense<0xFF800000> : vector<32xf32>
      %247 = vector.multi_reduction <maximumf>, %246, %cst_107 [0] : vector<8x32xf32> to vector<32xf32>
      %248 = vector.shape_cast %247 : vector<32xf32> to vector<1x32xf32>
      %249 = vector.extract_strided_slice %245 {offsets = [8, 0], sizes = [8, 32], strides = [1, 1]} : vector<16x32xf32> to vector<8x32xf32>
      %cst_108 = arith.constant dense<0xFF800000> : vector<32xf32>
      %250 = vector.multi_reduction <maximumf>, %249, %cst_108 [0] : vector<8x32xf32> to vector<32xf32>
      %251 = vector.shape_cast %250 : vector<32xf32> to vector<1x32xf32>
      %252 = tpu.concatenate %248, %251 in 0 : vector<1x32xf32>, vector<1x32xf32> -> vector<2x32xf32>
      %c0_109 = arith.constant 0 : index
      %c0_110 = arith.constant 0 : index
      %253 = vector.load %arg22[%c0_109, %c0_110] : memref<2x32xf32, #tpu.memory_space<vmem>>, vector<2x32xf32>
      tpu.vector_store %arg22[%c0_109, %c0_110], %252 {strides = array<i32>} : memref<2x32xf32, #tpu.memory_space<vmem>>, vector<2x32xf32>,
    } else {
    }
    return
  }
  func.func @transform_0(%arg0: i32) -> (i32, i32) {
    %c0_i32 = arith.constant 0 : i32
    %c0_i32_0 = arith.constant 0 : i32
    %c0_i32_1 = arith.constant 0 : i32
    return %c0_i32, %c0_i32_0 : i32, i32
  }
  func.func @transform_1(%arg0: i32) -> (i32, i32) {
    %c0_i32 = arith.constant 0 : i32
    %c0_i32_0 = arith.constant 0 : i32
    %c0_i32_1 = arith.constant 0 : i32
    return %c0_i32, %c0_i32_0 : i32, i32
  }
  func.func @transform_2(%arg0: i32) -> (i32, i32) {
    %c0_i32 = arith.constant 0 : i32
    %c0_i32_0 = arith.constant 0 : i32
    %c0_i32_1 = arith.constant 0 : i32
    return %c0_i32, %c0_i32_0 : i32, i32
  }
  func.func @transform_3(%arg0: i32) -> (i32, i32) {
    %c0_i32 = arith.constant 0 : i32
    %c0_i32_0 = arith.constant 0 : i32
    %c0_i32_1 = arith.constant 0 : i32
    return %c0_i32, %c0_i32_0 : i32, i32
  }
  func.func @transform_4(%arg0: i32) -> (i32, i32) {
    %c0_i32 = arith.constant 0 : i32
    %c0_i32_0 = arith.constant 0 : i32
    %c0_i32_1 = arith.constant 0 : i32
    return %c0_i32, %c0_i32_0 : i32, i32
  }
  func.func @transform_5(%arg0: i32) -> (i32, i32) {
    %c0_i32 = arith.constant 0 : i32
    %c0_i32_0 = arith.constant 0 : i32
    %c0_i32_1 = arith.constant 0 : i32
    return %c0_i32, %c0_i32_0 : i32, i32
  }
  func.func @transform_6(%arg0: i32) -> (i32, i32, i32) {
    %c0_i32 = arith.constant 0 : i32
    %c0_i32_0 = arith.constant 0 : i32
    %c0_i32_1 = arith.constant 0 : i32
    return %arg0, %c0_i32, %c0_i32_0 : i32, i32, i32
  }
  func.func @transform_7(%arg0: i32) -> (i32, i32, i32) {
    %c0_i32 = arith.constant 0 : i32
    %c0_i32_0 = arith.constant 0 : i32
    %c0_i32_1 = arith.constant 0 : i32
    return %arg0, %c0_i32, %c0_i32_0 : i32, i32, i32
  }
  func.func @transform_8(%arg0: i32) -> (i32, i32, i32) {
    %c0_i32 = arith.constant 0 : i32
    %c0_i32_0 = arith.constant 0 : i32
    %c0_i32_1 = arith.constant 0 : i32
    return %arg0, %c0_i32, %c0_i32_0 : i32, i32, i32
  }
  func.func @transform_9(%arg0: i32) -> (i32, i32, i32) {
    %c0_i32 = arith.constant 0 : i32
    %c0_i32_0 = arith.constant 0 : i32
    %c0_i32_1 = arith.constant 0 : i32
    return %arg0, %c0_i32, %c0_i32_0 : i32, i32, i32
  }
  func.func @transform_10(%arg0: i32) -> (i32, i32, i32) {
    %c0_i32 = arith.constant 0 : i32
    %c0_i32_0 = arith.constant 0 : i32
    %c0_i32_1 = arith.constant 0 : i32
    return %arg0, %c0_i32, %c0_i32_0 : i32, i32, i32
  }
  func.func @transform_11(%arg0: i32) -> (i32, i32, i32) {
    %c0_i32 = arith.constant 0 : i32
    %c0_i32_0 = arith.constant 0 : i32
    %c0_i32_1 = arith.constant 0 : i32
    return %arg0, %c0_i32, %c0_i32_0 : i32, i32, i32
  }
  func.func @transform_12(%arg0: i32) -> (i32, i32, i32) {
    %c0_i32 = arith.constant 0 : i32
    %c0_i32_0 = arith.constant 0 : i32
    %c0_i32_1 = arith.constant 0 : i32
    return %arg0, %c0_i32, %c0_i32_0 : i32, i32, i32
  }
  func.func @transform_13(%arg0: i32) -> (i32, i32, i32) {
    %c0_i32 = arith.constant 0 : i32
    %c0_i32_0 = arith.constant 0 : i32
    %c0_i32_1 = arith.constant 0 : i32
    return %arg0, %c0_i32, %c0_i32_0 : i32, i32, i32
  }
  func.func @transform_14(%arg0: i32) -> (i32, i32, i32) {
    %c0_i32 = arith.constant 0 : i32
    %c0_i32_0 = arith.constant 0 : i32
    %c0_i32_1 = arith.constant 0 : i32
    return %arg0, %c0_i32, %c0_i32_0 : i32, i32, i32
  }
  func.func @transform_15(%arg0: i32) -> (i32, i32, i32) {
    %c0_i32 = arith.constant 0 : i32
    %c0_i32_0 = arith.constant 0 : i32
    %c0_i32_1 = arith.constant 0 : i32
    return %arg0, %c0_i32, %c0_i32_0 : i32, i32, i32
  }
  func.func @transform_16(%arg0: i32) -> (i32, i32, i32) {
    %c0_i32 = arith.constant 0 : i32
    %c0_i32_0 = arith.constant 0 : i32
    %c0_i32_1 = arith.constant 0 : i32
    return %arg0, %c0_i32, %c0_i32_0 : i32, i32, i32
  }
  func.func @transform_17(%arg0: i32) -> (i32, i32, i32) {
    %c0_i32 = arith.constant 0 : i32
    %c0_i32_0 = arith.constant 0 : i32
    %c0_i32_1 = arith.constant 0 : i32
    return %arg0, %c0_i32, %c0_i32_0 : i32, i32, i32
  }
  func.func @transform_18(%arg0: i32) -> (i32, i32, i32) {
    %c0_i32 = arith.constant 0 : i32
    %c0_i32_0 = arith.constant 0 : i32
    %c0_i32_1 = arith.constant 0 : i32
    %c0_i32_2 = arith.constant 0 : i32
    return %c0_i32, %c0_i32_0, %c0_i32_1 : i32, i32, i32
  }
  func.func @transform_19(%arg0: i32) -> (i32, i32) {
    %c0_i32 = arith.constant 0 : i32
    %c0_i32_0 = arith.constant 0 : i32
    %c0_i32_1 = arith.constant 0 : i32
    return %c0_i32, %c0_i32_0 : i32, i32
  }
  func.func @transform_20(%arg0: i32) -> (i32, i32) {
    %c0_i32 = arith.constant 0 : i32
    %c0_i32_0 = arith.constant 0 : i32
    %c0_i32_1 = arith.constant 0 : i32
    return %c0_i32, %c0_i32_0 : i32, i32
  }
  func.func @transform_21(%arg0: i32) -> (i32, i32) {
    %c0_i32 = arith.constant 0 : i32
    %c0_i32_0 = arith.constant 0 : i32
    %c0_i32_1 = arith.constant 0 : i32
    return %c0_i32, %c0_i32_0 : i32, i32
  }
}

module attributes {stable_mosaic.version = 11 : i64} {
  func.func @_bilstm_stack_kernel(%arg0: i32, %arg1: memref<16x64xf32, #tpu.memory_space<vmem>>, %arg2: memref<1x64x256xbf16, #tpu.memory_space<vmem>>, %arg3: memref<1x64x256xbf16, #tpu.memory_space<vmem>>, %arg4: memref<1x1x256xf32, #tpu.memory_space<vmem>>, %arg5: memref<2x64xf32, #tpu.memory_space<vmem>>, %arg6: memref<16x64xf32, #tpu.memory_space<vmem>>, %arg7: memref<16x256xf32, #tpu.memory_space<vmem>>, %arg8: memref<2x64xf32, #tpu.memory_space<vmem>>, %arg9: memref<2x64xf32, #tpu.memory_space<vmem>>, %arg10: memref<16x32xf32, #tpu.memory_space<vmem>>, %arg11: memref<16x32xf32, #tpu.memory_space<vmem>>) attributes {dimension_semantics = [#tpu.dimension_semantics<arbitrary>], iteration_bounds = array<i64: 2>, scalar_prefetch = 0 : i64, scratch_operands = 6 : i64, tpu.core_type = #tpu.core_type<tc>, window_params = [{pipeline_mode = #tpu.pipeline_mode<synchronous>, transform_indices = @transform_0, window_bounds = array<i64: 16, 64>}, {transform_indices = @transform_1, window_bounds = array<i64: 1, 64, 256>}, {transform_indices = @transform_2, window_bounds = array<i64: 1, 64, 256>}, {transform_indices = @transform_3, window_bounds = array<i64: 1, 1, 256>}, {pipeline_mode = #tpu.pipeline_mode<synchronous>, transform_indices = @transform_4, window_bounds = array<i64: 2, 64>}]} {
    %c0_i32 = arith.constant 0 : i32
    %0 = arith.cmpi eq, %arg0, %c0_i32 : i32
    %1 = arith.extui %0 : i1 to i32
    %c0_i32_0 = arith.constant 0 : i32
    %2 = arith.cmpi ne, %1, %c0_i32_0 : i32
    scf.if %2 {
      %c0_241 = arith.constant 0 : index
      %c0_242 = arith.constant 0 : index
      %672 = vector.load %arg1[%c0_241, %c0_242] : memref<16x64xf32, #tpu.memory_space<vmem>>, vector<16x64xf32>
      %c0_243 = arith.constant 0 : index
      %c0_244 = arith.constant 0 : index
      %673 = vector.load %arg6[%c0_243, %c0_244] : memref<16x64xf32, #tpu.memory_space<vmem>>, vector<16x64xf32>
      tpu.vector_store %arg6[%c0_243, %c0_244], %672 {strides = array<i32>} : memref<16x64xf32, #tpu.memory_space<vmem>>, vector<16x64xf32>,
    } else {
    }
    %c0 = arith.constant 0 : index
    %c0_1 = arith.constant 0 : index
    %3 = vector.load %arg6[%c0, %c0_1] : memref<16x64xf32, #tpu.memory_space<vmem>>, vector<16x64xf32>
    %4 = arith.truncf %3 : vector<16x64xf32> to vector<16x64xbf16>
    %c0_2 = arith.constant 0 : index
    %c0_3 = arith.constant 0 : index
    %c0_4 = arith.constant 0 : index
    %5 = vector.load %arg2[%c0_2, %c0_3, %c0_4] : memref<1x64x256xbf16, #tpu.memory_space<vmem>>, vector<1x64x256xbf16>
    %6 = vector.shape_cast %5 : vector<1x64x256xbf16> to vector<64x256xbf16>
    %cst = arith.constant dense<0.000000e+00> : vector<16x256xf32>
    %7 = tpu.matmul %4, %6, %cst {dimension_numbers = #tpu.dot_dimension_numbers<[1], [0], [0], [1], [0, 0, 1, 1], [], []>} : vector<16x64xbf16>, vector<64x256xbf16>, vector<16x256xf32> -> vector<16x256xf32>
    %c0_5 = arith.constant 0 : index
    %c0_6 = arith.constant 0 : index
    %c0_7 = arith.constant 0 : index
    %8 = vector.load %arg4[%c0_5, %c0_6, %c0_7] : memref<1x1x256xf32, #tpu.memory_space<vmem>>, vector<1x1x256xf32>
    %9 = vector.shape_cast %8 : vector<1x1x256xf32> to vector<1x256xf32>
    %10 = vector.broadcast %9 : vector<1x256xf32> to vector<16x256xf32>
    %11 = arith.addf %7, %10 : vector<16x256xf32>
    %c0_8 = arith.constant 0 : index
    %c0_9 = arith.constant 0 : index
    %12 = vector.load %arg7[%c0_8, %c0_9] : memref<16x256xf32, #tpu.memory_space<vmem>>, vector<16x256xf32>
    tpu.vector_store %arg7[%c0_8, %c0_9], %11 {strides = array<i32>} : memref<16x256xf32, #tpu.memory_space<vmem>>, vector<16x256xf32>,
    %cst_10 = arith.constant 0.000000e+00 : f32
    %13 = vector.broadcast %cst_10 : f32 to vector<2x64xf32>
    %c0_11 = arith.constant 0 : index
    %c0_12 = arith.constant 0 : index
    %14 = vector.load %arg8[%c0_11, %c0_12] : memref<2x64xf32, #tpu.memory_space<vmem>>, vector<2x64xf32>
    tpu.vector_store %arg8[%c0_11, %c0_12], %13 {strides = array<i32>} : memref<2x64xf32, #tpu.memory_space<vmem>>, vector<2x64xf32>,
    %cst_13 = arith.constant 0.000000e+00 : f32
    %15 = vector.broadcast %cst_13 : f32 to vector<2x64xf32>
    %c0_14 = arith.constant 0 : index
    %c0_15 = arith.constant 0 : index
    %16 = vector.load %arg9[%c0_14, %c0_15] : memref<2x64xf32, #tpu.memory_space<vmem>>, vector<2x64xf32>
    tpu.vector_store %arg9[%c0_14, %c0_15], %15 {strides = array<i32>} : memref<2x64xf32, #tpu.memory_space<vmem>>, vector<2x64xf32>,
    %c0_i32_16 = arith.constant 0 : i32
    %c7_i32 = arith.constant 7 : i32
    %17 = arith.subi %c7_i32, %c0_i32_16 : i32
    %c0_17 = arith.constant 0 : index
    %c0_18 = arith.constant 0 : index
    %18 = vector.load %arg8[%c0_17, %c0_18] : memref<2x64xf32, #tpu.memory_space<vmem>>, vector<2x64xf32>
    %19 = arith.truncf %18 : vector<2x64xf32> to vector<2x64xbf16>
    %c0_19 = arith.constant 0 : index
    %c0_20 = arith.constant 0 : index
    %c0_21 = arith.constant 0 : index
    %20 = vector.load %arg3[%c0_19, %c0_20, %c0_21] : memref<1x64x256xbf16, #tpu.memory_space<vmem>>, vector<1x64x256xbf16>
    %21 = vector.shape_cast %20 : vector<1x64x256xbf16> to vector<64x256xbf16>
    %cst_22 = arith.constant dense<0.000000e+00> : vector<2x256xf32>
    %22 = tpu.matmul %19, %21, %cst_22 {dimension_numbers = #tpu.dot_dimension_numbers<[1], [0], [0], [1], [0, 0, 1, 1], [], []>} : vector<2x64xbf16>, vector<64x256xbf16>, vector<2x256xf32> -> vector<2x256xf32>
    %c2_i32 = arith.constant 2 : i32
    %23 = arith.muli %c0_i32_16, %c2_i32 : i32
    %24 = arith.index_cast %23 : i32 to index
    %c0_23 = arith.constant 0 : index
    %25 = vector.load %arg7[%24, %c0_23] : memref<16x256xf32, #tpu.memory_space<vmem>>, vector<2x256xf32>
    %c2_i32_24 = arith.constant 2 : i32
    %26 = arith.muli %17, %c2_i32_24 : i32
    %27 = arith.index_cast %26 : i32 to index
    %c0_25 = arith.constant 0 : index
    %28 = vector.load %arg7[%27, %c0_25] : memref<16x256xf32, #tpu.memory_space<vmem>>, vector<2x256xf32>
    %c0_26 = arith.constant 0 : index
    %c0_27 = arith.constant 0 : index
    %29 = vector.load %arg9[%c0_26, %c0_27] : memref<2x64xf32, #tpu.memory_space<vmem>>, vector<2x64xf32>
    %30 = vector.extract_strided_slice %25 {offsets = [0, 0], sizes = [2, 128], strides = [1, 1]} : vector<2x256xf32> to vector<2x128xf32>
    %31 = vector.extract_strided_slice %22 {offsets = [0, 0], sizes = [2, 128], strides = [1, 1]} : vector<2x256xf32> to vector<2x128xf32>
    %32 = arith.addf %30, %31 : vector<2x128xf32>
    %33 = vector.extract_strided_slice %29 {offsets = [0, 0], sizes = [2, 32], strides = [1, 1]} : vector<2x64xf32> to vector<2x32xf32>
    %34 = vector.extract_strided_slice %32 {offsets = [0, 0], sizes = [2, 32], strides = [1, 1]} : vector<2x128xf32> to vector<2x32xf32>
    %35 = arith.negf %34 : vector<2x32xf32>
    %36 = math.exp %35 : vector<2x32xf32>
    %cst_28 = arith.constant 1.000000e+00 : f32
    %37 = vector.broadcast %cst_28 : f32 to vector<2x32xf32>
    %38 = arith.addf %37, %36 : vector<2x32xf32>
    %39 = arith.divf %37, %38 : vector<2x32xf32>
    %40 = vector.extract_strided_slice %32 {offsets = [0, 32], sizes = [2, 32], strides = [1, 1]} : vector<2x128xf32> to vector<2x32xf32>
    %41 = arith.negf %40 : vector<2x32xf32>
    %42 = math.exp %41 : vector<2x32xf32>
    %cst_29 = arith.constant 1.000000e+00 : f32
    %43 = vector.broadcast %cst_29 : f32 to vector<2x32xf32>
    %44 = arith.addf %43, %42 : vector<2x32xf32>
    %45 = arith.divf %43, %44 : vector<2x32xf32>
    %46 = vector.extract_strided_slice %32 {offsets = [0, 64], sizes = [2, 32], strides = [1, 1]} : vector<2x128xf32> to vector<2x32xf32>
    %47 = math.tanh %46 : vector<2x32xf32>
    %48 = vector.extract_strided_slice %32 {offsets = [0, 96], sizes = [2, 32], strides = [1, 1]} : vector<2x128xf32> to vector<2x32xf32>
    %49 = arith.negf %48 : vector<2x32xf32>
    %50 = math.exp %49 : vector<2x32xf32>
    %cst_30 = arith.constant 1.000000e+00 : f32
    %51 = vector.broadcast %cst_30 : f32 to vector<2x32xf32>
    %52 = arith.addf %51, %50 : vector<2x32xf32>
    %53 = arith.divf %51, %52 : vector<2x32xf32>
    %54 = arith.mulf %45, %33 : vector<2x32xf32>
    %55 = arith.mulf %39, %47 : vector<2x32xf32>
    %56 = arith.addf %54, %55 : vector<2x32xf32>
    %57 = math.tanh %56 : vector<2x32xf32>
    %58 = arith.mulf %53, %57 : vector<2x32xf32>
    %59 = vector.extract_strided_slice %28 {offsets = [0, 128], sizes = [2, 128], strides = [1, 1]} : vector<2x256xf32> to vector<2x128xf32>
    %60 = vector.extract_strided_slice %22 {offsets = [0, 128], sizes = [2, 128], strides = [1, 1]} : vector<2x256xf32> to vector<2x128xf32>
    %61 = arith.addf %59, %60 : vector<2x128xf32>
    %62 = vector.extract_strided_slice %29 {offsets = [0, 32], sizes = [2, 32], strides = [1, 1]} : vector<2x64xf32> to vector<2x32xf32>
    %63 = vector.extract_strided_slice %61 {offsets = [0, 0], sizes = [2, 32], strides = [1, 1]} : vector<2x128xf32> to vector<2x32xf32>
    %64 = arith.negf %63 : vector<2x32xf32>
    %65 = math.exp %64 : vector<2x32xf32>
    %cst_31 = arith.constant 1.000000e+00 : f32
    %66 = vector.broadcast %cst_31 : f32 to vector<2x32xf32>
    %67 = arith.addf %66, %65 : vector<2x32xf32>
    %68 = arith.divf %66, %67 : vector<2x32xf32>
    %69 = vector.extract_strided_slice %61 {offsets = [0, 32], sizes = [2, 32], strides = [1, 1]} : vector<2x128xf32> to vector<2x32xf32>
    %70 = arith.negf %69 : vector<2x32xf32>
    %71 = math.exp %70 : vector<2x32xf32>
    %cst_32 = arith.constant 1.000000e+00 : f32
    %72 = vector.broadcast %cst_32 : f32 to vector<2x32xf32>
    %73 = arith.addf %72, %71 : vector<2x32xf32>
    %74 = arith.divf %72, %73 : vector<2x32xf32>
    %75 = vector.extract_strided_slice %61 {offsets = [0, 64], sizes = [2, 32], strides = [1, 1]} : vector<2x128xf32> to vector<2x32xf32>
    %76 = math.tanh %75 : vector<2x32xf32>
    %77 = vector.extract_strided_slice %61 {offsets = [0, 96], sizes = [2, 32], strides = [1, 1]} : vector<2x128xf32> to vector<2x32xf32>
    %78 = arith.negf %77 : vector<2x32xf32>
    %79 = math.exp %78 : vector<2x32xf32>
    %cst_33 = arith.constant 1.000000e+00 : f32
    %80 = vector.broadcast %cst_33 : f32 to vector<2x32xf32>
    %81 = arith.addf %80, %79 : vector<2x32xf32>
    %82 = arith.divf %80, %81 : vector<2x32xf32>
    %83 = arith.mulf %74, %62 : vector<2x32xf32>
    %84 = arith.mulf %68, %76 : vector<2x32xf32>
    %85 = arith.addf %83, %84 : vector<2x32xf32>
    %86 = math.tanh %85 : vector<2x32xf32>
    %87 = arith.mulf %82, %86 : vector<2x32xf32>
    %88 = tpu.concatenate %58, %87 in 1 : vector<2x32xf32>, vector<2x32xf32> -> vector<2x64xf32>
    %c0_34 = arith.constant 0 : index
    %c0_35 = arith.constant 0 : index
    %89 = vector.load %arg8[%c0_34, %c0_35] : memref<2x64xf32, #tpu.memory_space<vmem>>, vector<2x64xf32>
    tpu.vector_store %arg8[%c0_34, %c0_35], %88 {strides = array<i32>} : memref<2x64xf32, #tpu.memory_space<vmem>>, vector<2x64xf32>,
    %90 = tpu.concatenate %56, %85 in 1 : vector<2x32xf32>, vector<2x32xf32> -> vector<2x64xf32>
    %c0_36 = arith.constant 0 : index
    %c0_37 = arith.constant 0 : index
    %91 = vector.load %arg9[%c0_36, %c0_37] : memref<2x64xf32, #tpu.memory_space<vmem>>, vector<2x64xf32>
    tpu.vector_store %arg9[%c0_36, %c0_37], %90 {strides = array<i32>} : memref<2x64xf32, #tpu.memory_space<vmem>>, vector<2x64xf32>,
    %c2_i32_38 = arith.constant 2 : i32
    %92 = arith.muli %c0_i32_16, %c2_i32_38 : i32
    %93 = arith.index_cast %92 : i32 to index
    %c0_39 = arith.constant 0 : index
    %94 = vector.load %arg10[%93, %c0_39] : memref<16x32xf32, #tpu.memory_space<vmem>>, vector<2x32xf32>
    tpu.vector_store %arg10[%93, %c0_39], %58 {strides = array<i32>} : memref<16x32xf32, #tpu.memory_space<vmem>>, vector<2x32xf32>,
    %c2_i32_40 = arith.constant 2 : i32
    %95 = arith.muli %17, %c2_i32_40 : i32
    %96 = arith.index_cast %95 : i32 to index
    %c0_41 = arith.constant 0 : index
    %97 = vector.load %arg11[%96, %c0_41] : memref<16x32xf32, #tpu.memory_space<vmem>>, vector<2x32xf32>
    tpu.vector_store %arg11[%96, %c0_41], %87 {strides = array<i32>} : memref<16x32xf32, #tpu.memory_space<vmem>>, vector<2x32xf32>,
    %c1_i32 = arith.constant 1 : i32
    %c7_i32_42 = arith.constant 7 : i32
    %98 = arith.subi %c7_i32_42, %c1_i32 : i32
    %c0_43 = arith.constant 0 : index
    %c0_44 = arith.constant 0 : index
    %99 = vector.load %arg8[%c0_43, %c0_44] : memref<2x64xf32, #tpu.memory_space<vmem>>, vector<2x64xf32>
    %100 = arith.truncf %99 : vector<2x64xf32> to vector<2x64xbf16>
    %c0_45 = arith.constant 0 : index
    %c0_46 = arith.constant 0 : index
    %c0_47 = arith.constant 0 : index
    %101 = vector.load %arg3[%c0_45, %c0_46, %c0_47] : memref<1x64x256xbf16, #tpu.memory_space<vmem>>, vector<1x64x256xbf16>
    %102 = vector.shape_cast %101 : vector<1x64x256xbf16> to vector<64x256xbf16>
    %cst_48 = arith.constant dense<0.000000e+00> : vector<2x256xf32>
    %103 = tpu.matmul %100, %102, %cst_48 {dimension_numbers = #tpu.dot_dimension_numbers<[1], [0], [0], [1], [0, 0, 1, 1], [], []>} : vector<2x64xbf16>, vector<64x256xbf16>, vector<2x256xf32> -> vector<2x256xf32>
    %c2_i32_49 = arith.constant 2 : i32
    %104 = arith.muli %c1_i32, %c2_i32_49 : i32
    %105 = arith.index_cast %104 : i32 to index
    %c0_50 = arith.constant 0 : index
    %106 = vector.load %arg7[%105, %c0_50] : memref<16x256xf32, #tpu.memory_space<vmem>>, vector<2x256xf32>
    %c2_i32_51 = arith.constant 2 : i32
    %107 = arith.muli %98, %c2_i32_51 : i32
    %108 = arith.index_cast %107 : i32 to index
    %c0_52 = arith.constant 0 : index
    %109 = vector.load %arg7[%108, %c0_52] : memref<16x256xf32, #tpu.memory_space<vmem>>, vector<2x256xf32>
    %c0_53 = arith.constant 0 : index
    %c0_54 = arith.constant 0 : index
    %110 = vector.load %arg9[%c0_53, %c0_54] : memref<2x64xf32, #tpu.memory_space<vmem>>, vector<2x64xf32>
    %111 = vector.extract_strided_slice %106 {offsets = [0, 0], sizes = [2, 128], strides = [1, 1]} : vector<2x256xf32> to vector<2x128xf32>
    %112 = vector.extract_strided_slice %103 {offsets = [0, 0], sizes = [2, 128], strides = [1, 1]} : vector<2x256xf32> to vector<2x128xf32>
    %113 = arith.addf %111, %112 : vector<2x128xf32>
    %114 = vector.extract_strided_slice %110 {offsets = [0, 0], sizes = [2, 32], strides = [1, 1]} : vector<2x64xf32> to vector<2x32xf32>
    %115 = vector.extract_strided_slice %113 {offsets = [0, 0], sizes = [2, 32], strides = [1, 1]} : vector<2x128xf32> to vector<2x32xf32>
    %116 = arith.negf %115 : vector<2x32xf32>
    %117 = math.exp %116 : vector<2x32xf32>
    %cst_55 = arith.constant 1.000000e+00 : f32
    %118 = vector.broadcast %cst_55 : f32 to vector<2x32xf32>
    %119 = arith.addf %118, %117 : vector<2x32xf32>
    %120 = arith.divf %118, %119 : vector<2x32xf32>
    %121 = vector.extract_strided_slice %113 {offsets = [0, 32], sizes = [2, 32], strides = [1, 1]} : vector<2x128xf32> to vector<2x32xf32>
    %122 = arith.negf %121 : vector<2x32xf32>
    %123 = math.exp %122 : vector<2x32xf32>
    %cst_56 = arith.constant 1.000000e+00 : f32
    %124 = vector.broadcast %cst_56 : f32 to vector<2x32xf32>
    %125 = arith.addf %124, %123 : vector<2x32xf32>
    %126 = arith.divf %124, %125 : vector<2x32xf32>
    %127 = vector.extract_strided_slice %113 {offsets = [0, 64], sizes = [2, 32], strides = [1, 1]} : vector<2x128xf32> to vector<2x32xf32>
    %128 = math.tanh %127 : vector<2x32xf32>
    %129 = vector.extract_strided_slice %113 {offsets = [0, 96], sizes = [2, 32], strides = [1, 1]} : vector<2x128xf32> to vector<2x32xf32>
    %130 = arith.negf %129 : vector<2x32xf32>
    %131 = math.exp %130 : vector<2x32xf32>
    %cst_57 = arith.constant 1.000000e+00 : f32
    %132 = vector.broadcast %cst_57 : f32 to vector<2x32xf32>
    %133 = arith.addf %132, %131 : vector<2x32xf32>
    %134 = arith.divf %132, %133 : vector<2x32xf32>
    %135 = arith.mulf %126, %114 : vector<2x32xf32>
    %136 = arith.mulf %120, %128 : vector<2x32xf32>
    %137 = arith.addf %135, %136 : vector<2x32xf32>
    %138 = math.tanh %137 : vector<2x32xf32>
    %139 = arith.mulf %134, %138 : vector<2x32xf32>
    %140 = vector.extract_strided_slice %109 {offsets = [0, 128], sizes = [2, 128], strides = [1, 1]} : vector<2x256xf32> to vector<2x128xf32>
    %141 = vector.extract_strided_slice %103 {offsets = [0, 128], sizes = [2, 128], strides = [1, 1]} : vector<2x256xf32> to vector<2x128xf32>
    %142 = arith.addf %140, %141 : vector<2x128xf32>
    %143 = vector.extract_strided_slice %110 {offsets = [0, 32], sizes = [2, 32], strides = [1, 1]} : vector<2x64xf32> to vector<2x32xf32>
    %144 = vector.extract_strided_slice %142 {offsets = [0, 0], sizes = [2, 32], strides = [1, 1]} : vector<2x128xf32> to vector<2x32xf32>
    %145 = arith.negf %144 : vector<2x32xf32>
    %146 = math.exp %145 : vector<2x32xf32>
    %cst_58 = arith.constant 1.000000e+00 : f32
    %147 = vector.broadcast %cst_58 : f32 to vector<2x32xf32>
    %148 = arith.addf %147, %146 : vector<2x32xf32>
    %149 = arith.divf %147, %148 : vector<2x32xf32>
    %150 = vector.extract_strided_slice %142 {offsets = [0, 32], sizes = [2, 32], strides = [1, 1]} : vector<2x128xf32> to vector<2x32xf32>
    %151 = arith.negf %150 : vector<2x32xf32>
    %152 = math.exp %151 : vector<2x32xf32>
    %cst_59 = arith.constant 1.000000e+00 : f32
    %153 = vector.broadcast %cst_59 : f32 to vector<2x32xf32>
    %154 = arith.addf %153, %152 : vector<2x32xf32>
    %155 = arith.divf %153, %154 : vector<2x32xf32>
    %156 = vector.extract_strided_slice %142 {offsets = [0, 64], sizes = [2, 32], strides = [1, 1]} : vector<2x128xf32> to vector<2x32xf32>
    %157 = math.tanh %156 : vector<2x32xf32>
    %158 = vector.extract_strided_slice %142 {offsets = [0, 96], sizes = [2, 32], strides = [1, 1]} : vector<2x128xf32> to vector<2x32xf32>
    %159 = arith.negf %158 : vector<2x32xf32>
    %160 = math.exp %159 : vector<2x32xf32>
    %cst_60 = arith.constant 1.000000e+00 : f32
    %161 = vector.broadcast %cst_60 : f32 to vector<2x32xf32>
    %162 = arith.addf %161, %160 : vector<2x32xf32>
    %163 = arith.divf %161, %162 : vector<2x32xf32>
    %164 = arith.mulf %155, %143 : vector<2x32xf32>
    %165 = arith.mulf %149, %157 : vector<2x32xf32>
    %166 = arith.addf %164, %165 : vector<2x32xf32>
    %167 = math.tanh %166 : vector<2x32xf32>
    %168 = arith.mulf %163, %167 : vector<2x32xf32>
    %169 = tpu.concatenate %139, %168 in 1 : vector<2x32xf32>, vector<2x32xf32> -> vector<2x64xf32>
    %c0_61 = arith.constant 0 : index
    %c0_62 = arith.constant 0 : index
    %170 = vector.load %arg8[%c0_61, %c0_62] : memref<2x64xf32, #tpu.memory_space<vmem>>, vector<2x64xf32>
    tpu.vector_store %arg8[%c0_61, %c0_62], %169 {strides = array<i32>} : memref<2x64xf32, #tpu.memory_space<vmem>>, vector<2x64xf32>,
    %171 = tpu.concatenate %137, %166 in 1 : vector<2x32xf32>, vector<2x32xf32> -> vector<2x64xf32>
    %c0_63 = arith.constant 0 : index
    %c0_64 = arith.constant 0 : index
    %172 = vector.load %arg9[%c0_63, %c0_64] : memref<2x64xf32, #tpu.memory_space<vmem>>, vector<2x64xf32>
    tpu.vector_store %arg9[%c0_63, %c0_64], %171 {strides = array<i32>} : memref<2x64xf32, #tpu.memory_space<vmem>>, vector<2x64xf32>,
    %c2_i32_65 = arith.constant 2 : i32
    %173 = arith.muli %c1_i32, %c2_i32_65 : i32
    %174 = arith.index_cast %173 : i32 to index
    %c0_66 = arith.constant 0 : index
    %175 = vector.load %arg10[%174, %c0_66] : memref<16x32xf32, #tpu.memory_space<vmem>>, vector<2x32xf32>
    tpu.vector_store %arg10[%174, %c0_66], %139 {strides = array<i32>} : memref<16x32xf32, #tpu.memory_space<vmem>>, vector<2x32xf32>,
    %c2_i32_67 = arith.constant 2 : i32
    %176 = arith.muli %98, %c2_i32_67 : i32
    %177 = arith.index_cast %176 : i32 to index
    %c0_68 = arith.constant 0 : index
    %178 = vector.load %arg11[%177, %c0_68] : memref<16x32xf32, #tpu.memory_space<vmem>>, vector<2x32xf32>
    tpu.vector_store %arg11[%177, %c0_68], %168 {strides = array<i32>} : memref<16x32xf32, #tpu.memory_space<vmem>>, vector<2x32xf32>,
    %c2_i32_69 = arith.constant 2 : i32
    %c7_i32_70 = arith.constant 7 : i32
    %179 = arith.subi %c7_i32_70, %c2_i32_69 : i32
    %c0_71 = arith.constant 0 : index
    %c0_72 = arith.constant 0 : index
    %180 = vector.load %arg8[%c0_71, %c0_72] : memref<2x64xf32, #tpu.memory_space<vmem>>, vector<2x64xf32>
    %181 = arith.truncf %180 : vector<2x64xf32> to vector<2x64xbf16>
    %c0_73 = arith.constant 0 : index
    %c0_74 = arith.constant 0 : index
    %c0_75 = arith.constant 0 : index
    %182 = vector.load %arg3[%c0_73, %c0_74, %c0_75] : memref<1x64x256xbf16, #tpu.memory_space<vmem>>, vector<1x64x256xbf16>
    %183 = vector.shape_cast %182 : vector<1x64x256xbf16> to vector<64x256xbf16>
    %cst_76 = arith.constant dense<0.000000e+00> : vector<2x256xf32>
    %184 = tpu.matmul %181, %183, %cst_76 {dimension_numbers = #tpu.dot_dimension_numbers<[1], [0], [0], [1], [0, 0, 1, 1], [], []>} : vector<2x64xbf16>, vector<64x256xbf16>, vector<2x256xf32> -> vector<2x256xf32>
    %c2_i32_77 = arith.constant 2 : i32
    %185 = arith.muli %c2_i32_69, %c2_i32_77 : i32
    %186 = arith.index_cast %185 : i32 to index
    %c0_78 = arith.constant 0 : index
    %187 = vector.load %arg7[%186, %c0_78] : memref<16x256xf32, #tpu.memory_space<vmem>>, vector<2x256xf32>
    %c2_i32_79 = arith.constant 2 : i32
    %188 = arith.muli %179, %c2_i32_79 : i32
    %189 = arith.index_cast %188 : i32 to index
    %c0_80 = arith.constant 0 : index
    %190 = vector.load %arg7[%189, %c0_80] : memref<16x256xf32, #tpu.memory_space<vmem>>, vector<2x256xf32>
    %c0_81 = arith.constant 0 : index
    %c0_82 = arith.constant 0 : index
    %191 = vector.load %arg9[%c0_81, %c0_82] : memref<2x64xf32, #tpu.memory_space<vmem>>, vector<2x64xf32>
    %192 = vector.extract_strided_slice %187 {offsets = [0, 0], sizes = [2, 128], strides = [1, 1]} : vector<2x256xf32> to vector<2x128xf32>
    %193 = vector.extract_strided_slice %184 {offsets = [0, 0], sizes = [2, 128], strides = [1, 1]} : vector<2x256xf32> to vector<2x128xf32>
    %194 = arith.addf %192, %193 : vector<2x128xf32>
    %195 = vector.extract_strided_slice %191 {offsets = [0, 0], sizes = [2, 32], strides = [1, 1]} : vector<2x64xf32> to vector<2x32xf32>
    %196 = vector.extract_strided_slice %194 {offsets = [0, 0], sizes = [2, 32], strides = [1, 1]} : vector<2x128xf32> to vector<2x32xf32>
    %197 = arith.negf %196 : vector<2x32xf32>
    %198 = math.exp %197 : vector<2x32xf32>
    %cst_83 = arith.constant 1.000000e+00 : f32
    %199 = vector.broadcast %cst_83 : f32 to vector<2x32xf32>
    %200 = arith.addf %199, %198 : vector<2x32xf32>
    %201 = arith.divf %199, %200 : vector<2x32xf32>
    %202 = vector.extract_strided_slice %194 {offsets = [0, 32], sizes = [2, 32], strides = [1, 1]} : vector<2x128xf32> to vector<2x32xf32>
    %203 = arith.negf %202 : vector<2x32xf32>
    %204 = math.exp %203 : vector<2x32xf32>
    %cst_84 = arith.constant 1.000000e+00 : f32
    %205 = vector.broadcast %cst_84 : f32 to vector<2x32xf32>
    %206 = arith.addf %205, %204 : vector<2x32xf32>
    %207 = arith.divf %205, %206 : vector<2x32xf32>
    %208 = vector.extract_strided_slice %194 {offsets = [0, 64], sizes = [2, 32], strides = [1, 1]} : vector<2x128xf32> to vector<2x32xf32>
    %209 = math.tanh %208 : vector<2x32xf32>
    %210 = vector.extract_strided_slice %194 {offsets = [0, 96], sizes = [2, 32], strides = [1, 1]} : vector<2x128xf32> to vector<2x32xf32>
    %211 = arith.negf %210 : vector<2x32xf32>
    %212 = math.exp %211 : vector<2x32xf32>
    %cst_85 = arith.constant 1.000000e+00 : f32
    %213 = vector.broadcast %cst_85 : f32 to vector<2x32xf32>
    %214 = arith.addf %213, %212 : vector<2x32xf32>
    %215 = arith.divf %213, %214 : vector<2x32xf32>
    %216 = arith.mulf %207, %195 : vector<2x32xf32>
    %217 = arith.mulf %201, %209 : vector<2x32xf32>
    %218 = arith.addf %216, %217 : vector<2x32xf32>
    %219 = math.tanh %218 : vector<2x32xf32>
    %220 = arith.mulf %215, %219 : vector<2x32xf32>
    %221 = vector.extract_strided_slice %190 {offsets = [0, 128], sizes = [2, 128], strides = [1, 1]} : vector<2x256xf32> to vector<2x128xf32>
    %222 = vector.extract_strided_slice %184 {offsets = [0, 128], sizes = [2, 128], strides = [1, 1]} : vector<2x256xf32> to vector<2x128xf32>
    %223 = arith.addf %221, %222 : vector<2x128xf32>
    %224 = vector.extract_strided_slice %191 {offsets = [0, 32], sizes = [2, 32], strides = [1, 1]} : vector<2x64xf32> to vector<2x32xf32>
    %225 = vector.extract_strided_slice %223 {offsets = [0, 0], sizes = [2, 32], strides = [1, 1]} : vector<2x128xf32> to vector<2x32xf32>
    %226 = arith.negf %225 : vector<2x32xf32>
    %227 = math.exp %226 : vector<2x32xf32>
    %cst_86 = arith.constant 1.000000e+00 : f32
    %228 = vector.broadcast %cst_86 : f32 to vector<2x32xf32>
    %229 = arith.addf %228, %227 : vector<2x32xf32>
    %230 = arith.divf %228, %229 : vector<2x32xf32>
    %231 = vector.extract_strided_slice %223 {offsets = [0, 32], sizes = [2, 32], strides = [1, 1]} : vector<2x128xf32> to vector<2x32xf32>
    %232 = arith.negf %231 : vector<2x32xf32>
    %233 = math.exp %232 : vector<2x32xf32>
    %cst_87 = arith.constant 1.000000e+00 : f32
    %234 = vector.broadcast %cst_87 : f32 to vector<2x32xf32>
    %235 = arith.addf %234, %233 : vector<2x32xf32>
    %236 = arith.divf %234, %235 : vector<2x32xf32>
    %237 = vector.extract_strided_slice %223 {offsets = [0, 64], sizes = [2, 32], strides = [1, 1]} : vector<2x128xf32> to vector<2x32xf32>
    %238 = math.tanh %237 : vector<2x32xf32>
    %239 = vector.extract_strided_slice %223 {offsets = [0, 96], sizes = [2, 32], strides = [1, 1]} : vector<2x128xf32> to vector<2x32xf32>
    %240 = arith.negf %239 : vector<2x32xf32>
    %241 = math.exp %240 : vector<2x32xf32>
    %cst_88 = arith.constant 1.000000e+00 : f32
    %242 = vector.broadcast %cst_88 : f32 to vector<2x32xf32>
    %243 = arith.addf %242, %241 : vector<2x32xf32>
    %244 = arith.divf %242, %243 : vector<2x32xf32>
    %245 = arith.mulf %236, %224 : vector<2x32xf32>
    %246 = arith.mulf %230, %238 : vector<2x32xf32>
    %247 = arith.addf %245, %246 : vector<2x32xf32>
    %248 = math.tanh %247 : vector<2x32xf32>
    %249 = arith.mulf %244, %248 : vector<2x32xf32>
    %250 = tpu.concatenate %220, %249 in 1 : vector<2x32xf32>, vector<2x32xf32> -> vector<2x64xf32>
    %c0_89 = arith.constant 0 : index
    %c0_90 = arith.constant 0 : index
    %251 = vector.load %arg8[%c0_89, %c0_90] : memref<2x64xf32, #tpu.memory_space<vmem>>, vector<2x64xf32>
    tpu.vector_store %arg8[%c0_89, %c0_90], %250 {strides = array<i32>} : memref<2x64xf32, #tpu.memory_space<vmem>>, vector<2x64xf32>,
    %252 = tpu.concatenate %218, %247 in 1 : vector<2x32xf32>, vector<2x32xf32> -> vector<2x64xf32>
    %c0_91 = arith.constant 0 : index
    %c0_92 = arith.constant 0 : index
    %253 = vector.load %arg9[%c0_91, %c0_92] : memref<2x64xf32, #tpu.memory_space<vmem>>, vector<2x64xf32>
    tpu.vector_store %arg9[%c0_91, %c0_92], %252 {strides = array<i32>} : memref<2x64xf32, #tpu.memory_space<vmem>>, vector<2x64xf32>,
    %c2_i32_93 = arith.constant 2 : i32
    %254 = arith.muli %c2_i32_69, %c2_i32_93 : i32
    %255 = arith.index_cast %254 : i32 to index
    %c0_94 = arith.constant 0 : index
    %256 = vector.load %arg10[%255, %c0_94] : memref<16x32xf32, #tpu.memory_space<vmem>>, vector<2x32xf32>
    tpu.vector_store %arg10[%255, %c0_94], %220 {strides = array<i32>} : memref<16x32xf32, #tpu.memory_space<vmem>>, vector<2x32xf32>,
    %c2_i32_95 = arith.constant 2 : i32
    %257 = arith.muli %179, %c2_i32_95 : i32
    %258 = arith.index_cast %257 : i32 to index
    %c0_96 = arith.constant 0 : index
    %259 = vector.load %arg11[%258, %c0_96] : memref<16x32xf32, #tpu.memory_space<vmem>>, vector<2x32xf32>
    tpu.vector_store %arg11[%258, %c0_96], %249 {strides = array<i32>} : memref<16x32xf32, #tpu.memory_space<vmem>>, vector<2x32xf32>,
    %c3_i32 = arith.constant 3 : i32
    %c7_i32_97 = arith.constant 7 : i32
    %260 = arith.subi %c7_i32_97, %c3_i32 : i32
    %c0_98 = arith.constant 0 : index
    %c0_99 = arith.constant 0 : index
    %261 = vector.load %arg8[%c0_98, %c0_99] : memref<2x64xf32, #tpu.memory_space<vmem>>, vector<2x64xf32>
    %262 = arith.truncf %261 : vector<2x64xf32> to vector<2x64xbf16>
    %c0_100 = arith.constant 0 : index
    %c0_101 = arith.constant 0 : index
    %c0_102 = arith.constant 0 : index
    %263 = vector.load %arg3[%c0_100, %c0_101, %c0_102] : memref<1x64x256xbf16, #tpu.memory_space<vmem>>, vector<1x64x256xbf16>
    %264 = vector.shape_cast %263 : vector<1x64x256xbf16> to vector<64x256xbf16>
    %cst_103 = arith.constant dense<0.000000e+00> : vector<2x256xf32>
    %265 = tpu.matmul %262, %264, %cst_103 {dimension_numbers = #tpu.dot_dimension_numbers<[1], [0], [0], [1], [0, 0, 1, 1], [], []>} : vector<2x64xbf16>, vector<64x256xbf16>, vector<2x256xf32> -> vector<2x256xf32>
    %c2_i32_104 = arith.constant 2 : i32
    %266 = arith.muli %c3_i32, %c2_i32_104 : i32
    %267 = arith.index_cast %266 : i32 to index
    %c0_105 = arith.constant 0 : index
    %268 = vector.load %arg7[%267, %c0_105] : memref<16x256xf32, #tpu.memory_space<vmem>>, vector<2x256xf32>
    %c2_i32_106 = arith.constant 2 : i32
    %269 = arith.muli %260, %c2_i32_106 : i32
    %270 = arith.index_cast %269 : i32 to index
    %c0_107 = arith.constant 0 : index
    %271 = vector.load %arg7[%270, %c0_107] : memref<16x256xf32, #tpu.memory_space<vmem>>, vector<2x256xf32>
    %c0_108 = arith.constant 0 : index
    %c0_109 = arith.constant 0 : index
    %272 = vector.load %arg9[%c0_108, %c0_109] : memref<2x64xf32, #tpu.memory_space<vmem>>, vector<2x64xf32>
    %273 = vector.extract_strided_slice %268 {offsets = [0, 0], sizes = [2, 128], strides = [1, 1]} : vector<2x256xf32> to vector<2x128xf32>
    %274 = vector.extract_strided_slice %265 {offsets = [0, 0], sizes = [2, 128], strides = [1, 1]} : vector<2x256xf32> to vector<2x128xf32>
    %275 = arith.addf %273, %274 : vector<2x128xf32>
    %276 = vector.extract_strided_slice %272 {offsets = [0, 0], sizes = [2, 32], strides = [1, 1]} : vector<2x64xf32> to vector<2x32xf32>
    %277 = vector.extract_strided_slice %275 {offsets = [0, 0], sizes = [2, 32], strides = [1, 1]} : vector<2x128xf32> to vector<2x32xf32>
    %278 = arith.negf %277 : vector<2x32xf32>
    %279 = math.exp %278 : vector<2x32xf32>
    %cst_110 = arith.constant 1.000000e+00 : f32
    %280 = vector.broadcast %cst_110 : f32 to vector<2x32xf32>
    %281 = arith.addf %280, %279 : vector<2x32xf32>
    %282 = arith.divf %280, %281 : vector<2x32xf32>
    %283 = vector.extract_strided_slice %275 {offsets = [0, 32], sizes = [2, 32], strides = [1, 1]} : vector<2x128xf32> to vector<2x32xf32>
    %284 = arith.negf %283 : vector<2x32xf32>
    %285 = math.exp %284 : vector<2x32xf32>
    %cst_111 = arith.constant 1.000000e+00 : f32
    %286 = vector.broadcast %cst_111 : f32 to vector<2x32xf32>
    %287 = arith.addf %286, %285 : vector<2x32xf32>
    %288 = arith.divf %286, %287 : vector<2x32xf32>
    %289 = vector.extract_strided_slice %275 {offsets = [0, 64], sizes = [2, 32], strides = [1, 1]} : vector<2x128xf32> to vector<2x32xf32>
    %290 = math.tanh %289 : vector<2x32xf32>
    %291 = vector.extract_strided_slice %275 {offsets = [0, 96], sizes = [2, 32], strides = [1, 1]} : vector<2x128xf32> to vector<2x32xf32>
    %292 = arith.negf %291 : vector<2x32xf32>
    %293 = math.exp %292 : vector<2x32xf32>
    %cst_112 = arith.constant 1.000000e+00 : f32
    %294 = vector.broadcast %cst_112 : f32 to vector<2x32xf32>
    %295 = arith.addf %294, %293 : vector<2x32xf32>
    %296 = arith.divf %294, %295 : vector<2x32xf32>
    %297 = arith.mulf %288, %276 : vector<2x32xf32>
    %298 = arith.mulf %282, %290 : vector<2x32xf32>
    %299 = arith.addf %297, %298 : vector<2x32xf32>
    %300 = math.tanh %299 : vector<2x32xf32>
    %301 = arith.mulf %296, %300 : vector<2x32xf32>
    %302 = vector.extract_strided_slice %271 {offsets = [0, 128], sizes = [2, 128], strides = [1, 1]} : vector<2x256xf32> to vector<2x128xf32>
    %303 = vector.extract_strided_slice %265 {offsets = [0, 128], sizes = [2, 128], strides = [1, 1]} : vector<2x256xf32> to vector<2x128xf32>
    %304 = arith.addf %302, %303 : vector<2x128xf32>
    %305 = vector.extract_strided_slice %272 {offsets = [0, 32], sizes = [2, 32], strides = [1, 1]} : vector<2x64xf32> to vector<2x32xf32>
    %306 = vector.extract_strided_slice %304 {offsets = [0, 0], sizes = [2, 32], strides = [1, 1]} : vector<2x128xf32> to vector<2x32xf32>
    %307 = arith.negf %306 : vector<2x32xf32>
    %308 = math.exp %307 : vector<2x32xf32>
    %cst_113 = arith.constant 1.000000e+00 : f32
    %309 = vector.broadcast %cst_113 : f32 to vector<2x32xf32>
    %310 = arith.addf %309, %308 : vector<2x32xf32>
    %311 = arith.divf %309, %310 : vector<2x32xf32>
    %312 = vector.extract_strided_slice %304 {offsets = [0, 32], sizes = [2, 32], strides = [1, 1]} : vector<2x128xf32> to vector<2x32xf32>
    %313 = arith.negf %312 : vector<2x32xf32>
    %314 = math.exp %313 : vector<2x32xf32>
    %cst_114 = arith.constant 1.000000e+00 : f32
    %315 = vector.broadcast %cst_114 : f32 to vector<2x32xf32>
    %316 = arith.addf %315, %314 : vector<2x32xf32>
    %317 = arith.divf %315, %316 : vector<2x32xf32>
    %318 = vector.extract_strided_slice %304 {offsets = [0, 64], sizes = [2, 32], strides = [1, 1]} : vector<2x128xf32> to vector<2x32xf32>
    %319 = math.tanh %318 : vector<2x32xf32>
    %320 = vector.extract_strided_slice %304 {offsets = [0, 96], sizes = [2, 32], strides = [1, 1]} : vector<2x128xf32> to vector<2x32xf32>
    %321 = arith.negf %320 : vector<2x32xf32>
    %322 = math.exp %321 : vector<2x32xf32>
    %cst_115 = arith.constant 1.000000e+00 : f32
    %323 = vector.broadcast %cst_115 : f32 to vector<2x32xf32>
    %324 = arith.addf %323, %322 : vector<2x32xf32>
    %325 = arith.divf %323, %324 : vector<2x32xf32>
    %326 = arith.mulf %317, %305 : vector<2x32xf32>
    %327 = arith.mulf %311, %319 : vector<2x32xf32>
    %328 = arith.addf %326, %327 : vector<2x32xf32>
    %329 = math.tanh %328 : vector<2x32xf32>
    %330 = arith.mulf %325, %329 : vector<2x32xf32>
    %331 = tpu.concatenate %301, %330 in 1 : vector<2x32xf32>, vector<2x32xf32> -> vector<2x64xf32>
    %c0_116 = arith.constant 0 : index
    %c0_117 = arith.constant 0 : index
    %332 = vector.load %arg8[%c0_116, %c0_117] : memref<2x64xf32, #tpu.memory_space<vmem>>, vector<2x64xf32>
    tpu.vector_store %arg8[%c0_116, %c0_117], %331 {strides = array<i32>} : memref<2x64xf32, #tpu.memory_space<vmem>>, vector<2x64xf32>,
    %333 = tpu.concatenate %299, %328 in 1 : vector<2x32xf32>, vector<2x32xf32> -> vector<2x64xf32>
    %c0_118 = arith.constant 0 : index
    %c0_119 = arith.constant 0 : index
    %334 = vector.load %arg9[%c0_118, %c0_119] : memref<2x64xf32, #tpu.memory_space<vmem>>, vector<2x64xf32>
    tpu.vector_store %arg9[%c0_118, %c0_119], %333 {strides = array<i32>} : memref<2x64xf32, #tpu.memory_space<vmem>>, vector<2x64xf32>,
    %c2_i32_120 = arith.constant 2 : i32
    %335 = arith.muli %c3_i32, %c2_i32_120 : i32
    %336 = arith.index_cast %335 : i32 to index
    %c0_121 = arith.constant 0 : index
    %337 = vector.load %arg10[%336, %c0_121] : memref<16x32xf32, #tpu.memory_space<vmem>>, vector<2x32xf32>
    tpu.vector_store %arg10[%336, %c0_121], %301 {strides = array<i32>} : memref<16x32xf32, #tpu.memory_space<vmem>>, vector<2x32xf32>,
    %c2_i32_122 = arith.constant 2 : i32
    %338 = arith.muli %260, %c2_i32_122 : i32
    %339 = arith.index_cast %338 : i32 to index
    %c0_123 = arith.constant 0 : index
    %340 = vector.load %arg11[%339, %c0_123] : memref<16x32xf32, #tpu.memory_space<vmem>>, vector<2x32xf32>
    tpu.vector_store %arg11[%339, %c0_123], %330 {strides = array<i32>} : memref<16x32xf32, #tpu.memory_space<vmem>>, vector<2x32xf32>,
    %c4_i32 = arith.constant 4 : i32
    %c7_i32_124 = arith.constant 7 : i32
    %341 = arith.subi %c7_i32_124, %c4_i32 : i32
    %c0_125 = arith.constant 0 : index
    %c0_126 = arith.constant 0 : index
    %342 = vector.load %arg8[%c0_125, %c0_126] : memref<2x64xf32, #tpu.memory_space<vmem>>, vector<2x64xf32>
    %343 = arith.truncf %342 : vector<2x64xf32> to vector<2x64xbf16>
    %c0_127 = arith.constant 0 : index
    %c0_128 = arith.constant 0 : index
    %c0_129 = arith.constant 0 : index
    %344 = vector.load %arg3[%c0_127, %c0_128, %c0_129] : memref<1x64x256xbf16, #tpu.memory_space<vmem>>, vector<1x64x256xbf16>
    %345 = vector.shape_cast %344 : vector<1x64x256xbf16> to vector<64x256xbf16>
    %cst_130 = arith.constant dense<0.000000e+00> : vector<2x256xf32>
    %346 = tpu.matmul %343, %345, %cst_130 {dimension_numbers = #tpu.dot_dimension_numbers<[1], [0], [0], [1], [0, 0, 1, 1], [], []>} : vector<2x64xbf16>, vector<64x256xbf16>, vector<2x256xf32> -> vector<2x256xf32>
    %c2_i32_131 = arith.constant 2 : i32
    %347 = arith.muli %c4_i32, %c2_i32_131 : i32
    %348 = arith.index_cast %347 : i32 to index
    %c0_132 = arith.constant 0 : index
    %349 = vector.load %arg7[%348, %c0_132] : memref<16x256xf32, #tpu.memory_space<vmem>>, vector<2x256xf32>
    %c2_i32_133 = arith.constant 2 : i32
    %350 = arith.muli %341, %c2_i32_133 : i32
    %351 = arith.index_cast %350 : i32 to index
    %c0_134 = arith.constant 0 : index
    %352 = vector.load %arg7[%351, %c0_134] : memref<16x256xf32, #tpu.memory_space<vmem>>, vector<2x256xf32>
    %c0_135 = arith.constant 0 : index
    %c0_136 = arith.constant 0 : index
    %353 = vector.load %arg9[%c0_135, %c0_136] : memref<2x64xf32, #tpu.memory_space<vmem>>, vector<2x64xf32>
    %354 = vector.extract_strided_slice %349 {offsets = [0, 0], sizes = [2, 128], strides = [1, 1]} : vector<2x256xf32> to vector<2x128xf32>
    %355 = vector.extract_strided_slice %346 {offsets = [0, 0], sizes = [2, 128], strides = [1, 1]} : vector<2x256xf32> to vector<2x128xf32>
    %356 = arith.addf %354, %355 : vector<2x128xf32>
    %357 = vector.extract_strided_slice %353 {offsets = [0, 0], sizes = [2, 32], strides = [1, 1]} : vector<2x64xf32> to vector<2x32xf32>
    %358 = vector.extract_strided_slice %356 {offsets = [0, 0], sizes = [2, 32], strides = [1, 1]} : vector<2x128xf32> to vector<2x32xf32>
    %359 = arith.negf %358 : vector<2x32xf32>
    %360 = math.exp %359 : vector<2x32xf32>
    %cst_137 = arith.constant 1.000000e+00 : f32
    %361 = vector.broadcast %cst_137 : f32 to vector<2x32xf32>
    %362 = arith.addf %361, %360 : vector<2x32xf32>
    %363 = arith.divf %361, %362 : vector<2x32xf32>
    %364 = vector.extract_strided_slice %356 {offsets = [0, 32], sizes = [2, 32], strides = [1, 1]} : vector<2x128xf32> to vector<2x32xf32>
    %365 = arith.negf %364 : vector<2x32xf32>
    %366 = math.exp %365 : vector<2x32xf32>
    %cst_138 = arith.constant 1.000000e+00 : f32
    %367 = vector.broadcast %cst_138 : f32 to vector<2x32xf32>
    %368 = arith.addf %367, %366 : vector<2x32xf32>
    %369 = arith.divf %367, %368 : vector<2x32xf32>
    %370 = vector.extract_strided_slice %356 {offsets = [0, 64], sizes = [2, 32], strides = [1, 1]} : vector<2x128xf32> to vector<2x32xf32>
    %371 = math.tanh %370 : vector<2x32xf32>
    %372 = vector.extract_strided_slice %356 {offsets = [0, 96], sizes = [2, 32], strides = [1, 1]} : vector<2x128xf32> to vector<2x32xf32>
    %373 = arith.negf %372 : vector<2x32xf32>
    %374 = math.exp %373 : vector<2x32xf32>
    %cst_139 = arith.constant 1.000000e+00 : f32
    %375 = vector.broadcast %cst_139 : f32 to vector<2x32xf32>
    %376 = arith.addf %375, %374 : vector<2x32xf32>
    %377 = arith.divf %375, %376 : vector<2x32xf32>
    %378 = arith.mulf %369, %357 : vector<2x32xf32>
    %379 = arith.mulf %363, %371 : vector<2x32xf32>
    %380 = arith.addf %378, %379 : vector<2x32xf32>
    %381 = math.tanh %380 : vector<2x32xf32>
    %382 = arith.mulf %377, %381 : vector<2x32xf32>
    %383 = vector.extract_strided_slice %352 {offsets = [0, 128], sizes = [2, 128], strides = [1, 1]} : vector<2x256xf32> to vector<2x128xf32>
    %384 = vector.extract_strided_slice %346 {offsets = [0, 128], sizes = [2, 128], strides = [1, 1]} : vector<2x256xf32> to vector<2x128xf32>
    %385 = arith.addf %383, %384 : vector<2x128xf32>
    %386 = vector.extract_strided_slice %353 {offsets = [0, 32], sizes = [2, 32], strides = [1, 1]} : vector<2x64xf32> to vector<2x32xf32>
    %387 = vector.extract_strided_slice %385 {offsets = [0, 0], sizes = [2, 32], strides = [1, 1]} : vector<2x128xf32> to vector<2x32xf32>
    %388 = arith.negf %387 : vector<2x32xf32>
    %389 = math.exp %388 : vector<2x32xf32>
    %cst_140 = arith.constant 1.000000e+00 : f32
    %390 = vector.broadcast %cst_140 : f32 to vector<2x32xf32>
    %391 = arith.addf %390, %389 : vector<2x32xf32>
    %392 = arith.divf %390, %391 : vector<2x32xf32>
    %393 = vector.extract_strided_slice %385 {offsets = [0, 32], sizes = [2, 32], strides = [1, 1]} : vector<2x128xf32> to vector<2x32xf32>
    %394 = arith.negf %393 : vector<2x32xf32>
    %395 = math.exp %394 : vector<2x32xf32>
    %cst_141 = arith.constant 1.000000e+00 : f32
    %396 = vector.broadcast %cst_141 : f32 to vector<2x32xf32>
    %397 = arith.addf %396, %395 : vector<2x32xf32>
    %398 = arith.divf %396, %397 : vector<2x32xf32>
    %399 = vector.extract_strided_slice %385 {offsets = [0, 64], sizes = [2, 32], strides = [1, 1]} : vector<2x128xf32> to vector<2x32xf32>
    %400 = math.tanh %399 : vector<2x32xf32>
    %401 = vector.extract_strided_slice %385 {offsets = [0, 96], sizes = [2, 32], strides = [1, 1]} : vector<2x128xf32> to vector<2x32xf32>
    %402 = arith.negf %401 : vector<2x32xf32>
    %403 = math.exp %402 : vector<2x32xf32>
    %cst_142 = arith.constant 1.000000e+00 : f32
    %404 = vector.broadcast %cst_142 : f32 to vector<2x32xf32>
    %405 = arith.addf %404, %403 : vector<2x32xf32>
    %406 = arith.divf %404, %405 : vector<2x32xf32>
    %407 = arith.mulf %398, %386 : vector<2x32xf32>
    %408 = arith.mulf %392, %400 : vector<2x32xf32>
    %409 = arith.addf %407, %408 : vector<2x32xf32>
    %410 = math.tanh %409 : vector<2x32xf32>
    %411 = arith.mulf %406, %410 : vector<2x32xf32>
    %412 = tpu.concatenate %382, %411 in 1 : vector<2x32xf32>, vector<2x32xf32> -> vector<2x64xf32>
    %c0_143 = arith.constant 0 : index
    %c0_144 = arith.constant 0 : index
    %413 = vector.load %arg8[%c0_143, %c0_144] : memref<2x64xf32, #tpu.memory_space<vmem>>, vector<2x64xf32>
    tpu.vector_store %arg8[%c0_143, %c0_144], %412 {strides = array<i32>} : memref<2x64xf32, #tpu.memory_space<vmem>>, vector<2x64xf32>,
    %414 = tpu.concatenate %380, %409 in 1 : vector<2x32xf32>, vector<2x32xf32> -> vector<2x64xf32>
    %c0_145 = arith.constant 0 : index
    %c0_146 = arith.constant 0 : index
    %415 = vector.load %arg9[%c0_145, %c0_146] : memref<2x64xf32, #tpu.memory_space<vmem>>, vector<2x64xf32>
    tpu.vector_store %arg9[%c0_145, %c0_146], %414 {strides = array<i32>} : memref<2x64xf32, #tpu.memory_space<vmem>>, vector<2x64xf32>,
    %c2_i32_147 = arith.constant 2 : i32
    %416 = arith.muli %c4_i32, %c2_i32_147 : i32
    %417 = arith.index_cast %416 : i32 to index
    %c0_148 = arith.constant 0 : index
    %418 = vector.load %arg10[%417, %c0_148] : memref<16x32xf32, #tpu.memory_space<vmem>>, vector<2x32xf32>
    tpu.vector_store %arg10[%417, %c0_148], %382 {strides = array<i32>} : memref<16x32xf32, #tpu.memory_space<vmem>>, vector<2x32xf32>,
    %c2_i32_149 = arith.constant 2 : i32
    %419 = arith.muli %341, %c2_i32_149 : i32
    %420 = arith.index_cast %419 : i32 to index
    %c0_150 = arith.constant 0 : index
    %421 = vector.load %arg11[%420, %c0_150] : memref<16x32xf32, #tpu.memory_space<vmem>>, vector<2x32xf32>
    tpu.vector_store %arg11[%420, %c0_150], %411 {strides = array<i32>} : memref<16x32xf32, #tpu.memory_space<vmem>>, vector<2x32xf32>,
    %c5_i32 = arith.constant 5 : i32
    %c7_i32_151 = arith.constant 7 : i32
    %422 = arith.subi %c7_i32_151, %c5_i32 : i32
    %c0_152 = arith.constant 0 : index
    %c0_153 = arith.constant 0 : index
    %423 = vector.load %arg8[%c0_152, %c0_153] : memref<2x64xf32, #tpu.memory_space<vmem>>, vector<2x64xf32>
    %424 = arith.truncf %423 : vector<2x64xf32> to vector<2x64xbf16>
    %c0_154 = arith.constant 0 : index
    %c0_155 = arith.constant 0 : index
    %c0_156 = arith.constant 0 : index
    %425 = vector.load %arg3[%c0_154, %c0_155, %c0_156] : memref<1x64x256xbf16, #tpu.memory_space<vmem>>, vector<1x64x256xbf16>
    %426 = vector.shape_cast %425 : vector<1x64x256xbf16> to vector<64x256xbf16>
    %cst_157 = arith.constant dense<0.000000e+00> : vector<2x256xf32>
    %427 = tpu.matmul %424, %426, %cst_157 {dimension_numbers = #tpu.dot_dimension_numbers<[1], [0], [0], [1], [0, 0, 1, 1], [], []>} : vector<2x64xbf16>, vector<64x256xbf16>, vector<2x256xf32> -> vector<2x256xf32>
    %c2_i32_158 = arith.constant 2 : i32
    %428 = arith.muli %c5_i32, %c2_i32_158 : i32
    %429 = arith.index_cast %428 : i32 to index
    %c0_159 = arith.constant 0 : index
    %430 = vector.load %arg7[%429, %c0_159] : memref<16x256xf32, #tpu.memory_space<vmem>>, vector<2x256xf32>
    %c2_i32_160 = arith.constant 2 : i32
    %431 = arith.muli %422, %c2_i32_160 : i32
    %432 = arith.index_cast %431 : i32 to index
    %c0_161 = arith.constant 0 : index
    %433 = vector.load %arg7[%432, %c0_161] : memref<16x256xf32, #tpu.memory_space<vmem>>, vector<2x256xf32>
    %c0_162 = arith.constant 0 : index
    %c0_163 = arith.constant 0 : index
    %434 = vector.load %arg9[%c0_162, %c0_163] : memref<2x64xf32, #tpu.memory_space<vmem>>, vector<2x64xf32>
    %435 = vector.extract_strided_slice %430 {offsets = [0, 0], sizes = [2, 128], strides = [1, 1]} : vector<2x256xf32> to vector<2x128xf32>
    %436 = vector.extract_strided_slice %427 {offsets = [0, 0], sizes = [2, 128], strides = [1, 1]} : vector<2x256xf32> to vector<2x128xf32>
    %437 = arith.addf %435, %436 : vector<2x128xf32>
    %438 = vector.extract_strided_slice %434 {offsets = [0, 0], sizes = [2, 32], strides = [1, 1]} : vector<2x64xf32> to vector<2x32xf32>
    %439 = vector.extract_strided_slice %437 {offsets = [0, 0], sizes = [2, 32], strides = [1, 1]} : vector<2x128xf32> to vector<2x32xf32>
    %440 = arith.negf %439 : vector<2x32xf32>
    %441 = math.exp %440 : vector<2x32xf32>
    %cst_164 = arith.constant 1.000000e+00 : f32
    %442 = vector.broadcast %cst_164 : f32 to vector<2x32xf32>
    %443 = arith.addf %442, %441 : vector<2x32xf32>
    %444 = arith.divf %442, %443 : vector<2x32xf32>
    %445 = vector.extract_strided_slice %437 {offsets = [0, 32], sizes = [2, 32], strides = [1, 1]} : vector<2x128xf32> to vector<2x32xf32>
    %446 = arith.negf %445 : vector<2x32xf32>
    %447 = math.exp %446 : vector<2x32xf32>
    %cst_165 = arith.constant 1.000000e+00 : f32
    %448 = vector.broadcast %cst_165 : f32 to vector<2x32xf32>
    %449 = arith.addf %448, %447 : vector<2x32xf32>
    %450 = arith.divf %448, %449 : vector<2x32xf32>
    %451 = vector.extract_strided_slice %437 {offsets = [0, 64], sizes = [2, 32], strides = [1, 1]} : vector<2x128xf32> to vector<2x32xf32>
    %452 = math.tanh %451 : vector<2x32xf32>
    %453 = vector.extract_strided_slice %437 {offsets = [0, 96], sizes = [2, 32], strides = [1, 1]} : vector<2x128xf32> to vector<2x32xf32>
    %454 = arith.negf %453 : vector<2x32xf32>
    %455 = math.exp %454 : vector<2x32xf32>
    %cst_166 = arith.constant 1.000000e+00 : f32
    %456 = vector.broadcast %cst_166 : f32 to vector<2x32xf32>
    %457 = arith.addf %456, %455 : vector<2x32xf32>
    %458 = arith.divf %456, %457 : vector<2x32xf32>
    %459 = arith.mulf %450, %438 : vector<2x32xf32>
    %460 = arith.mulf %444, %452 : vector<2x32xf32>
    %461 = arith.addf %459, %460 : vector<2x32xf32>
    %462 = math.tanh %461 : vector<2x32xf32>
    %463 = arith.mulf %458, %462 : vector<2x32xf32>
    %464 = vector.extract_strided_slice %433 {offsets = [0, 128], sizes = [2, 128], strides = [1, 1]} : vector<2x256xf32> to vector<2x128xf32>
    %465 = vector.extract_strided_slice %427 {offsets = [0, 128], sizes = [2, 128], strides = [1, 1]} : vector<2x256xf32> to vector<2x128xf32>
    %466 = arith.addf %464, %465 : vector<2x128xf32>
    %467 = vector.extract_strided_slice %434 {offsets = [0, 32], sizes = [2, 32], strides = [1, 1]} : vector<2x64xf32> to vector<2x32xf32>
    %468 = vector.extract_strided_slice %466 {offsets = [0, 0], sizes = [2, 32], strides = [1, 1]} : vector<2x128xf32> to vector<2x32xf32>
    %469 = arith.negf %468 : vector<2x32xf32>
    %470 = math.exp %469 : vector<2x32xf32>
    %cst_167 = arith.constant 1.000000e+00 : f32
    %471 = vector.broadcast %cst_167 : f32 to vector<2x32xf32>
    %472 = arith.addf %471, %470 : vector<2x32xf32>
    %473 = arith.divf %471, %472 : vector<2x32xf32>
    %474 = vector.extract_strided_slice %466 {offsets = [0, 32], sizes = [2, 32], strides = [1, 1]} : vector<2x128xf32> to vector<2x32xf32>
    %475 = arith.negf %474 : vector<2x32xf32>
    %476 = math.exp %475 : vector<2x32xf32>
    %cst_168 = arith.constant 1.000000e+00 : f32
    %477 = vector.broadcast %cst_168 : f32 to vector<2x32xf32>
    %478 = arith.addf %477, %476 : vector<2x32xf32>
    %479 = arith.divf %477, %478 : vector<2x32xf32>
    %480 = vector.extract_strided_slice %466 {offsets = [0, 64], sizes = [2, 32], strides = [1, 1]} : vector<2x128xf32> to vector<2x32xf32>
    %481 = math.tanh %480 : vector<2x32xf32>
    %482 = vector.extract_strided_slice %466 {offsets = [0, 96], sizes = [2, 32], strides = [1, 1]} : vector<2x128xf32> to vector<2x32xf32>
    %483 = arith.negf %482 : vector<2x32xf32>
    %484 = math.exp %483 : vector<2x32xf32>
    %cst_169 = arith.constant 1.000000e+00 : f32
    %485 = vector.broadcast %cst_169 : f32 to vector<2x32xf32>
    %486 = arith.addf %485, %484 : vector<2x32xf32>
    %487 = arith.divf %485, %486 : vector<2x32xf32>
    %488 = arith.mulf %479, %467 : vector<2x32xf32>
    %489 = arith.mulf %473, %481 : vector<2x32xf32>
    %490 = arith.addf %488, %489 : vector<2x32xf32>
    %491 = math.tanh %490 : vector<2x32xf32>
    %492 = arith.mulf %487, %491 : vector<2x32xf32>
    %493 = tpu.concatenate %463, %492 in 1 : vector<2x32xf32>, vector<2x32xf32> -> vector<2x64xf32>
    %c0_170 = arith.constant 0 : index
    %c0_171 = arith.constant 0 : index
    %494 = vector.load %arg8[%c0_170, %c0_171] : memref<2x64xf32, #tpu.memory_space<vmem>>, vector<2x64xf32>
    tpu.vector_store %arg8[%c0_170, %c0_171], %493 {strides = array<i32>} : memref<2x64xf32, #tpu.memory_space<vmem>>, vector<2x64xf32>,
    %495 = tpu.concatenate %461, %490 in 1 : vector<2x32xf32>, vector<2x32xf32> -> vector<2x64xf32>
    %c0_172 = arith.constant 0 : index
    %c0_173 = arith.constant 0 : index
    %496 = vector.load %arg9[%c0_172, %c0_173] : memref<2x64xf32, #tpu.memory_space<vmem>>, vector<2x64xf32>
    tpu.vector_store %arg9[%c0_172, %c0_173], %495 {strides = array<i32>} : memref<2x64xf32, #tpu.memory_space<vmem>>, vector<2x64xf32>,
    %c2_i32_174 = arith.constant 2 : i32
    %497 = arith.muli %c5_i32, %c2_i32_174 : i32
    %498 = arith.index_cast %497 : i32 to index
    %c0_175 = arith.constant 0 : index
    %499 = vector.load %arg10[%498, %c0_175] : memref<16x32xf32, #tpu.memory_space<vmem>>, vector<2x32xf32>
    tpu.vector_store %arg10[%498, %c0_175], %463 {strides = array<i32>} : memref<16x32xf32, #tpu.memory_space<vmem>>, vector<2x32xf32>,
    %c2_i32_176 = arith.constant 2 : i32
    %500 = arith.muli %422, %c2_i32_176 : i32
    %501 = arith.index_cast %500 : i32 to index
    %c0_177 = arith.constant 0 : index
    %502 = vector.load %arg11[%501, %c0_177] : memref<16x32xf32, #tpu.memory_space<vmem>>, vector<2x32xf32>
    tpu.vector_store %arg11[%501, %c0_177], %492 {strides = array<i32>} : memref<16x32xf32, #tpu.memory_space<vmem>>, vector<2x32xf32>,
    %c6_i32 = arith.constant 6 : i32
    %c7_i32_178 = arith.constant 7 : i32
    %503 = arith.subi %c7_i32_178, %c6_i32 : i32
    %c0_179 = arith.constant 0 : index
    %c0_180 = arith.constant 0 : index
    %504 = vector.load %arg8[%c0_179, %c0_180] : memref<2x64xf32, #tpu.memory_space<vmem>>, vector<2x64xf32>
    %505 = arith.truncf %504 : vector<2x64xf32> to vector<2x64xbf16>
    %c0_181 = arith.constant 0 : index
    %c0_182 = arith.constant 0 : index
    %c0_183 = arith.constant 0 : index
    %506 = vector.load %arg3[%c0_181, %c0_182, %c0_183] : memref<1x64x256xbf16, #tpu.memory_space<vmem>>, vector<1x64x256xbf16>
    %507 = vector.shape_cast %506 : vector<1x64x256xbf16> to vector<64x256xbf16>
    %cst_184 = arith.constant dense<0.000000e+00> : vector<2x256xf32>
    %508 = tpu.matmul %505, %507, %cst_184 {dimension_numbers = #tpu.dot_dimension_numbers<[1], [0], [0], [1], [0, 0, 1, 1], [], []>} : vector<2x64xbf16>, vector<64x256xbf16>, vector<2x256xf32> -> vector<2x256xf32>
    %c2_i32_185 = arith.constant 2 : i32
    %509 = arith.muli %c6_i32, %c2_i32_185 : i32
    %510 = arith.index_cast %509 : i32 to index
    %c0_186 = arith.constant 0 : index
    %511 = vector.load %arg7[%510, %c0_186] : memref<16x256xf32, #tpu.memory_space<vmem>>, vector<2x256xf32>
    %c2_i32_187 = arith.constant 2 : i32
    %512 = arith.muli %503, %c2_i32_187 : i32
    %513 = arith.index_cast %512 : i32 to index
    %c0_188 = arith.constant 0 : index
    %514 = vector.load %arg7[%513, %c0_188] : memref<16x256xf32, #tpu.memory_space<vmem>>, vector<2x256xf32>
    %c0_189 = arith.constant 0 : index
    %c0_190 = arith.constant 0 : index
    %515 = vector.load %arg9[%c0_189, %c0_190] : memref<2x64xf32, #tpu.memory_space<vmem>>, vector<2x64xf32>
    %516 = vector.extract_strided_slice %511 {offsets = [0, 0], sizes = [2, 128], strides = [1, 1]} : vector<2x256xf32> to vector<2x128xf32>
    %517 = vector.extract_strided_slice %508 {offsets = [0, 0], sizes = [2, 128], strides = [1, 1]} : vector<2x256xf32> to vector<2x128xf32>
    %518 = arith.addf %516, %517 : vector<2x128xf32>
    %519 = vector.extract_strided_slice %515 {offsets = [0, 0], sizes = [2, 32], strides = [1, 1]} : vector<2x64xf32> to vector<2x32xf32>
    %520 = vector.extract_strided_slice %518 {offsets = [0, 0], sizes = [2, 32], strides = [1, 1]} : vector<2x128xf32> to vector<2x32xf32>
    %521 = arith.negf %520 : vector<2x32xf32>
    %522 = math.exp %521 : vector<2x32xf32>
    %cst_191 = arith.constant 1.000000e+00 : f32
    %523 = vector.broadcast %cst_191 : f32 to vector<2x32xf32>
    %524 = arith.addf %523, %522 : vector<2x32xf32>
    %525 = arith.divf %523, %524 : vector<2x32xf32>
    %526 = vector.extract_strided_slice %518 {offsets = [0, 32], sizes = [2, 32], strides = [1, 1]} : vector<2x128xf32> to vector<2x32xf32>
    %527 = arith.negf %526 : vector<2x32xf32>
    %528 = math.exp %527 : vector<2x32xf32>
    %cst_192 = arith.constant 1.000000e+00 : f32
    %529 = vector.broadcast %cst_192 : f32 to vector<2x32xf32>
    %530 = arith.addf %529, %528 : vector<2x32xf32>
    %531 = arith.divf %529, %530 : vector<2x32xf32>
    %532 = vector.extract_strided_slice %518 {offsets = [0, 64], sizes = [2, 32], strides = [1, 1]} : vector<2x128xf32> to vector<2x32xf32>
    %533 = math.tanh %532 : vector<2x32xf32>
    %534 = vector.extract_strided_slice %518 {offsets = [0, 96], sizes = [2, 32], strides = [1, 1]} : vector<2x128xf32> to vector<2x32xf32>
    %535 = arith.negf %534 : vector<2x32xf32>
    %536 = math.exp %535 : vector<2x32xf32>
    %cst_193 = arith.constant 1.000000e+00 : f32
    %537 = vector.broadcast %cst_193 : f32 to vector<2x32xf32>
    %538 = arith.addf %537, %536 : vector<2x32xf32>
    %539 = arith.divf %537, %538 : vector<2x32xf32>
    %540 = arith.mulf %531, %519 : vector<2x32xf32>
    %541 = arith.mulf %525, %533 : vector<2x32xf32>
    %542 = arith.addf %540, %541 : vector<2x32xf32>
    %543 = math.tanh %542 : vector<2x32xf32>
    %544 = arith.mulf %539, %543 : vector<2x32xf32>
    %545 = vector.extract_strided_slice %514 {offsets = [0, 128], sizes = [2, 128], strides = [1, 1]} : vector<2x256xf32> to vector<2x128xf32>
    %546 = vector.extract_strided_slice %508 {offsets = [0, 128], sizes = [2, 128], strides = [1, 1]} : vector<2x256xf32> to vector<2x128xf32>
    %547 = arith.addf %545, %546 : vector<2x128xf32>
    %548 = vector.extract_strided_slice %515 {offsets = [0, 32], sizes = [2, 32], strides = [1, 1]} : vector<2x64xf32> to vector<2x32xf32>
    %549 = vector.extract_strided_slice %547 {offsets = [0, 0], sizes = [2, 32], strides = [1, 1]} : vector<2x128xf32> to vector<2x32xf32>
    %550 = arith.negf %549 : vector<2x32xf32>
    %551 = math.exp %550 : vector<2x32xf32>
    %cst_194 = arith.constant 1.000000e+00 : f32
    %552 = vector.broadcast %cst_194 : f32 to vector<2x32xf32>
    %553 = arith.addf %552, %551 : vector<2x32xf32>
    %554 = arith.divf %552, %553 : vector<2x32xf32>
    %555 = vector.extract_strided_slice %547 {offsets = [0, 32], sizes = [2, 32], strides = [1, 1]} : vector<2x128xf32> to vector<2x32xf32>
    %556 = arith.negf %555 : vector<2x32xf32>
    %557 = math.exp %556 : vector<2x32xf32>
    %cst_195 = arith.constant 1.000000e+00 : f32
    %558 = vector.broadcast %cst_195 : f32 to vector<2x32xf32>
    %559 = arith.addf %558, %557 : vector<2x32xf32>
    %560 = arith.divf %558, %559 : vector<2x32xf32>
    %561 = vector.extract_strided_slice %547 {offsets = [0, 64], sizes = [2, 32], strides = [1, 1]} : vector<2x128xf32> to vector<2x32xf32>
    %562 = math.tanh %561 : vector<2x32xf32>
    %563 = vector.extract_strided_slice %547 {offsets = [0, 96], sizes = [2, 32], strides = [1, 1]} : vector<2x128xf32> to vector<2x32xf32>
    %564 = arith.negf %563 : vector<2x32xf32>
    %565 = math.exp %564 : vector<2x32xf32>
    %cst_196 = arith.constant 1.000000e+00 : f32
    %566 = vector.broadcast %cst_196 : f32 to vector<2x32xf32>
    %567 = arith.addf %566, %565 : vector<2x32xf32>
    %568 = arith.divf %566, %567 : vector<2x32xf32>
    %569 = arith.mulf %560, %548 : vector<2x32xf32>
    %570 = arith.mulf %554, %562 : vector<2x32xf32>
    %571 = arith.addf %569, %570 : vector<2x32xf32>
    %572 = math.tanh %571 : vector<2x32xf32>
    %573 = arith.mulf %568, %572 : vector<2x32xf32>
    %574 = tpu.concatenate %544, %573 in 1 : vector<2x32xf32>, vector<2x32xf32> -> vector<2x64xf32>
    %c0_197 = arith.constant 0 : index
    %c0_198 = arith.constant 0 : index
    %575 = vector.load %arg8[%c0_197, %c0_198] : memref<2x64xf32, #tpu.memory_space<vmem>>, vector<2x64xf32>
    tpu.vector_store %arg8[%c0_197, %c0_198], %574 {strides = array<i32>} : memref<2x64xf32, #tpu.memory_space<vmem>>, vector<2x64xf32>,
    %576 = tpu.concatenate %542, %571 in 1 : vector<2x32xf32>, vector<2x32xf32> -> vector<2x64xf32>
    %c0_199 = arith.constant 0 : index
    %c0_200 = arith.constant 0 : index
    %577 = vector.load %arg9[%c0_199, %c0_200] : memref<2x64xf32, #tpu.memory_space<vmem>>, vector<2x64xf32>
    tpu.vector_store %arg9[%c0_199, %c0_200], %576 {strides = array<i32>} : memref<2x64xf32, #tpu.memory_space<vmem>>, vector<2x64xf32>,
    %c2_i32_201 = arith.constant 2 : i32
    %578 = arith.muli %c6_i32, %c2_i32_201 : i32
    %579 = arith.index_cast %578 : i32 to index
    %c0_202 = arith.constant 0 : index
    %580 = vector.load %arg10[%579, %c0_202] : memref<16x32xf32, #tpu.memory_space<vmem>>, vector<2x32xf32>
    tpu.vector_store %arg10[%579, %c0_202], %544 {strides = array<i32>} : memref<16x32xf32, #tpu.memory_space<vmem>>, vector<2x32xf32>,
    %c2_i32_203 = arith.constant 2 : i32
    %581 = arith.muli %503, %c2_i32_203 : i32
    %582 = arith.index_cast %581 : i32 to index
    %c0_204 = arith.constant 0 : index
    %583 = vector.load %arg11[%582, %c0_204] : memref<16x32xf32, #tpu.memory_space<vmem>>, vector<2x32xf32>
    tpu.vector_store %arg11[%582, %c0_204], %573 {strides = array<i32>} : memref<16x32xf32, #tpu.memory_space<vmem>>, vector<2x32xf32>,
    %c7_i32_205 = arith.constant 7 : i32
    %c7_i32_206 = arith.constant 7 : i32
    %584 = arith.subi %c7_i32_206, %c7_i32_205 : i32
    %c0_207 = arith.constant 0 : index
    %c0_208 = arith.constant 0 : index
    %585 = vector.load %arg8[%c0_207, %c0_208] : memref<2x64xf32, #tpu.memory_space<vmem>>, vector<2x64xf32>
    %586 = arith.truncf %585 : vector<2x64xf32> to vector<2x64xbf16>
    %c0_209 = arith.constant 0 : index
    %c0_210 = arith.constant 0 : index
    %c0_211 = arith.constant 0 : index
    %587 = vector.load %arg3[%c0_209, %c0_210, %c0_211] : memref<1x64x256xbf16, #tpu.memory_space<vmem>>, vector<1x64x256xbf16>
    %588 = vector.shape_cast %587 : vector<1x64x256xbf16> to vector<64x256xbf16>
    %cst_212 = arith.constant dense<0.000000e+00> : vector<2x256xf32>
    %589 = tpu.matmul %586, %588, %cst_212 {dimension_numbers = #tpu.dot_dimension_numbers<[1], [0], [0], [1], [0, 0, 1, 1], [], []>} : vector<2x64xbf16>, vector<64x256xbf16>, vector<2x256xf32> -> vector<2x256xf32>
    %c2_i32_213 = arith.constant 2 : i32
    %590 = arith.muli %c7_i32_205, %c2_i32_213 : i32
    %591 = arith.index_cast %590 : i32 to index
    %c0_214 = arith.constant 0 : index
    %592 = vector.load %arg7[%591, %c0_214] : memref<16x256xf32, #tpu.memory_space<vmem>>, vector<2x256xf32>
    %c2_i32_215 = arith.constant 2 : i32
    %593 = arith.muli %584, %c2_i32_215 : i32
    %594 = arith.index_cast %593 : i32 to index
    %c0_216 = arith.constant 0 : index
    %595 = vector.load %arg7[%594, %c0_216] : memref<16x256xf32, #tpu.memory_space<vmem>>, vector<2x256xf32>
    %c0_217 = arith.constant 0 : index
    %c0_218 = arith.constant 0 : index
    %596 = vector.load %arg9[%c0_217, %c0_218] : memref<2x64xf32, #tpu.memory_space<vmem>>, vector<2x64xf32>
    %597 = vector.extract_strided_slice %592 {offsets = [0, 0], sizes = [2, 128], strides = [1, 1]} : vector<2x256xf32> to vector<2x128xf32>
    %598 = vector.extract_strided_slice %589 {offsets = [0, 0], sizes = [2, 128], strides = [1, 1]} : vector<2x256xf32> to vector<2x128xf32>
    %599 = arith.addf %597, %598 : vector<2x128xf32>
    %600 = vector.extract_strided_slice %596 {offsets = [0, 0], sizes = [2, 32], strides = [1, 1]} : vector<2x64xf32> to vector<2x32xf32>
    %601 = vector.extract_strided_slice %599 {offsets = [0, 0], sizes = [2, 32], strides = [1, 1]} : vector<2x128xf32> to vector<2x32xf32>
    %602 = arith.negf %601 : vector<2x32xf32>
    %603 = math.exp %602 : vector<2x32xf32>
    %cst_219 = arith.constant 1.000000e+00 : f32
    %604 = vector.broadcast %cst_219 : f32 to vector<2x32xf32>
    %605 = arith.addf %604, %603 : vector<2x32xf32>
    %606 = arith.divf %604, %605 : vector<2x32xf32>
    %607 = vector.extract_strided_slice %599 {offsets = [0, 32], sizes = [2, 32], strides = [1, 1]} : vector<2x128xf32> to vector<2x32xf32>
    %608 = arith.negf %607 : vector<2x32xf32>
    %609 = math.exp %608 : vector<2x32xf32>
    %cst_220 = arith.constant 1.000000e+00 : f32
    %610 = vector.broadcast %cst_220 : f32 to vector<2x32xf32>
    %611 = arith.addf %610, %609 : vector<2x32xf32>
    %612 = arith.divf %610, %611 : vector<2x32xf32>
    %613 = vector.extract_strided_slice %599 {offsets = [0, 64], sizes = [2, 32], strides = [1, 1]} : vector<2x128xf32> to vector<2x32xf32>
    %614 = math.tanh %613 : vector<2x32xf32>
    %615 = vector.extract_strided_slice %599 {offsets = [0, 96], sizes = [2, 32], strides = [1, 1]} : vector<2x128xf32> to vector<2x32xf32>
    %616 = arith.negf %615 : vector<2x32xf32>
    %617 = math.exp %616 : vector<2x32xf32>
    %cst_221 = arith.constant 1.000000e+00 : f32
    %618 = vector.broadcast %cst_221 : f32 to vector<2x32xf32>
    %619 = arith.addf %618, %617 : vector<2x32xf32>
    %620 = arith.divf %618, %619 : vector<2x32xf32>
    %621 = arith.mulf %612, %600 : vector<2x32xf32>
    %622 = arith.mulf %606, %614 : vector<2x32xf32>
    %623 = arith.addf %621, %622 : vector<2x32xf32>
    %624 = math.tanh %623 : vector<2x32xf32>
    %625 = arith.mulf %620, %624 : vector<2x32xf32>
    %626 = vector.extract_strided_slice %595 {offsets = [0, 128], sizes = [2, 128], strides = [1, 1]} : vector<2x256xf32> to vector<2x128xf32>
    %627 = vector.extract_strided_slice %589 {offsets = [0, 128], sizes = [2, 128], strides = [1, 1]} : vector<2x256xf32> to vector<2x128xf32>
    %628 = arith.addf %626, %627 : vector<2x128xf32>
    %629 = vector.extract_strided_slice %596 {offsets = [0, 32], sizes = [2, 32], strides = [1, 1]} : vector<2x64xf32> to vector<2x32xf32>
    %630 = vector.extract_strided_slice %628 {offsets = [0, 0], sizes = [2, 32], strides = [1, 1]} : vector<2x128xf32> to vector<2x32xf32>
    %631 = arith.negf %630 : vector<2x32xf32>
    %632 = math.exp %631 : vector<2x32xf32>
    %cst_222 = arith.constant 1.000000e+00 : f32
    %633 = vector.broadcast %cst_222 : f32 to vector<2x32xf32>
    %634 = arith.addf %633, %632 : vector<2x32xf32>
    %635 = arith.divf %633, %634 : vector<2x32xf32>
    %636 = vector.extract_strided_slice %628 {offsets = [0, 32], sizes = [2, 32], strides = [1, 1]} : vector<2x128xf32> to vector<2x32xf32>
    %637 = arith.negf %636 : vector<2x32xf32>
    %638 = math.exp %637 : vector<2x32xf32>
    %cst_223 = arith.constant 1.000000e+00 : f32
    %639 = vector.broadcast %cst_223 : f32 to vector<2x32xf32>
    %640 = arith.addf %639, %638 : vector<2x32xf32>
    %641 = arith.divf %639, %640 : vector<2x32xf32>
    %642 = vector.extract_strided_slice %628 {offsets = [0, 64], sizes = [2, 32], strides = [1, 1]} : vector<2x128xf32> to vector<2x32xf32>
    %643 = math.tanh %642 : vector<2x32xf32>
    %644 = vector.extract_strided_slice %628 {offsets = [0, 96], sizes = [2, 32], strides = [1, 1]} : vector<2x128xf32> to vector<2x32xf32>
    %645 = arith.negf %644 : vector<2x32xf32>
    %646 = math.exp %645 : vector<2x32xf32>
    %cst_224 = arith.constant 1.000000e+00 : f32
    %647 = vector.broadcast %cst_224 : f32 to vector<2x32xf32>
    %648 = arith.addf %647, %646 : vector<2x32xf32>
    %649 = arith.divf %647, %648 : vector<2x32xf32>
    %650 = arith.mulf %641, %629 : vector<2x32xf32>
    %651 = arith.mulf %635, %643 : vector<2x32xf32>
    %652 = arith.addf %650, %651 : vector<2x32xf32>
    %653 = math.tanh %652 : vector<2x32xf32>
    %654 = arith.mulf %649, %653 : vector<2x32xf32>
    %655 = tpu.concatenate %625, %654 in 1 : vector<2x32xf32>, vector<2x32xf32> -> vector<2x64xf32>
    %c0_225 = arith.constant 0 : index
    %c0_226 = arith.constant 0 : index
    %656 = vector.load %arg8[%c0_225, %c0_226] : memref<2x64xf32, #tpu.memory_space<vmem>>, vector<2x64xf32>
    tpu.vector_store %arg8[%c0_225, %c0_226], %655 {strides = array<i32>} : memref<2x64xf32, #tpu.memory_space<vmem>>, vector<2x64xf32>,
    %657 = tpu.concatenate %623, %652 in 1 : vector<2x32xf32>, vector<2x32xf32> -> vector<2x64xf32>
    %c0_227 = arith.constant 0 : index
    %c0_228 = arith.constant 0 : index
    %658 = vector.load %arg9[%c0_227, %c0_228] : memref<2x64xf32, #tpu.memory_space<vmem>>, vector<2x64xf32>
    tpu.vector_store %arg9[%c0_227, %c0_228], %657 {strides = array<i32>} : memref<2x64xf32, #tpu.memory_space<vmem>>, vector<2x64xf32>,
    %c2_i32_229 = arith.constant 2 : i32
    %659 = arith.muli %c7_i32_205, %c2_i32_229 : i32
    %660 = arith.index_cast %659 : i32 to index
    %c0_230 = arith.constant 0 : index
    %661 = vector.load %arg10[%660, %c0_230] : memref<16x32xf32, #tpu.memory_space<vmem>>, vector<2x32xf32>
    tpu.vector_store %arg10[%660, %c0_230], %625 {strides = array<i32>} : memref<16x32xf32, #tpu.memory_space<vmem>>, vector<2x32xf32>,
    %c2_i32_231 = arith.constant 2 : i32
    %662 = arith.muli %584, %c2_i32_231 : i32
    %663 = arith.index_cast %662 : i32 to index
    %c0_232 = arith.constant 0 : index
    %664 = vector.load %arg11[%663, %c0_232] : memref<16x32xf32, #tpu.memory_space<vmem>>, vector<2x32xf32>
    tpu.vector_store %arg11[%663, %c0_232], %654 {strides = array<i32>} : memref<16x32xf32, #tpu.memory_space<vmem>>, vector<2x32xf32>,
    %c8_i32 = arith.constant 8 : i32
    %c0_233 = arith.constant 0 : index
    %c0_234 = arith.constant 0 : index
    %665 = vector.load %arg10[%c0_233, %c0_234] : memref<16x32xf32, #tpu.memory_space<vmem>>, vector<16x32xf32>
    %c0_235 = arith.constant 0 : index
    %c0_236 = arith.constant 0 : index
    %666 = vector.load %arg11[%c0_235, %c0_236] : memref<16x32xf32, #tpu.memory_space<vmem>>, vector<16x32xf32>
    %667 = tpu.concatenate %665, %666 in 1 : vector<16x32xf32>, vector<16x32xf32> -> vector<16x64xf32>
    %c0_237 = arith.constant 0 : index
    %c0_238 = arith.constant 0 : index
    %668 = vector.load %arg6[%c0_237, %c0_238] : memref<16x64xf32, #tpu.memory_space<vmem>>, vector<16x64xf32>
    tpu.vector_store %arg6[%c0_237, %c0_238], %667 {strides = array<i32>} : memref<16x64xf32, #tpu.memory_space<vmem>>, vector<16x64xf32>,
    %c1_i32_239 = arith.constant 1 : i32
    %669 = arith.cmpi eq, %arg0, %c1_i32_239 : i32
    %670 = arith.extui %669 : i1 to i32
    %c0_i32_240 = arith.constant 0 : i32
    %671 = arith.cmpi ne, %670, %c0_i32_240 : i32
    scf.if %671 {
      %c14 = arith.constant 14 : index
      %c0_241 = arith.constant 0 : index
      %672 = vector.load %arg6[%c14, %c0_241] : memref<16x64xf32, #tpu.memory_space<vmem>>, vector<2x64xf32>
      %c0_242 = arith.constant 0 : index
      %c0_243 = arith.constant 0 : index
      %673 = vector.load %arg5[%c0_242, %c0_243] : memref<2x64xf32, #tpu.memory_space<vmem>>, vector<2x64xf32>
      tpu.vector_store %arg5[%c0_242, %c0_243], %672 {strides = array<i32>} : memref<2x64xf32, #tpu.memory_space<vmem>>, vector<2x64xf32>,
    } else {
    }
    return
  }
  func.func @transform_0(%arg0: i32) -> (i32, i32) {
    %c0_i32 = arith.constant 0 : i32
    %c0_i32_0 = arith.constant 0 : i32
    %c0_i32_1 = arith.constant 0 : i32
    return %c0_i32, %c0_i32_0 : i32, i32
  }
  func.func @transform_1(%arg0: i32) -> (i32, i32, i32) {
    %c0_i32 = arith.constant 0 : i32
    %c0_i32_0 = arith.constant 0 : i32
    %c0_i32_1 = arith.constant 0 : i32
    return %arg0, %c0_i32, %c0_i32_0 : i32, i32, i32
  }
  func.func @transform_2(%arg0: i32) -> (i32, i32, i32) {
    %c0_i32 = arith.constant 0 : i32
    %c0_i32_0 = arith.constant 0 : i32
    %c0_i32_1 = arith.constant 0 : i32
    return %arg0, %c0_i32, %c0_i32_0 : i32, i32, i32
  }
  func.func @transform_3(%arg0: i32) -> (i32, i32, i32) {
    %c0_i32 = arith.constant 0 : i32
    %c0_i32_0 = arith.constant 0 : i32
    %c0_i32_1 = arith.constant 0 : i32
    return %arg0, %c0_i32, %c0_i32_0 : i32, i32, i32
  }
  func.func @transform_4(%arg0: i32) -> (i32, i32) {
    %c0_i32 = arith.constant 0 : i32
    %c0_i32_0 = arith.constant 0 : i32
    %c0_i32_1 = arith.constant 0 : i32
    return %c0_i32, %c0_i32_0 : i32, i32
  }
}

</mosaic_0001>

<bundles_post_ra>
// kernel: forward.2
= control target key start
LH: loop header
LB: loop body
LE: loop exit
PB: predicated region body
PF: predicated region fallthrough
CT: control target
= control target key end

     0   :  { %s3459_s0 = inlined_call_operand.vmem [shape: s32[16,1], index: 0, kind: input, shape index: {}]   ;;  %s3460_s1 = inlined_call_operand.vmem [shape: f32[100,64], index: 1, kind: input, shape index: {}]   ;;  %s3461_s2 = inlined_call_operand.vmem [shape: f32[16,64], index: 2, kind: input, shape index: {}]   ;;  %s3462_s3 = inlined_call_operand.vmem [shape: f32[1,64], index: 3, kind: input, shape index: {}]   ;;  %s3463_s4 = inlined_call_operand.vmem [shape: f32[1,64], index: 4, kind: input, shape index: {}]   ;;  %s3464_s5 = inlined_call_operand.vmem [shape: f32[2,8], index: 5, kind: input, shape index: {}]   ;;  %s3465_s6 = inlined_call_operand.vmem [shape: bf16[2,64,192], index: 6, kind: input, shape index: {}]   ;;  %s3466_s7 = inlined_call_operand.vmem [shape: f32[2,1,192], index: 7, kind: input, shape index: {}]   ;;  %s3467_s8 = inlined_call_operand.vmem [shape: bf16[2,64,64], index: 8, kind: input, shape index: {}]   ;;  %s3468_s9 = inlined_call_operand.vmem [shape: f32[2,1,64], index: 9, kind: input, shape index: {}]   ;;  %s3469_s10 = inlined_call_operand.vmem [shape: f32[2,1,64], index: 10, kind: input, shape index: {}]   ;;  %s3470_s11 = inlined_call_operand.vmem [shape: f32[2,1,64], index: 11, kind: input, shape index: {}]   ;;  %s3471_s12 = inlined_call_operand.vmem [shape: bf16[2,64,128], index: 12, kind: input, shape index: {}]   ;;  %s3472_s13 = inlined_call_operand.vmem [shape: f32[2,1,128], index: 13, kind: input, shape index: {}]   ;;  %s3473_s14 = inlined_call_operand.vmem [shape: bf16[2,128,64], index: 14, kind: input, shape index: {}]   ;;  %s3474_s15 = inlined_call_operand.vmem [shape: f32[2,1,64], index: 15, kind: input, shape index: {}]   ;;  %s3475_s16 = inlined_call_operand.vmem [shape: f32[2,1,64], index: 16, kind: input, shape index: {}]   ;;  %s3476_s17 = inlined_call_operand.vmem [shape: f32[2,1,64], index: 17, kind: input, shape index: {}]   ;;  %s3477_s18 = inlined_call_operand.vmem [shape: bf16[3,64,32], index: 18, kind: input, shape index: {}]   ;;  %s3478_s19 = inlined_call_operand.vmem [shape: f32[1,32], index: 19, kind: input, shape index: {}]   ;;  %s3479_s20 = inlined_call_operand.vmem [shape: f32[16,64], index: 20, kind: output, shape index: {0}]   ;;  %s3480_s21 = inlined_call_operand.hbm [shape: f32[2,32], index: 21, kind: output, shape index: {1}]  }
   0x1   :  { %3490 = sst [smem:[#allocation7_spill]] %s3459_s0 }
   0x2   :  { %3491 = sst [smem:[#allocation8_spill]] %s3460_s1 }
   0x3   :  { %3492 = sst [smem:[#allocation9_spill]] %s3461_s2 }
   0x4   :  { %3493 = sst [smem:[#allocation10_spill]] %s3462_s3 }
   0x5   :  { %3494 = sst [smem:[#allocation11_spill]] %s3463_s4 }
   0x6   :  { %3495 = sst [smem:[#allocation12_spill]] %s3464_s5 }
   0x7   :  { %3496 = sst [smem:[#allocation13_spill]] %s3465_s6 }
   0x8   :  { %3497 = sst [smem:[#allocation14_spill]] %s3466_s7 }
   0x9   :  { %3498 = sst [smem:[#allocation15_spill]] %s3467_s8 }
   0xa   :  { %3499 = sst [smem:[#allocation16_spill]] %s3477_s18 }
   0xb   :  { %3500 = sst [smem:[#allocation17_spill]] %s3478_s19 }
   0xc   :  { %3501 = sst [smem:[#allocation18_spill]] %s3479_s20 }
   0xd   :  { %3502 = sst [smem:[#allocation19_spill]] %s3480_s21 }
   0xe   :  { %27 = vsyncpa [#allocation4], 0  ;;  %s3041_s2 = smov 0  }
   0xf LB: > { %3503 = sst [smem:[#allocation6_spill]] %s2918_s2  ;;  %s3047_s25 = sadd.s32 4294967295, %s2918_s2   ;;  %s2918_s2 = sphi %s3041_s2, %s33_s2  }
  0x10   : > { %p2435_p0 = scmp.ge.s32.totalorder %s2918_s2, 1  ;;  %p676_p1 = scmp.lt.s32.totalorder %s2918_s2, 3 }
  0x12   : > { %p677_p2 = pnand %p2435_p0, %p676_p1 }
  0x13   : > { %p771_p3 = scmp.lt.s32.totalorder (!%p677_p2), %s3047_s25, 1  ;;  %s3504_s6 = sld [smem:[#allocation13_spill]] (!%p677_p2) }
  0x14   : > { %680 = sbr.rel (%p677_p2) target bundleno = 3548 (0xddc), region = 100  ;;  %s3505_s7 = sld [smem:[#allocation14_spill]] (!%p677_p2) }
  0x15   : > { %s3506_s8 = sld [smem:[#allocation15_spill]] (!%p677_p2)  ;;  %p2445_p4 = scmp.ne.s32.totalorder (!%p677_p2), %s3047_s25, 0 }
  0x1b   : > { %s3053_s26 = scalar_select %p771_p3, %s3047_s25, 1 }
  0x1c   : > { %820 = sbr.rel (%p2445_p4) target bundleno = 702 (0x2be), region = 104  ;;  %s3507_s21 = sld [smem:[#allocation7_spill]] (!%p2445_p4)  ;;  %v2920_v2 = vmov (!%p2445_p4), 0   ;;  %vm859_vm0 = vcmask (!%p2445_p4), 1043456   ;;  %v823_v22 = vlaneseq (!%p2445_p4)  ;;  %vm852_vm1 = vcmask (!%p2445_p4), 818176  }
  0x1d   : > { %s2534_s27 = sshll.u32 %s3053_s26, 6  ;;  %s2438_s3 = sshll.u32 %s3053_s26, 1  ;;  %2809 = vset.pattern.permute.xlu0 (!%p2445_p4), %v2920_v2  ;;  %v2921_v25 = vmov (!%p2445_p4), 0.0   ;;  %vm940_vm4 = vcmask (!%p2445_p4), 523264  }
  0x1e   : > { %s3060_s0 = scalar_lea.vmem %s3504_s6, %s2534_s27  ;;  %s3065_s5 = scalar_lea.vmem %s3505_s7, %s2438_s3  ;;  %v824_v23 = vand.u32 (!%p2445_p4), 127, %v823_v22 }
  0x1f   : > { %s2535_s22 = sshll.u32 %s3053_s26, 5  ;;  %s809_s28 = scalar_lea.vmem %s3474_s15, %s3053_s26 }
  0x20   : > { %s3075_s19 = scalar_lea.vmem %s3506_s8, %s2535_s22  ;;  %s3088_s7 = scalar_lea.vmem %s3471_s12, %s2535_s22 }
  0x21   : > { %s3097_s8 = scalar_lea.vmem %s3473_s14, %s2534_s27  ;;  %s812_s4 = scalar_lea.vmem %s3475_s16, %s3053_s26 }
  0x22   : > { %v821_v0 = vld [vmem:[%s3507_s21] sm:$0xff] (!%p2445_p4)  ;;  %s3508_s24 = sld [smem:[#allocation8_spill]] (!%p2445_p4)  ;;  %v822_v8 = vld [vmem:[%s3507_s21 + $0x8] sm:$0xff] (!%p2445_p4)  ;;  %s3509_s27 = sld [smem:[#allocation9_spill]] (!%p2445_p4) }
  0x23   : > { %826 = vperm.xlu0 %2809, %v821_v0   ;;  %s3510_s29 = sld [smem:[#allocation10_spill]]  ;;  %s3511_s23 = sld [smem:[#allocation11_spill]] }
  0x24   : > { %s3512_s18 = sld [smem:[#allocation18_spill]] }
  0x27   : > { %829 = vperm.xlu0 %2809, %v822_v8  }
  0x28   : > { %v837_v1 = vld [vmem:[%s3508_s24] sm:$0xff]  ;;  %v838_v3 = vld [vmem:[%s3508_s24 + $0x8] sm:$0xff]  ;;  %v839_v4 = vld [vmem:[%s3508_s24 + $0x10] sm:$0xff] }
  0x29   : > { %v840_v5 = vld [vmem:[%s3508_s24 + $0x18] sm:$0xff]  ;;  %v2760_v6 = vpack.c.bf16 %v838_v3, %v837_v1  ;;  %v841_v9 = vld [vmem:[%s3508_s24 + $0x20] sm:$0xff]  ;;  %v842_v10 = vld [vmem:[%s3508_s24 + $0x28] sm:$0xff] }
  0x2a   : > { %v2764_v7 = vpack.c.bf16 %v840_v5, %v839_v4  ;;  %v2768_v11 = vpack.c.bf16 %v842_v10, %v841_v9  ;;  %v843_v12 = vld [vmem:[%s3508_s24 + $0x30] sm:$0xff]  ;;  %v844_v13 = vld [vmem:[%s3508_s24 + $0x38] sm:$0xff]  ;;  %v845_v15 = vld [vmem:[%s3508_s24 + $0x40] sm:$0xff] }
  0x2b   : > { %2761 = vmatprep.subr.bf16.mxu0 %v2760_v6  ;;  %v2772_v14 = vpack.c.bf16 %v844_v13, %v843_v12  ;;  %v846_v16 = vld [vmem:[%s3508_s24 + $0x48] sm:$0xff]  ;;  %v847_v18 = vld [vmem:[%s3508_s24 + $0x50] sm:$0xff]  ;;  %v848_v19 = vld [vmem:[%s3508_s24 + $0x58] sm:$0xff] }
  0x2c   : > { %2763 = vmatpush3.bf16.msra.mxu0 %v2760_v6  ;;  %v2776_v17 = vpack.c.bf16 %v846_v16, %v845_v15  ;;  %v2780_v20 = vpack.c.bf16 %v848_v19, %v847_v18  ;;  %v849_v21 = vld [vmem:[%s3508_s24 + $0x60] sm:$0xf]  ;;  %v851_v31 = vld [vmem:[%s3509_s27 + $0x8] sm:$0xff] }
  0x2d   : > { %2765 = vmatprep.subr.bf16.mxu0 %v2764_v7  ;;  %v850_v29 = vld [vmem:[%s3509_s27] sm:$0xff] }
  0x2e   : > { %v2451_v54 = vld [vmem:[%s3510_s29] ss:$0 sm:$0xff] }
  0x2f   : > { %v2452_v56 = vld [vmem:[%s3511_s23] ss:$0 sm:$0xff] }
  0x30   : > { %2767 = vmatpush3.bf16.msra.mxu0 %v2764_v7 }
  0x31   : > { %2769 = vmatprep.subr.bf16.mxu0 %v2768_v11 }
  0x34   : > { %2771 = vmatpush3.bf16.msra.mxu0 %v2768_v11 }
  0x35   : > { %2773 = vmatprep.subr.bf16.mxu0 %v2772_v14 }
  0x38   : > { %2775 = vmatpush3.bf16.msra.mxu0 %v2772_v14 }
  0x39   : > { %2777 = vmatprep.subr.bf16.mxu0 %v2776_v17 }
  0x3c   : > { %2779 = vmatpush3.bf16.msra.mxu0 %v2776_v17 }
  0x3d   : > { %2781 = vmatprep.subr.bf16.mxu0 %v2780_v20 }
  0x40   : > { %2783 = vmatpush3.bf16.msra.mxu0 %v2780_v20 }
  0x41   : > { %2627 = vmatprep.subr.msk.mxu0 %vm859_vm0, %v849_v21 }
  0x44   : > { %2628 = vmatpush3.msk.msra.mxu0 %vm859_vm0, %v849_v21 }
  0xa2   : > { %v827_v24 = vpop.permute.xlu0 %826 }
  0xa3   : > { %vm831_vm2 = vcmp.eq.s32.totalorder %v824_v23, %v827_v24 }
  0xa4   : > { %v2446_v26 = vsel %vm831_vm2, 1.0, %v2921_v25 }
  0xa5   : > { %2629 = vmatprep.mubr.msk.f32.mxu0 %vm852_vm1, %v2446_v26 }
  0xa6   : > { %v830_v27 = vpop.permute.xlu0 %829 }
  0xa7   : > { %vm832_vm3 = vcmp.eq.s32.totalorder %v824_v23, %v830_v27 }
  0xa8   : > { %v2447_v28 = vsel %vm832_vm3, 1.0, %v2921_v25 }
  0xa9   : > { %2630 = vmatmul.mubr.msk.f32.vlgmr.msra.gmra.mrb[0].mxu0 %vm852_vm1, %v2447_v28 }
 0x17c   : > { %v2631_v30 = vpop.f32.mrb[0].mxu0 }
 0x17d   : > { %v929_v32 = vpop.f32.mrb[1].mxu0  ;;  %v935_v34 = vadd.f32 %v2631_v30, %v851_v31 }
 0x17e   : > { %v930_v33 = vadd.f32 %v929_v32, %v850_v29 }
 0x17f   : > { %v944_v36 = vsel %vm940_vm4, %v935_v34, 0.0 }
 0x180   : > { %v941_v35 = vsel %vm940_vm4, %v930_v33, 0.0 }
 0x181   : > { %942 = vadd.xlane.f32.xlu1 %v941_v35 }
 0x185   : > { %945 = vadd.xlane.f32.xlu1 %v944_v36 }
 0x20e   : > { %v943_v37 = vpop.xlane.xlu1 %942 }
 0x20f   : > { %v948_v38 = vmul.f32 0.015625, %v943_v37 }
 0x211   : > { %v950_v39 = vsub.f32 %v930_v33, %v948_v38 }
 0x212   : > { %v946_v40 = vpop.xlane.xlu1 %945 }
 0x213   : > { %v949_v41 = vmul.f32 0.015625, %v946_v40  ;;  %v952_v42 = vmul.f32 %v950_v39, %v950_v39 }
 0x215   : > { %v951_v43 = vsub.f32 %v935_v34, %v949_v41  ;;  %v954_v44 = vsel %vm940_vm4, %v952_v42, 0.0 }
 0x216   : > { %955 = vadd.xlane.f32.xlu0 %v954_v44 }
 0x217   : > { %v953_v45 = vmul.f32 %v951_v43, %v951_v43 }
 0x219   : > { %v957_v46 = vsel %vm940_vm4, %v953_v45, 0.0 }
 0x21a   : > { %958 = vadd.xlane.f32.xlu1 %v957_v46 }
 0x2a3   : > { %v956_v47 = vpop.xlane.xlu0 %955 }
 0x2a4   : > { %v960_v48 = vmul.f32 0.015625, %v956_v47 }
 0x2a6   : > { %v962_v49 = vadd.f32 1e-12, %v960_v48 }
 0x2a7   : > { %v959_v50 = vpop.xlane.xlu1 %958 }
 0x2a8   : > { %2810 = vrsqrt.f32 %v962_v49  ;;  %v961_v51 = vmul.f32 0.015625, %v959_v50 }
 0x2aa   : > { %v963_v52 = vadd.f32 1e-12, %v961_v51 }
 0x2ac   : > { %2812 = vrsqrt.f32 %v963_v52 }
 0x2b2   : > { %v2811_v53 = vpop.eup %2810 }
 0x2b3   : > { %v966_v55 = vmul.f32 %v2811_v53, %v950_v39 }
 0x2b5   : > { %v974_v57 = vmul.f32 %v2451_v54, %v966_v55 }
 0x2b6   : > { %v2813_v58 = vpop.eup %2812 }
 0x2b7   : > { %v982_v59 = vadd.f32 %v2452_v56, %v974_v57  ;;  %v967_v60 = vmul.f32 %v2813_v58, %v951_v43 }
 0x2b9   : > { %984 = vst.msk [vmem:[%s3512_s18] sm:$0xff] %vm940_vm4, %v982_v59  ;;  %v975_v61 = vmul.f32 %v2451_v54, %v967_v60 }
 0x2bb   : > { %v983_v62 = vadd.f32 %v2452_v56, %v975_v61 }
 0x2bd   : > { %985 = vst.msk [vmem:[%s3512_s18 + $0x8] sm:$0xff] %vm940_vm4, %v983_v62 }
 0x2be PF: > { %v2814_v63 = vld [vmem:[%s3060_s0 + $0x4] ss:$8 sps:$4 sm:$0xff]   ;;  %v2816_v0 = vld [vmem:[%s3060_s0] ss:$8 sps:$4 sm:$0xff]   ;;  %v2922_v1 = vmov 0   ;;  %vm1049_vm5 = vcmask 523264   ;;  %v999_v11 = vlaneseq  ;;  %s3515_s3 = scalar_lea.vmem %s3468_s9, %s3053_s26  ;;  %s3517_s1 = scalar_lea.vmem %s3470_s11, %s3053_s26 }
 0x2bf   : > { %1085 = vmatprep.mubr.bf16.mxu1 %v2922_v1  ;;  %1053 = vmatprep.subr.bf16.mxu1 %v2814_v63  ;;  %v2817_v2 = vld [vmem:[%s3060_s0 + $0x14] ss:$8 sps:$4 sm:$0xff]   ;;  %v2819_v3 = vld [vmem:[%s3060_s0 + $0x10] ss:$8 sps:$4 sm:$0xff]   ;;  %v2820_v4 = vld [vmem:[%s3060_s0 + $0x24] ss:$8 sps:$4 sm:$0xff]   ;;  %s3518_s30 = scalar_lea.vmem %s3472_s13, %s3053_s26 }
 0x2c0   : > { %1054 = vmatpush1.bf16.msra.mxu1 %v2816_v0  ;;  %v2822_v5 = vld [vmem:[%s3060_s0 + $0x20] ss:$8 sps:$4 sm:$0xff]   ;;  %v2823_v6 = vld [vmem:[%s3060_s0 + $0x34] ss:$8 sps:$4 sm:$0xff]   ;;  %v2825_v7 = vld [vmem:[%s3060_s0 + $0x30] ss:$8 sps:$4 sm:$0xff]  }
 0x2c1   : > { %1055 = vmatprep.subr.bf16.mxu1 %v2817_v2  ;;  %s3513_s29 = sld [smem:[#allocation18_spill]]  ;;  %v3202_v12 = vshrl.u32 %v999_v11, 7  ;;  %v2923_v13 = vmov 0.0   ;;  %v997_v15 = vld [vmem:[%s3065_s5] sm:$0x3]  ;;  %vm2924_vm6 = vmmov 0  }
 0x2c2   : > { %2644 = vmatprep.subr.bf16.mxu0 %v2923_v13  ;;  %2646 = vmatprep.mubr.msk.bf16.mxu0 %vm2924_vm6, %v2923_v13  ;;  %s2925_s0 = smov 96   ;;  %s2926_s5 = smov 64   ;;  %vm1102_vm7 = vcmask 261120   ;;  %vm1171_vm8 = vcmask 1043456   ;;  %vm1155_vm9 = vcmask 64512   ;;  %vm1333_vm10 = vcmask 523520  }
 0x2c3   : > { %v1001_v14 = vsub.s32 0, %v3202_v12  ;;  %v1005_v17 = vsub.s32 1, %v3202_v12  ;;  %s2927_s23 = smov 32   ;;  %s3514_s18 = sld [smem:[#allocation12_spill]] }
 0x2c4   : > { %1056 = vmatpush1.bf16.msra.mxu1 %v2819_v3  ;;  %p2497_p5 = scmp.ne.s32.totalorder %s3047_s25, 1 }
 0x2c5   : > { %1057 = vmatprep.subr.bf16.mxu1 %v2820_v4  ;;  %v1002_v16 = vrot.slane %v997_v15, %v1001_v14  ;;  %v1006_v21 = vrot.slane %v997_v15, %v1005_v17  ;;  %s3520_s2 = sld [smem:[#allocation16_spill]] (!%p2497_p5)  ;;  %vm2929_vm11 = vmmov (!%p2497_p5), 0   ;;  %vm1997_vm12 = vcmp.lt.s32.totalorder (!%p2497_p5), %v3202_v12, 1 }
 0x2c6   : > { %vm2153_vm13 = vcmp.lt.s32.totalorder (!%p2497_p5), %v3202_v12, 7  ;;  %vm1973_vm14 = vcmp.eq.s32.totalorder (!%p2497_p5), %v3202_v12, 0  ;;  %vm1975_vm0 = vcmp.eq.s32.totalorder (!%p2497_p5), %v3202_v12, 7  ;;  %vm2265_vm2 = vcmask (!%p2497_p5), 1040384  }
 0x2c7   : > { %v3192_v8 = vld [vmem:[%s3513_s29] sm:$0xff]  ;;  %v3197_v9 = vld [vmem:[%s3513_s29 + $0x8] sm:$0xff]  ;;  %vm2267_vm3 = vcmask (!%p2497_p5), 254976  }
 0x2c8   : > { %1058 = vmatpush1.bf16.msra.mxu1 %v2822_v5  ;;  %v988_v10 = vpack.c.bf16 %v3197_v9, %v3192_v8 }
 0x2c9   : > { %1059 = vmatprep.subr.bf16.mxu1 %v2823_v6  ;;  %v2463_v42 = vld [vmem:[%s3514_s18] ss:$0 sm:$0xff]  ;;  %v2468_v57 = vld [vmem:[%s3514_s18 + $0x1] ss:$0 sm:$0xff] }
 0x2cb   : > { %s3521_s20 = smov (!%p2497_p5), %s3520_s2 }
 0x2cc   : > { %1060 = vmatpush1.bf16.msra.mxu1 %v2825_v7 }
 0x2cd   : > { %2632 = vmatprep.subr.bf16.mxu1 %v2923_v13 }
 0x2cf   : > { %2461 = vmatmul.mubr.msk.bf16.vlgmr.msra.gmra.mrb[0].mxu1 %vm1049_vm5, %v988_v10 }
 0x2d0   : > { %2634 = vmatprep.mubr.msk.bf16.mxu1 %vm2924_vm6, %v2923_v13 }
 0x3a2   : > { %v1087_v18 = vpop.f32.mrb[0].mxu1 }
 0x3a3   : > { %v1088_v19 = vadd.f32 %v1087_v18, %v1002_v16  ;;  %v1089_v20 = vpop.f32.mrb[1].mxu1 }
 0x3a4   : > { %v1091_v22 = vpop.f32.mrb[2].mxu1  ;;  %v1090_v29 = vadd.f32 %v1089_v20, %v1006_v21 }
 0x3a5   : > { %v1097_v23 = vpack.c.bf16 %v1088_v19, %v1088_v19  ;;  %v1092_v24 = vadd.f32 %v1091_v22, %v1002_v16  ;;  %v1093_v25 = vpop.f32.mrb[3].mxu1 }
 0x3a6   : > { %v3213_v26 = vadd.f32 %v1093_v25, %v1006_v21  ;;  %v3221_v33 = vpack.c.bf16 %v1090_v29, %v1090_v29 }
 0x3a7   : > { %1216 = vrot.lane.b32.xlu1 %v1097_v23, %s2925_s0  ;;  %1100 = vrot.lane.b32.xlu0 %v1097_v23, %s2926_s5  ;;  %v1336_v27 = vpack.c.bf16 %v1092_v24, %v1092_v24 }
 0x3a8   : > { %v1173_v35 = vsel %vm1171_vm8, %v3221_v33, 0 }
 0x3ab   : > { %1339 = vrot.lane.b32.xlu1 %v1336_v27, %s2926_s5  ;;  %1218 = vrot.lane.b32.xlu0 %v1097_v23, %s2927_s23 }
 0x3af   : > { %1452 = vrot.lane.b32.xlu1 %v1336_v27, %s2925_s0  ;;  %1454 = vrot.lane.b32.xlu0 %v1336_v27, %s2927_s23 }
 0x419   : > { %v1101_v28 = vpop.permute.xlu0 %1100  ;;  %v1217_v31 = vpop.permute.xlu1 %1216 }
 0x41a   : > { %v1107_v30 = vsel %vm1102_vm7, %v1101_v28, 0 }
 0x41b   : > { %2633 = vmatpush3.bf16.xpose.msra.mxu1 %v1107_v30 }
 0x41c   : > { %2638 = vmatprep.subr.bf16.mxu1 %v2923_v13 }
 0x41d   : > { %v1219_v32 = vpop.permute.xlu0 %1218  ;;  %v1340_v36 = vpop.permute.xlu1 %1339 }
 0x41e   : > { %v1224_v34 = vsel %vm1102_vm7, %v1219_v32, 0  ;;  %v1345_v37 = vsel %vm1102_vm7, %v1340_v36, 0  ;;  %v1337_v32 = vpack.c.bf16 %v3213_v26, %v3213_v26 }
 0x41f   : > { %2645 = vmatpush3.bf16.xpose.msra.mxu0 %v1224_v34 }
 0x420   : > { %2656 = vmatprep.subr.bf16.mxu0 %v2923_v13 }
 0x421   : > { %v1455_v38 = vpop.permute.xlu0 %1454  ;;  %v1453_v40 = vpop.permute.xlu1 %1452 }
 0x422   : > { %2635 = vmatmul.mubr.msk.bf16.vlgmr.msra.gmra.mrb[4].mxu1 %vm1102_vm7, %v1097_v23  ;;  %v1460_v39 = vsel %vm1102_vm7, %v1455_v38, 0 }
 0x423   : > { %2639 = vmatpush3.bf16.msra.mxu1 %v1173_v35  ;;  %2640 = vmatprep.mubr.msk.bf16.mxu1 %vm2924_vm6, %v2923_v13 }
 0x424   : > { %2650 = vmatprep.subr.bf16.mxu1 %v2923_v13 }
 0x426   : > { %2647 = vmatmul.mubr.msk.bf16.vlgmr.msra.gmra.mrb[0].mxu0 %vm1102_vm7, %v1217_v31 }
 0x427   : > { %2657 = vmatpush3.bf16.xpose.msra.mxu0 %v1345_v37  ;;  %2658 = vmatprep.mubr.msk.bf16.mxu0 %vm2924_vm6, %v2923_v13 }
 0x428   : > { %2668 = vmatprep.subr.bf16.mxu0 %v2923_v13 }
 0x42e   : > { %2659 = vmatmul.mubr.msk.bf16.vlgmr.msra.gmra.mrb[4].mxu0 %vm1102_vm7, %v1336_v27 }
 0x42f   : > { %2669 = vmatpush3.bf16.xpose.msra.mxu0 %v1460_v39  ;;  %2670 = vmatprep.mubr.msk.bf16.mxu0 %vm2924_vm6, %v2923_v13 }
 0x430   : > { %2680 = vmatprep.subr.bf16.mxu0 %v2923_v13 }
 0x436   : > { %2671 = vmatmul.mubr.msk.bf16.vlgmr.msra.gmra.mrb[8].mxu0 %vm1102_vm7, %v1453_v40 }
 0x437   : > { %2688 = vmatprep.mubr.msk.bf16.mxu0 %vm2924_vm6, %v2923_v13 }
 0x4f5   : > { %v1143_v41 = vpop.f32.mrb[4].mxu1 }
 0x4f6   : > { %v1149_v43 = vmul.f32 0.17677669, %v1143_v41  ;;  %v2636_v44 = vpop.f32.mrb[5].mxu1 }
 0x4f7   : > { %v1146_v45 = vpop.f32.mrb[6].mxu1 }
 0x4f8   : > { %v2637_v46 = vpop.f32.mrb[7].mxu1  ;;  %v1154_v47 = vadd.f32 %v2463_v42, %v1149_v43  ;;  %v1409_v45 = vsel %vm1171_vm8, %v1337_v32, 0 }
 0x4f9   : > { %v1260_v48 = vpop.f32.mrb[0].mxu0 }
 0x4fa   : > { %v1266_v49 = vmul.f32 0.17677669, %v1260_v48  ;;  %v2648_v50 = vpop.f32.mrb[1].mxu0  ;;  %v1156_v51 = vsel %vm1155_vm9, %v1154_v47, -inf }
 0x4fb   : > { %1157 = vmax.xlane.f32.xlu0 %v1156_v51  ;;  %v1263_v52 = vpop.f32.mrb[2].mxu0 }
 0x4fc   : > { %v2649_v53 = vpop.f32.mrb[3].mxu0  ;;  %v1267_v54 = vadd.f32 %v2463_v42, %v1266_v49 }
 0x4fd   : > { %v2826_v53 = vld [vmem:[%s3075_s19] sm:$0xff]  }
 0x4fe   : > { %v1268_v55 = vsel %vm1155_vm9, %v1267_v54, -inf  ;;  %2681 = vmatpush3.bf16.msra.mxu0 %v2826_v53  ;;  %v2479_v53 = vld [vmem:[%s3517_s1] ss:$0 sm:$0xff] }
 0x4ff   : > { %1269 = vmax.xlane.f32.xlu1 %v1268_v55  ;;  %2682 = vmatprep.subr.bf16.mxu0 %v2923_v13 }
 0x501   : > { %v1381_v56 = vpop.f32.mrb[4].mxu0 }
 0x502   : > { %v1387_v58 = vmul.f32 0.17677669, %v1381_v56  ;;  %v2660_v59 = vpop.f32.mrb[5].mxu0 }
 0x503   : > { %v1384_v60 = vpop.f32.mrb[6].mxu0 }
 0x504   : > { %v2661_v61 = vpop.f32.mrb[7].mxu0  ;;  %v1392_v62 = vadd.f32 %v2468_v57, %v1387_v58 }
 0x506   : > { %v1393_v63 = vsel %vm1155_vm9, %v1392_v62, -inf }
 0x507   : > { %1394 = vmax.xlane.f32.xlu0 %v1393_v63  ;;  %v2828_v63 = vld [vmem:[%s3075_s19 + $0x10] sm:$0xff]  }
 0x509   : > { %v1496_v0 = vpop.f32.mrb[8].mxu0 }
 0x50a   : > { %v1502_v1 = vmul.f32 0.17677669, %v1496_v0  ;;  %v2672_v2 = vpop.f32.mrb[9].mxu0  ;;  %v2829_v0 = vld [vmem:[%s3075_s19 + $0x18] sm:$0xff]  }
 0x50b   : > { %v1499_v3 = vpop.f32.mrb[10].mxu0 }
 0x50c   : > { %v2673_v4 = vpop.f32.mrb[11].mxu0  ;;  %v1503_v5 = vadd.f32 %v2468_v57, %v1502_v1 }
 0x50e   : > { %v1504_v6 = vsel %vm1155_vm9, %v1503_v5, -inf }
 0x50f   : > { %1505 = vmax.xlane.f32.xlu0 %v1504_v6 }
 0x588   : > { %v1158_v7 = vpop.xlane.xlu0 %1157 }
 0x589   : > { %v1159_v10 = vsub.f32 %v1154_v47, %v1158_v7 }
 0x58b   : > { %v1160_v11 = vmul.f32 1.442695, %v1159_v10 }
 0x58c   : > { %v1270_v14 = vpop.xlane.xlu1 %1269 }
 0x58d   : > { %2842 = vpow2.f32 %v1160_v11  ;;  %v1271_v15 = vsub.f32 %v1267_v54, %v1270_v14  ;;  %v2827_v54 = vld [vmem:[%s3075_s19 + $0x8] sm:$0xff]  }
 0x58e   : > { %2683 = vmatpush3.bf16.msra.mxu0 %v2827_v54 }
 0x58f   : > { %v1272_v16 = vmul.f32 1.442695, %v1271_v15  ;;  %2684 = vmatprep.subr.bf16.mxu0 %v2923_v13 }
 0x591   : > { %2844 = vpow2.f32 %v1272_v16 }
 0x592   : > { %2685 = vmatpush3.bf16.msra.mxu0 %v2828_v63  ;;  %v2839_v63 = vld [vmem:[%s3097_s8 + $0x28] sm:$0xff]  }
 0x593   : > { %2686 = vmatprep.subr.bf16.mxu0 %v2923_v13 }
 0x594   : > { %v1395_v17 = vpop.xlane.xlu0 %1394 }
 0x595   : > { %v1396_v18 = vsub.f32 %v1392_v62, %v1395_v17 }
 0x596   : > { %2687 = vmatpush3.bf16.msra.mxu0 %v2829_v0  ;;  %v2840_v0 = vld [vmem:[%s3097_s8 + $0x30] sm:$0xff]  }
 0x597   : > { %v2843_v19 = vpop.eup %2842  ;;  %v1397_v20 = vmul.f32 1.442695, %v1396_v18  ;;  %2704 = vmatprep.subr.bf16.mxu0 %v2923_v13  ;;  %v2472_v18 = vld [vmem:[%s3515_s3] ss:$0 sm:$0xff] }
 0x598   : > { %v1162_v21 = vsel %vm1155_vm9, %v2843_v19, 0.0 }
 0x599   : > { %2846 = vpow2.f32 %v1397_v20  ;;  %1163 = vadd.xlane.f32.xlu1 %v1162_v21 }
 0x59b   : > { %v2845_v22 = vpop.eup %2844 }
 0x59c   : > { %v1506_v23 = vpop.xlane.xlu0 %1505  ;;  %v1274_v24 = vsel %vm1155_vm9, %v2845_v22, 0.0 }
 0x59d   : > { %v1507_v25 = vsub.f32 %v1503_v5, %v1506_v23  ;;  %1275 = vadd.xlane.f32.xlu0 %v1274_v24 }
 0x59f   : > { %v1508_v27 = vmul.f32 1.442695, %v1507_v25 }
 0x5a1   : > { %2848 = vpow2.f32 %v1508_v27 }
 0x5a3   : > { %v2847_v28 = vpop.eup %2846 }
 0x5a4   : > { %v1399_v29 = vsel %vm1155_vm9, %v2847_v28, 0.0 }
 0x5a5   : > { %1400 = vadd.xlane.f32.xlu1 %v1399_v29 }
 0x5ab   : > { %v2849_v30 = vpop.eup %2848 }
 0x5ac   : > { %v1510_v31 = vsel %vm1155_vm9, %v2849_v30, 0.0 }
 0x5ad   : > { %1511 = vadd.xlane.f32.xlu0 %v1510_v31 }
 0x5b6   : > { %1281 = vrot.lane.b32.xlu1 %v3221_v33, %s2925_s0 }
 0x5c3   : > { %1517 = vrot.lane.b32.xlu0 %v1337_v32, %s2925_s0  ;;  %s3519_s0 = scalar_lea.vmem %s3476_s17, %s3053_s26 }
 0x626   : > { %v1164_v34 = vpop.xlane.xlu1 %1163 }
 0x627   : > { %2850 = vrcp.f32 %v1164_v34 }
 0x62a   : > { %v1276_v35 = vpop.xlane.xlu0 %1275 }
 0x62b   : > { %2852 = vrcp.f32 %v1276_v35 }
 0x631   : > { %v2851_v36 = vpop.eup %2850 }
 0x632   : > { %v1166_v37 = vmul.f32 %v2851_v36, %v2843_v19  ;;  %v1401_v38 = vpop.xlane.xlu1 %1400 }
 0x633   : > { %2854 = vrcp.f32 %v1401_v38 }
 0x634   : > { %v1167_v39 = vpack.c.bf16 %v1166_v37, %v1166_v37 }
 0x635   : > { %v2853_v40 = vpop.eup %2852 }
 0x636   : > { %2641 = vmatmul.mubr.msk.bf16.vlgmr.msra.gmra.mrb[8].mxu1 %vm1155_vm9, %v1167_v39  ;;  %v1282_v41 = vpop.permute.xlu1 %1281  ;;  %v1278_v26 = vmul.f32 %v2853_v40, %v2845_v22  ;;  %v2830_v39 = vld [vmem:[%s3088_s7] sm:$0xff]   ;;  %v2831_v40 = vld [vmem:[%s3088_s7 + $0x8] sm:$0xff]  }
 0x637   : > { %v1287_v33 = vsel %vm1171_vm8, %v1282_v41, 0  ;;  %2652 = vmatprep.mubr.msk.bf16.mxu1 %vm2924_vm6, %v2923_v13  ;;  %v2832_v41 = vld [vmem:[%s3088_s7 + $0x10] sm:$0xff]  }
 0x638   : > { %2651 = vmatpush3.bf16.msra.mxu1 %v1287_v33  ;;  %v1279_v43 = vpack.c.bf16 %v1278_v26, %v1278_v26  ;;  %v2833_v33 = vld [vmem:[%s3088_s7 + $0x18] sm:$0xff]   ;;  %s3516_s7 = scalar_lea.vmem %s3469_s10, %s3053_s26 }
 0x639   : > { %2662 = vmatprep.subr.bf16.mxu1 %v2923_v13 }
 0x63a   : > { %v1512_v42 = vpop.xlane.xlu0 %1511 }
 0x63b   : > { %2856 = vrcp.f32 %v1512_v42 }
 0x63d   : > { %v2855_v44 = vpop.eup %2854 }
 0x63e   : > { %2653 = vmatmul.mubr.msk.bf16.vlgmr.msra.gmra.mrb[12].mxu1 %vm1155_vm9, %v1279_v43  ;;  %v1403_v46 = vmul.f32 %v2855_v44, %v2847_v28  ;;  %v1518_v47 = vpop.permute.xlu0 %1517 }
 0x63f   : > { %2663 = vmatpush3.bf16.msra.mxu1 %v1409_v45  ;;  %2664 = vmatprep.mubr.msk.bf16.mxu1 %vm2924_vm6, %v2923_v13  ;;  %v1523_v50 = vsel %vm1171_vm8, %v1518_v47, 0 }
 0x640   : > { %2674 = vmatprep.subr.bf16.mxu1 %v2923_v13  ;;  %v1404_v48 = vpack.c.bf16 %v1403_v46, %v1403_v46 }
 0x645   : > { %v2857_v49 = vpop.eup %2856 }
 0x646   : > { %2665 = vmatmul.mubr.msk.bf16.vlgmr.msra.gmra.mrb[16].mxu1 %vm1155_vm9, %v1404_v48  ;;  %v1514_v51 = vmul.f32 %v2857_v49, %v2849_v30  ;;  %v2478_v49 = vld [vmem:[%s3516_s7] ss:$0 sm:$0xff] }
 0x647   : > { %2675 = vmatpush3.bf16.msra.mxu1 %v1523_v50  ;;  %2676 = vmatprep.mubr.msk.bf16.mxu1 %vm2924_vm6, %v2923_v13 }
 0x648   : > { %2692 = vmatprep.subr.bf16.mxu1 %v2923_v13  ;;  %v1515_v52 = vpack.c.bf16 %v1514_v51, %v1514_v51 }
 0x64e   : > { %2677 = vmatmul.mubr.msk.bf16.vlgmr.msra.gmra.mrb[20].mxu1 %vm1155_vm9, %v1515_v52 }
 0x64f   : > { %2700 = vmatprep.mubr.msk.bf16.mxu1 %vm2924_vm6, %v2923_v13  ;;  %2693 = vmatpush3.bf16.msra.mxu1 %v2830_v39 }
 0x650   : > { %2694 = vmatprep.subr.bf16.mxu1 %v2923_v13 }
 0x653   : > { %2695 = vmatpush3.bf16.msra.mxu1 %v2831_v40 }
 0x654   : > { %2696 = vmatprep.subr.bf16.mxu1 %v2923_v13 }
 0x657   : > { %2697 = vmatpush3.bf16.msra.mxu1 %v2832_v41 }
 0x658   : > { %2698 = vmatprep.subr.bf16.mxu1 %v2923_v13 }
 0x65b   : > { %2699 = vmatpush3.bf16.msra.mxu1 %v2833_v33 }
 0x709   : > { %v1209_v55 = vpop.f32.mrb[8].mxu1 }
 0x70a   : > { %1215 = vst.msk [vmem:[#allocation2] sm:$0xff] %vm1102_vm7, %v1209_v55  ;;  %v2642_v56 = vpop.f32.mrb[9].mxu1 }
 0x70b   : > { %v1212_v57 = vpop.f32.mrb[10].mxu1 }
 0x70c   : > { %v2643_v58 = vpop.f32.mrb[11].mxu1 }
 0x70d   : > { %v2834_v58 = vld [vmem:[%s3097_s8] sm:$0xff]  }
 0x711   : > { %v1323_v59 = vpop.f32.mrb[12].mxu1 }
 0x712   : > { %1330 = vrot.lane.b32.xlu1 %v1323_v59, %s2927_s23  ;;  %v2654_v60 = vpop.f32.mrb[13].mxu1  ;;  %v2835_v59 = vld [vmem:[%s3097_s8 + $0x8] sm:$0xff]  }
 0x713   : > { %v1326_v61 = vpop.f32.mrb[14].mxu1  ;;  %v2836_v60 = vld [vmem:[%s3097_s8 + $0x10] sm:$0xff]  }
 0x714   : > { %v2655_v62 = vpop.f32.mrb[15].mxu1  ;;  %v2837_v61 = vld [vmem:[%s3097_s8 + $0x18] sm:$0xff]  }
 0x715   : > { %v2838_v62 = vld [vmem:[%s3097_s8 + $0x20] sm:$0xff]  }
 0x719   : > { %v1445_v1 = vpop.f32.mrb[16].mxu1 }
 0x71a   : > { %1451 = vst.msk [vmem:[#allocation2 + $0x8] sm:$0xff] %vm1102_vm7, %v1445_v1  ;;  %v2666_v2 = vpop.f32.mrb[17].mxu1  ;;  %v2841_v1 = vld [vmem:[%s3097_s8 + $0x38] sm:$0xff]  }
 0x71b   : > { %v1448_v3 = vpop.f32.mrb[18].mxu1  ;;  %v2480_v2 = vld [vmem:[%s3518_s30] ss:$0 sm:$0xff] }
 0x71c   : > { %v2667_v4 = vpop.f32.mrb[19].mxu1 }
 0x721   : > { %v1559_v5 = vpop.f32.mrb[20].mxu1 }
 0x722   : > { %1566 = vrot.lane.b32.xlu1 %v1559_v5, %s2927_s23  ;;  %v2678_v6 = vpop.f32.mrb[21].mxu1 }
 0x723   : > { %v1562_v7 = vpop.f32.mrb[22].mxu1 }
 0x724   : > { %v2679_v10 = vpop.f32.mrb[23].mxu1 }
 0x784   : > { %v1331_v11 = vpop.permute.xlu1 %1330 }
 0x785   : > { %1334 = vst.msk [vmem:[#allocation2] sm:$0xff] %vm1333_vm10, %v1331_v11 }
 0x78c   : > { %v1570_v15 = vld [vmem:[#allocation2] sm:$0xff] }
 0x794   : > { %v1567_v14 = vpop.permute.xlu1 %1566 }
 0x795   : > { %1569 = vst.msk [vmem:[#allocation2 + $0x8] sm:$0xff] %vm1333_vm10, %v1567_v14 }
 0x79c   : > { %v1571_v16 = vld [vmem:[#allocation2 + $0x8] sm:$0xff] }
 0x79d   : > { %v1572_v17 = vpack.c.bf16 %v1571_v16, %v1570_v15 }
 0x79f   : > { %2689 = vmatmul.mubr.msk.bf16.vlgmr.msra.gmra.mrb[12].mxu0 %vm1049_vm5, %v1572_v17 }
 0x7a0   : > { %2720 = vmatprep.mubr.msk.bf16.mxu0 %vm2924_vm6, %v2923_v13  ;;  %2705 = vmatpush3.bf16.msra.mxu0 %v2834_v58 }
 0x7a1   : > { %2706 = vmatprep.subr.bf16.mxu0 %v2923_v13 }
 0x7a4   : > { %2707 = vmatpush3.bf16.msra.mxu0 %v2835_v59 }
 0x7a5   : > { %2708 = vmatprep.subr.bf16.mxu0 %v2923_v13 }
 0x7a8   : > { %2709 = vmatpush3.bf16.msra.mxu0 %v2836_v60  ;;  %v2496_v60 = vld [vmem:[%s3519_s0] ss:$0 sm:$0xff]  ;;  %s3522_s0 = sld [smem:[#allocation17_spill]] (!%p2497_p5) }
 0x7a9   : > { %2710 = vmatprep.subr.bf16.mxu0 %v2923_v13 }
 0x7ac   : > { %2711 = vmatpush3.bf16.msra.mxu0 %v2837_v61 }
 0x7ad   : > { %2712 = vmatprep.subr.bf16.mxu0 %v2923_v13 }
 0x7b0   : > { %2713 = vmatpush3.bf16.msra.mxu0 %v2838_v62 }
 0x7b1   : > { %2714 = vmatprep.subr.bf16.mxu0 %v2923_v13 }
 0x7b4   : > { %2715 = vmatpush3.bf16.msra.mxu0 %v2839_v63 }
 0x7b5   : > { %2716 = vmatprep.subr.bf16.mxu0 %v2923_v13 }
 0x7b8   : > { %2717 = vmatpush3.bf16.msra.mxu0 %v2840_v0 }
 0x7b9   : > { %2718 = vmatprep.subr.bf16.mxu0 %v2923_v13 }
 0x7bc   : > { %2719 = vmatpush3.bf16.msra.mxu0 %v2841_v1 }
 0x872   : > { %v1649_v19 = vpop.f32.mrb[12].mxu0 }
 0x873   : > { %v1650_v20 = vadd.f32 %v2472_v18, %v1649_v19  ;;  %v2690_v21 = vpop.f32.mrb[13].mxu0 }
 0x874   : > { %v1652_v22 = vpop.f32.mrb[14].mxu0 }
 0x875   : > { %v1653_v23 = vadd.f32 %v2472_v18, %v1652_v22  ;;  %v2691_v24 = vpop.f32.mrb[15].mxu0  ;;  %v1656_v25 = vadd.f32 %v1650_v20, %v3192_v8 }
 0x877   : > { %v1660_v27 = vsel %vm1049_vm5, %v1656_v25, 0.0  ;;  %v1657_v28 = vadd.f32 %v1653_v23, %v3197_v9 }
 0x878   : > { %1661 = vadd.xlane.f32.xlu0 %v1660_v27 }
 0x879   : > { %v1663_v29 = vsel %vm1049_vm5, %v1657_v28, 0.0 }
 0x87a   : > { %1664 = vadd.xlane.f32.xlu1 %v1663_v29 }
 0x905   : > { %v1662_v30 = vpop.xlane.xlu0 %1661 }
 0x906   : > { %v1667_v31 = vmul.f32 0.015625, %v1662_v30 }
 0x907   : > { %v1665_v32 = vpop.xlane.xlu1 %1664 }
 0x908   : > { %v1669_v34 = vsub.f32 %v1656_v25, %v1667_v31  ;;  %v1668_v35 = vmul.f32 0.015625, %v1665_v32  ;;  %v2486_v32 = vld [vmem:[%s809_s28] ss:$0 sm:$0xff] }
 0x90a   : > { %v1670_v36 = vsub.f32 %v1657_v28, %v1668_v35  ;;  %v1671_v37 = vmul.f32 %v1669_v34, %v1669_v34 }
 0x90c   : > { %v1673_v8 = vsel %vm1049_vm5, %v1671_v37, 0.0  ;;  %v1672_v38 = vmul.f32 %v1670_v36, %v1670_v36 }
 0x90d   : > { %1674 = vadd.xlane.f32.xlu0 %v1673_v8 }
 0x90e   : > { %v1676_v9 = vsel %vm1049_vm5, %v1672_v38, 0.0 }
 0x911   : > { %1677 = vadd.xlane.f32.xlu0 %v1676_v9 }
 0x99a   : > { %v1675_v26 = vpop.xlane.xlu0 %1674 }
 0x99b   : > { %v1679_v42 = vmul.f32 0.015625, %v1675_v26 }
 0x99d   : > { %v1681_v43 = vadd.f32 1e-12, %v1679_v42 }
 0x99e   : > { %v1678_v44 = vpop.xlane.xlu0 %1677 }
 0x99f   : > { %2858 = vrsqrt.f32 %v1681_v43  ;;  %v1680_v45 = vmul.f32 0.015625, %v1678_v44 }
 0x9a1   : > { %v1682_v46 = vadd.f32 1e-12, %v1680_v45 }
 0x9a3   : > { %2860 = vrsqrt.f32 %v1682_v46 }
 0x9a9   : > { %v2859_v47 = vpop.eup %2858 }
 0x9aa   : > { %v1685_v48 = vmul.f32 %v2859_v47, %v1669_v34 }
 0x9ac   : > { %v1693_v51 = vmul.f32 %v2478_v49, %v1685_v48 }
 0x9ad   : > { %v2861_v50 = vpop.eup %2860 }
 0x9ae   : > { %v1686_v52 = vmul.f32 %v2861_v50, %v1670_v36  ;;  %v3324_v55 = vadd.f32 %v2479_v53, %v1693_v51 }
 0x9b0   : > { %v1694_v54 = vmul.f32 %v2478_v49, %v1686_v52 }
 0x9b2   : > { %v3326_v56 = vadd.f32 %v2479_v53, %v1694_v54 }
 0x9b4   : > { %v1703_v57 = vpack.c.bf16 %v3326_v56, %v3324_v55 }
 0x9b6   : > { %2701 = vmatmul.mubr.msk.bf16.vlgmr.msra.gmra.mrb[24].mxu1 %vm1049_vm5, %v1703_v57  ;;  %v2495_v57 = vld [vmem:[%s812_s4] ss:$0 sm:$0xff] }
 0xa89   : > { %v1780_v3 = vpop.f32.mrb[24].mxu1 }
 0xa8a   : > { %v1781_v4 = vadd.f32 %v2480_v2, %v1780_v3  ;;  %v2702_v5 = vpop.f32.mrb[25].mxu1  ;;  %v2928_v3 = vmov (!%p2497_p5), 0.0  }
 0xa8b   : > { %v1783_v6 = vpop.f32.mrb[26].mxu1  ;;  %2724 = vmatprep.subr.bf16.mxu0 (!%p2497_p5), %v2928_v3  ;;  %2736 = vmatprep.subr.bf16.mxu1 (!%p2497_p5), %v2928_v3  ;;  %v2872_v5 = vld [vmem:[%s3521_s20 + $0x8] sm:$0xff] (!%p2497_p5)  }
 0xa8c   : > { %v1787_v7 = vmul.f32 %v1781_v4, %v1781_v4  ;;  %v1784_v10 = vadd.f32 %v2480_v2, %v1783_v6  ;;  %v2703_v11 = vpop.f32.mrb[27].mxu1  ;;  %v2870_v2 = vld [vmem:[%s3520_s2] sm:$0xff] (!%p2497_p5)   ;;  %v2873_v6 = vld [vmem:[%s3521_s20 + $0x28] sm:$0xff] (!%p2497_p5)   ;;  %2744 = vmatprep.mubr.msk.bf16.mxu1 (!%p2497_p5), %vm2929_vm11, %v2928_v3 }
 0xa8e   : > { %v1789_v14 = vmul.f32 %v1787_v7, %v1781_v4  ;;  %v1788_v15 = vmul.f32 %v1784_v10, %v1784_v10 }
 0xa90   : > { %v1791_v16 = vmul.f32 0.044715, %v1789_v14  ;;  %v1790_v17 = vmul.f32 %v1788_v15, %v1784_v10  ;;  %v2875_v14 = vld [vmem:[%s3521_s20 + $0x30] sm:$0xff] (!%p2497_p5)   ;;  %v2876_v15 = vld [vmem:[%s3521_s20 + $0x18] sm:$0xff] (!%p2497_p5)  }
 0xa92   : > { %v1793_v18 = vadd.f32 %v1791_v16, %v1781_v4  ;;  %v1792_v13 = vmul.f32 0.044715, %v1790_v17 }
 0xa94   : > { %v1795_v19 = vmul.f32 0.7978846, %v1793_v18  ;;  %v1794_v20 = vadd.f32 %v1792_v13, %v1784_v10  ;;  %v2877_v18 = vld [vmem:[%s3521_s20 + $0x38] sm:$0xff] (!%p2497_p5)  }
 0xa96   : > { %2862 = vtanh.f32 %v1795_v19  ;;  %v1796_v21 = vmul.f32 0.7978846, %v1794_v20  ;;  %v2878_v20 = vld [vmem:[%s3521_s20 + $0x40] sm:$0xff] (!%p2497_p5)  }
 0xa98   : > { %2864 = vtanh.f32 %v1796_v21  ;;  %v2879_v21 = vld [vmem:[%s3521_s20 + $0x48] sm:$0xff] (!%p2497_p5)  }
 0xaa0   : > { %v2863_v22 = vpop.eup %2862 }
 0xaa1   : > { %v1799_v23 = vadd.f32 1.0, %v2863_v22  ;;  %v2880_v22 = vld [vmem:[%s3521_s20 + $0x50] sm:$0xff] (!%p2497_p5)  }
 0xaa2   : > { %v2865_v24 = vpop.eup %2864 }
 0xaa3   : > { %v1801_v25 = vmul.f32 0.5, %v1799_v23  ;;  %v1800_v27 = vadd.f32 1.0, %v2865_v24 }
 0xaa5   : > { %v1802_v28 = vmul.f32 0.5, %v1800_v27  ;;  %v1803_v29 = vmul.f32 %v1801_v25, %v1781_v4  ;;  %v2871_v4 = vld [vmem:[%s3521_s20 + $0x20] sm:$0xff] (!%p2497_p5)   ;;  %v2881_v25 = vld [vmem:[%s3521_s20 + $0x58] sm:$0xff] (!%p2497_p5)  }
 0xaa6   : > { %2737 = vmatpush3.bf16.msra.mxu1 (!%p2497_p5), %v2871_v4 }
 0xaa7   : > { %v1804_v30 = vmul.f32 %v1802_v28, %v1784_v10  ;;  %2738 = vmatprep.subr.bf16.mxu1 (!%p2497_p5), %v2928_v3  ;;  %v2874_v10 = vld [vmem:[%s3521_s20 + $0x10] sm:$0xff] (!%p2497_p5)  }
 0xaa9   : > { %v1805_v31 = vpack.c.bf16 %v1804_v30, %v1803_v29  ;;  %v1972_v30 = vadd.s32 (!%p2497_p5), 8, %v3202_v12 }
 0xaaa   : > { %2739 = vmatpush3.bf16.msra.mxu1 (!%p2497_p5), %v2873_v6 }
 0xaab   : > { %2721 = vmatmul.mubr.bf16.vlgmr.msra.gmra.mrb[16].mxu0 %v1805_v31  ;;  %2740 = vmatprep.subr.bf16.mxu1 (!%p2497_p5), %v2928_v3  ;;  %vm1978_vm15 = vcmp.eq.s32.totalorder (!%p2497_p5), %v1972_v30, 8  ;;  %vm1982_vm1 = vcmp.eq.s32.totalorder (!%p2497_p5), %v1972_v30, 15 }
 0xaac   : > { %2725 = vmatpush3.bf16.msra.mxu0 (!%p2497_p5), %v2870_v2  ;;  %2732 = vmatprep.mubr.msk.bf16.mxu0 (!%p2497_p5), %vm2929_vm11, %v2928_v3 }
 0xaad   : > { %2726 = vmatprep.subr.bf16.mxu0 (!%p2497_p5), %v2928_v3 }
 0xaae   : > { %2741 = vmatpush3.bf16.msra.mxu1 (!%p2497_p5), %v2875_v14 }
 0xaaf   : > { %2742 = vmatprep.subr.bf16.mxu1 (!%p2497_p5), %v2928_v3 }
 0xab0   : > { %2727 = vmatpush3.bf16.msra.mxu0 (!%p2497_p5), %v2872_v5 }
 0xab1   : > { %2728 = vmatprep.subr.bf16.mxu0 (!%p2497_p5), %v2928_v3 }
 0xab2   : > { %2743 = vmatpush3.bf16.msra.mxu1 (!%p2497_p5), %v2877_v18 }
 0xab4   : > { %2729 = vmatpush3.bf16.msra.mxu0 (!%p2497_p5), %v2874_v10 }
 0xab5   : > { %2730 = vmatprep.subr.bf16.mxu0 (!%p2497_p5), %v2928_v3 }
 0xab8   : > { %2731 = vmatpush3.bf16.msra.mxu0 (!%p2497_p5), %v2876_v15 }
 0xab9   : > { %2748 = vmatprep.subr.bf16.mxu0 (!%p2497_p5), %v2928_v3 }
 0xb7e   : > { %v1911_v34 = vpop.f32.mrb[16].mxu0 }
 0xb7f   : > { %v1912_v35 = vadd.f32 %v2486_v32, %v1911_v34  ;;  %v2722_v36 = vpop.f32.mrb[17].mxu0 }
 0xb80   : > { %v1914_v37 = vpop.f32.mrb[18].mxu0 }
 0xb81   : > { %v1915_v8 = vadd.f32 %v2486_v32, %v1914_v37  ;;  %v2723_v38 = vpop.f32.mrb[19].mxu0  ;;  %v1918_v9 = vadd.f32 %v1912_v35, %v3324_v55 }
 0xb83   : > { %v1922_v39 = vsel %vm1049_vm5, %v1918_v9, 0.0  ;;  %v1919_v40 = vadd.f32 %v1915_v8, %v3326_v56 }
 0xb84   : > { %1923 = vadd.xlane.f32.xlu1 %v1922_v39 }
 0xb85   : > { %v1925_v41 = vsel %vm1049_vm5, %v1919_v40, 0.0 }
 0xb86   : > { %1926 = vadd.xlane.f32.xlu0 %v1925_v41 }
 0xc11   : > { %v1924_v33 = vpop.xlane.xlu1 %1923 }
 0xc12   : > { %v1928_v26 = vmul.f32 0.015625, %v1924_v33 }
 0xc13   : > { %v1927_v42 = vpop.xlane.xlu0 %1926 }
 0xc14   : > { %v1930_v43 = vsub.f32 %v1918_v9, %v1928_v26  ;;  %v1929_v44 = vmul.f32 0.015625, %v1927_v42  ;;  %v2529_v42 = vld [vmem:[%s3522_s0] ss:$0 sm:$0xff] (!%p2497_p5) }
 0xc16   : > { %v1931_v45 = vsub.f32 %v1919_v40, %v1929_v44  ;;  %v1932_v46 = vmul.f32 %v1930_v43, %v1930_v43 }
 0xc18   : > { %v1934_v47 = vsel %vm1049_vm5, %v1932_v46, 0.0  ;;  %v1933_v48 = vmul.f32 %v1931_v45, %v1931_v45 }
 0xc19   : > { %1935 = vadd.xlane.f32.xlu1 %v1934_v47 }
 0xc1a   : > { %v1937_v49 = vsel %vm1049_vm5, %v1933_v48, 0.0 }
 0xc1b   : > { %1938 = vadd.xlane.f32.xlu0 %v1937_v49 }
 0xca6   : > { %v1936_v50 = vpop.xlane.xlu1 %1935 }
 0xca7   : > { %v1940_v51 = vmul.f32 0.015625, %v1936_v50 }
 0xca8   : > { %v1939_v52 = vpop.xlane.xlu0 %1938 }
 0xca9   : > { %v1942_v53 = vadd.f32 1e-12, %v1940_v51  ;;  %v1941_v54 = vmul.f32 0.015625, %v1939_v52 }
 0xcab   : > { %2866 = vrsqrt.f32 %v1942_v53  ;;  %v1943_v55 = vadd.f32 1e-12, %v1941_v54 }
 0xcad   : > { %2868 = vrsqrt.f32 %v1943_v55 }
 0xcb5   : > { %v2867_v56 = vpop.eup %2866 }
 0xcb6   : > { %v1946_v58 = vmul.f32 %v2867_v56, %v1930_v43 }
 0xcb7   : > { %v2869_v59 = vpop.eup %2868 }
 0xcb8   : > { %v1954_v61 = vmul.f32 %v2495_v57, %v1946_v58  ;;  %v1947_v62 = vmul.f32 %v2869_v59, %v1931_v45  ;;  %1969 = sbr.rel (%p2497_p5) target bundleno = 3517 (0xdbd), region = 108 }
 0xcba   : > { %v1962_v63 = vadd.f32 %v2496_v60, %v1954_v61  ;;  %v1955_v0 = vmul.f32 %v2495_v57, %v1947_v62 }
 0xcbc   : > { %1964 = vst.msk [vmem:[%s3513_s29] sm:$0xff] %vm1049_vm5, %v1962_v63  ;;  %v1963_v1 = vadd.f32 %v2496_v60, %v1955_v0  ;;  %v1995_v7 = vrot.slane (!%p2497_p5), %v1962_v63, 7  ;;  %v2151_v23 = vrot.slane (!%p2497_p5), %v1962_v63, 1 }
 0xcbe   : > { %1965 = vst.msk [vmem:[%s3513_s29 + $0x8] sm:$0xff] %vm1049_vm5, %v1963_v1  ;;  %v1996_v11 = vrot.slane (!%p2497_p5), %v1963_v1, 7  ;;  %v1985_v19 = vpack.c.bf16 (!%p2497_p5), %v1963_v1, %v1962_v63  ;;  %v2152_v24 = vrot.slane (!%p2497_p5), %v1963_v1, 1 }
 0xcc0   : > { %v1998_v16 = vsel %vm1997_vm12, %v1995_v7, %v1996_v11  ;;  %v1999_v17 = vsel %vm1997_vm12, %v1996_v11, %v1995_v7  ;;  %2745 = vmatmul.mubr.msk.bf16.vlgmr.msra.gmra.mrb[0].mxu1 %vm1049_vm5, %v1985_v19  ;;  %v2154_v27 = vsel %vm2153_vm13, %v2151_v23, %v2152_v24  ;;  %v2155_v28 = vsel %vm2153_vm13, %v2152_v24, %v2151_v23 }
 0xcc1   : > { %v2000_v13 = vpack.c.bf16 %v1998_v16, %v1999_v17  ;;  %v2156_v29 = vpack.c.bf16 %v2155_v28, %v2154_v27 }
 0xcc3   : > { %2733 = vmatmul.mubr.msk.bf16.vlgmr.msra.gmra.mrb[0].mxu0 %vm1049_vm5, %v2000_v13 }
 0xcc4   : > { %2749 = vmatpush3.bf16.msra.mxu0 %v2878_v20  ;;  %2756 = vmatprep.mubr.msk.bf16.mxu0 %vm2929_vm11, %v2928_v3 }
 0xcc5   : > { %2750 = vmatprep.subr.bf16.mxu0 %v2928_v3 }
 0xcc8   : > { %2751 = vmatpush3.bf16.msra.mxu0 %v2879_v21 }
 0xcc9   : > { %2752 = vmatprep.subr.bf16.mxu0 %v2928_v3 }
 0xccc   : > { %2753 = vmatpush3.bf16.msra.mxu0 %v2880_v22 }
 0xccd   : > { %2754 = vmatprep.subr.bf16.mxu0 %v2928_v3 }
 0xcd0   : > { %2755 = vmatpush3.bf16.msra.mxu0 %v2881_v25 }
 0xcd3   : > { %2757 = vmatmul.mubr.msk.bf16.vlgmr.msra.gmra.mrb[4].mxu0 %vm1049_vm5, %v2156_v29 }
 0xd93   : > { %v2144_v35 = vpop.f32.mrb[0].mxu1 }
 0xd94   : > { %v2746_v8 = vpop.f32.mrb[1].mxu1 }
 0xd95   : > { %v2147_v39 = vpop.f32.mrb[2].mxu1 }
 0xd96   : > { %v2070_v31 = vpop.f32.mrb[0].mxu0  ;;  %v2747_v41 = vpop.f32.mrb[3].mxu1 }
 0xd97   : > { %v2081_v32 = vsel %vm1973_vm14, 0.0, %v2070_v31  ;;  %v2734_v34 = vpop.f32.mrb[1].mxu0 }
 0xd98   : > { %v2145_v36 = vadd.f32 %v2144_v35, %v2081_v32  ;;  %v2073_v37 = vpop.f32.mrb[2].mxu0 }
 0xd99   : > { %v2082_v38 = vsel %vm1978_vm15, 0.0, %v2073_v37  ;;  %v2735_v9 = vpop.f32.mrb[3].mxu0 }
 0xd9a   : > { %v2148_v40 = vadd.f32 %v2147_v39, %v2082_v38 }
 0xda6   : > { %v2227_v33 = vpop.f32.mrb[4].mxu0 }
 0xda7   : > { %v2238_v26 = vsel %vm1975_vm0, 0.0, %v2227_v33  ;;  %v2758_v43 = vpop.f32.mrb[5].mxu0 }
 0xda8   : > { %v2240_v44 = vadd.f32 %v2238_v26, %v2145_v36  ;;  %v2230_v45 = vpop.f32.mrb[6].mxu0 }
 0xda9   : > { %v2239_v46 = vsel %vm1982_vm1, 0.0, %v2230_v45  ;;  %v2759_v47 = vpop.f32.mrb[7].mxu0 }
 0xdaa   : > { %v2249_v48 = vadd.f32 %v2529_v42, %v2240_v44  ;;  %v2241_v49 = vadd.f32 %v2239_v46, %v2148_v40 }
 0xdac   : > { %v2251_v50 = vsel %vm1102_vm7, %v2249_v48, -inf  ;;  %v2250_v51 = vadd.f32 %v2529_v42, %v2241_v49 }
 0xdad   : > { %v2252_v52 = vrot.slane %v2251_v50, 4 }
 0xdae   : > { %v2258_v12 = vsel %vm1102_vm7, %v2250_v51, -inf }
 0xdaf   : > { %v2253_v53 = vmax.f32 %v2251_v50, %v2252_v52  ;;  %v2259_v54 = vrot.slane %v2258_v12, 4 }
 0xdb1   : > { %v2254_v55 = vrot.slane %v2253_v53, 2  ;;  %v2260_v56 = vmax.f32 %v2258_v12, %v2259_v54 }
 0xdb3   : > { %v2255_v57 = vmax.f32 %v2253_v53, %v2254_v55  ;;  %v2261_v58 = vrot.slane %v2260_v56, 2 }
 0xdb5   : > { %v2256_v59 = vrot.slane %v2255_v57, 1  ;;  %v2262_v60 = vmax.f32 %v2260_v56, %v2261_v58 }
 0xdb7   : > { %v2263_v61 = vrot.slane %v2262_v60, 1  ;;  %v2257_v62 = vmax.f32 %v2255_v57, %v2256_v59 }
 0xdb9   : > { %v2264_v63 = vmax.f32 %v2262_v60, %v2263_v61 }
 0xdbb   : > { %v2266_v0 = vsel %vm2265_vm2, %v2257_v62, %v2264_v63 }
 0xdbc   : > { %2268 = vst.msk [vmem:[#allocation3] sm:$0x3] %vm2267_vm3, %v2266_v0 }
 0xdbd PF: > { %p2788_p6 = scmp.eq.s32.totalorder %s3047_s25, 1  ;;  %s2930_s7 = smov [#allocation3]  }
 0xdbe   : > { %s2279_s5 = sshll.u32 %s2930_s7, 4  ;;  %s2280_s5 = int_to_ptr.vmem [resolvable:$true] %s2279_s5 }
 0xdbf   : > { %s2882_s23 = scalar_lea.vmem %s2280_s5, 32  ;;  %p2889_p10 = scmp.lt.s32.totalorder %s2280_s5, %s2280_s5 }
 0xdc0   : > { %p2883_p7 = scmp.ne.s32.totalorder %s2280_s5, %s2882_s23  ;;  %p2890_p11 = scmp.lt.s32.totalorder %s2882_s23, %s2882_s23 }
 0xdc2   : > { %p2884_p8 = pnand %p2883_p7, %p2788_p6  ;;  %p2891_p12 = por %p2890_p11, %p2889_p10 }
 0xdc4   : > { %p2885_p9 = pneg %p2884_p8 }
 0xdc6   : > { %p2892_p13 = pnand %p2891_p12, %p2885_p9 }
 0xdc8   : > { %2895 = shalt.err (!%p2892_p13)
}
 0xdc9   : > { %s3523_s1 = sld [smem:[#allocation19_spill]] }
 0xdcf   : > { %s2896_s2 = scalar_lea.hbm %s3523_s1, 32 }
 0xdd0   : > { %p2897_p0 = scmp.ne.s32.totalorder %s3523_s1, %s2896_s2  ;;  %p2902_p3 = scmp.lt.u32.totalorder %s2896_s2, %s3523_s1 }
 0xdd2   : > { %p2898_p1 = pnand %p2897_p0, %p2788_p6 }
 0xdd4   : > { %p2899_p2 = pneg %p2898_p1 }
 0xdd6   : > { %p2904_p4 = pnand %p2902_p3, %p2899_p2 }
 0xdd8   : > { %2907 = shalt.err (!%p2904_p4)
}
 0xdd9   : > { %2785 = dma.vmem_to_hbm [thread:$0]  (%p2788_p6), %s2280_s5, 32, %s3523_s1, [#allocation4]  }
 0xdda   : > { %2913 = dma.done.wait (%p2788_p6), [#allocation4], 32  }
 0xddb   : > { %2915 = vsyncadd (%p2788_p6), [#allocation4], 4294967264 }
 0xddc PF: > { %s3524_s3 = sld [smem:[#allocation6_spill]] }
 0xde2   : > { %s33_s2 = sadd.s32 1, %s3524_s3  }
 0xde3   : > { %p30_p5 = scmp.ge.s32.totalorder %s33_s2, 4  }
 0xde5   :  { %32 = sbr.rel (!%p30_p5) target bundleno = 15 (0xf), region = 178 }
 0xdec   :  { %2295 = vsyncpa [#allocation4], 1 }
 0xded   :  { %2297 = vsyncpa [#allocation4 + $0x1], 1 }

// kernel: forward.3
= control target key start
LH: loop header
LB: loop body
LE: loop exit
PB: predicated region body
PF: predicated region fallthrough
CT: control target
= control target key end

     0   :  { %9 = vsyncpa [#allocation9], 0  ;;  %s2277_s15 = smov 0   ;;  %s2622_s0 = inlined_call_operand.vmem [shape: f32[16,64], index: 0, kind: input, shape index: {}]   ;;  %s2623_s1 = inlined_call_operand.vmem [shape: bf16[2,64,256], index: 1, kind: input, shape index: {}]   ;;  %s2624_s2 = inlined_call_operand.vmem [shape: bf16[2,64,256], index: 2, kind: input, shape index: {}]   ;;  %s2625_s3 = inlined_call_operand.vmem [shape: f32[2,1,256], index: 3, kind: input, shape index: {}]   ;;  %s2626_s4 = inlined_call_operand.hbm [shape: f32[2,64], index: 4, kind: output, shape index: {}]  }
   0x1 LB: > { %s2283_s16 = sadd.s32 4294967295, %s2244_s15   ;;  %p1913_p0 = scmp.ge.s32.totalorder %s2244_s15, 1  ;;  %s2244_s15 = sphi %s2277_s15, %s15_s15  }
   0x2   : > { %p177_p1 = scmp.lt.s32.totalorder %s2244_s15, 3 }
   0x4   : > { %p178_p2 = pnand %p1913_p0, %p177_p1 }
   0x5   : > { %p207_p3 = scmp.lt.s32.totalorder (!%p178_p2), %s2283_s16, 1  ;;  %p1919_p4 = scmp.ne.s32.totalorder (!%p178_p2), %s2283_s16, 0 }
   0x6   : > { %181 = sbr.rel (%p178_p2) target bundleno = 5928 (0x1728), region = 36 }
   0xd   : > { %s208_s17 = scalar_select %p207_p3, %s2283_s16, 1 }
   0xe   : > { %225 = sbr.rel (%p1919_p4) target bundleno = 21 (0x15), region = 40  ;;  %v226_v0 = vld [vmem:[%s2622_s0] sm:$0xff] (!%p1919_p4)  ;;  %vm228_vm0 = vcmask (!%p1919_p4), 523264   ;;  %v227_v1 = vld [vmem:[%s2622_s0 + $0x8] sm:$0xff] (!%p1919_p4) }
   0xf   : > { %s2022_s18 = sshll.u32 %s208_s17, 6  ;;  %s1918_s19 = sshll.u32 %s208_s17, 1  ;;  %229 = vst.msk [vmem:[#allocation2] sm:$0xff] (!%p1919_p4), %vm228_vm0, %v226_v0  ;;  %230 = vst.msk [vmem:[#allocation2 + $0x8] sm:$0xff] (!%p1919_p4), %vm228_vm0, %v227_v1 }
  0x10   : > { %s2292_s22 = scalar_lea.vmem %s2623_s1, %s2022_s18  ;;  %s2297_s25 = scalar_lea.vmem %s2624_s2, %s2022_s18 }
  0x11   : > { %s2302_s28 = scalar_lea.vmem %s2625_s3, %s1918_s19 }
  0x15 PF: > { %v2044_v2 = vld [vmem:[%s2292_s22 + $0x4] ss:$8 sps:$4 sm:$0xff]   ;;  %v2046_v3 = vld [vmem:[%s2292_s22] ss:$8 sps:$4 sm:$0xff]   ;;  %v2246_v4 = vmov 0   ;;  %vm345_vm1 = vcmask 517120   ;;  %v244_v26 = vlaneseq }
  0x16   : > { %330 = vmatprep.mubr.bf16.mxu0 %v2246_v4  ;;  %433 = vmatprep.mubr.bf16.mxu1 %v2246_v4  ;;  %v2047_v5 = vld [vmem:[%s2292_s22 + $0x14] ss:$8 sps:$4 sm:$0xff]   ;;  %v2049_v6 = vld [vmem:[%s2292_s22 + $0x10] ss:$8 sps:$4 sm:$0xff]   ;;  %v2247_v7 = vmov 0.0   ;;  %v231_v17 = vld [vmem:[#allocation2] sm:$0xff] }
  0x17   : > { %298 = vmatprep.subr.bf16.mxu0 %v2044_v2  ;;  %346 = vst.msk [vmem:[#allocation4] sm:$0x3] %vm345_vm1, %v2247_v7  ;;  %347 = vst.msk [vmem:[#allocation5] sm:$0x3] %vm345_vm1, %v2247_v7  ;;  %v2320_v8 = vld [vmem:[%s2297_s25 + $0x4] ss:$8 sps:$4 sm:$0xff]  }
  0x18   : > { %299 = vmatpush1.bf16.msra.mxu0 %v2046_v3  ;;  %v2052_v9 = vld [vmem:[%s2292_s22 + $0x24] ss:$8 sps:$4 sm:$0xff]   ;;  %v2324_v10 = vld [vmem:[%s2297_s25] ss:$8 sps:$4 sm:$0xff]   ;;  %401 = vmatprep.subr.bf16.mxu1 %v2320_v8  ;;  %v2329_v11 = vld [vmem:[%s2297_s25 + $0x14] ss:$8 sps:$4 sm:$0xff]  }
  0x19   : > { %300 = vmatprep.subr.bf16.mxu0 %v2047_v5  ;;  %402 = vmatpush1.bf16.msra.mxu1 %v2324_v10  ;;  %v2055_v12 = vld [vmem:[%s2292_s22 + $0x20] ss:$8 sps:$4 sm:$0xff]   ;;  %v2058_v13 = vld [vmem:[%s2292_s22 + $0x34] ss:$8 sps:$4 sm:$0xff]   ;;  %v2334_v14 = vld [vmem:[%s2297_s25 + $0x10] ss:$8 sps:$4 sm:$0xff]  }
  0x1a   : > { %403 = vmatprep.subr.bf16.mxu1 %v2329_v11  ;;  %v2338_v15 = vld [vmem:[%s2297_s25 + $0x24] ss:$8 sps:$4 sm:$0xff]   ;;  %v2061_v16 = vld [vmem:[%s2292_s22 + $0x30] ss:$8 sps:$4 sm:$0xff]   ;;  %v2343_v18 = vld [vmem:[%s2297_s25 + $0x20] ss:$8 sps:$4 sm:$0xff]  }
  0x1b   : > { %v232_v19 = vld [vmem:[#allocation2 + $0x8] sm:$0xff]  ;;  %v2347_v20 = vld [vmem:[%s2297_s25 + $0x34] ss:$8 sps:$4 sm:$0xff]   ;;  %v2352_v22 = vld [vmem:[%s2297_s25 + $0x30] ss:$8 sps:$4 sm:$0xff]   ;;  %s2248_s7 = smov 32  }
  0x1c   : > { %301 = vmatpush1.bf16.msra.mxu0 %v2049_v6  ;;  %v233_v24 = vpack.c.bf16 %v232_v19, %v231_v17  ;;  %vm294_vm2 = vcmask 523264   ;;  %v245_v27 = vshrl.u32 %v244_v26, 7  ;;  %v242_v29 = vld [vmem:[%s2302_s28] sm:$0x3]  ;;  %s2249_s8 = smov 64   ;;  %s2250_s9 = smov 96  }
  0x1d   : > { %302 = vmatprep.subr.bf16.mxu0 %v2052_v9  ;;  %404 = vmatpush1.bf16.msra.mxu1 %v2334_v14  ;;  %vm513_vm3 = vcmask 261120   ;;  %vm525_vm4 = vcmask 254976   ;;  %vm713_vm5 = vcmask 257026   ;;  %vm702_vm6 = vcmask 519170   ;;  %p2017_p5 = scmp.ne.s32.totalorder %s2283_s16, 1 }
  0x1e   : > { %405 = vmatprep.subr.bf16.mxu1 %v2338_v15  ;;  %v2349_v21 = vld [vmem:[#allocation5] sm:$0x3]  ;;  %v348_v23 = vld [vmem:[#allocation4] sm:$0x3]  ;;  %v246_v28 = vsub.s32 0, %v245_v27  ;;  %v250_v30 = vsub.s32 1, %v245_v27 }
  0x1f   : > { %454 = vrot.lane.b32.xlu1 %v2349_v21, %s2248_s7  ;;  %v349_v25 = vpack.c.bf16 %v348_v23, %v348_v23  ;;  %v485_v0 = vrot.slane %v2349_v21, 2  ;;  %vm718_vm7 = vcmask 259076   ;;  %vm890_vm8 = vcmask 521220  }
  0x20   : > { %303 = vmatpush1.bf16.msra.mxu0 %v2055_v12  ;;  %v247_v31 = vrot.slane %v242_v29, %v246_v28  ;;  %v251_v32 = vrot.slane %v242_v29, %v250_v30  ;;  %vm530_vm9 = vcmask 261126   ;;  %vm1071_vm10 = vcmask 523270  }
  0x21   : > { %304 = vmatprep.subr.bf16.mxu0 %v2058_v13  ;;  %406 = vmatpush1.bf16.msra.mxu1 %v2343_v18 }
  0x22   : > { %407 = vmatprep.subr.bf16.mxu1 %v2347_v20 }
  0x24   : > { %305 = vmatpush1.bf16.msra.mxu0 %v2061_v16 }
  0x25   : > { %585 = vmatprep.subr.bf16.mxu0 %v2320_v8  ;;  %408 = vmatpush1.bf16.msra.mxu1 %v2352_v22 }
  0x26   : > { %773 = vmatprep.subr.bf16.mxu1 %v2320_v8 }
  0x27   : > { %1928 = vmatmul.mubr.msk.bf16.vlgmr.msra.gmra.mrb[0].mxu0 %vm294_vm2, %v233_v24 }
  0x28   : > { %586 = vmatpush1.bf16.msra.mxu0 %v2324_v10  ;;  %617 = vmatprep.mubr.bf16.mxu0 %v2246_v4 }
  0x29   : > { %587 = vmatprep.subr.bf16.mxu0 %v2329_v11  ;;  %1937 = vmatmul.mubr.msk.bf16.vlgmr.msra.gmra.mrb[0].mxu1 %vm294_vm2, %v349_v25 }
  0x2a   : > { %774 = vmatpush1.bf16.msra.mxu1 %v2324_v10  ;;  %805 = vmatprep.mubr.bf16.mxu1 %v2246_v4 }
  0x2b   : > { %775 = vmatprep.subr.bf16.mxu1 %v2329_v11 }
  0x2c   : > { %588 = vmatpush1.bf16.msra.mxu0 %v2334_v14 }
  0x2d   : > { %589 = vmatprep.subr.bf16.mxu0 %v2338_v15 }
  0x2e   : > { %776 = vmatpush1.bf16.msra.mxu1 %v2334_v14 }
  0x2f   : > { %777 = vmatprep.subr.bf16.mxu1 %v2338_v15 }
  0x30   : > { %590 = vmatpush1.bf16.msra.mxu0 %v2343_v18 }
  0x31   : > { %591 = vmatprep.subr.bf16.mxu0 %v2347_v20 }
  0x32   : > { %778 = vmatpush1.bf16.msra.mxu1 %v2343_v18 }
  0x33   : > { %779 = vmatprep.subr.bf16.mxu1 %v2347_v20 }
  0x34   : > { %592 = vmatpush1.bf16.msra.mxu0 %v2352_v22 }
  0x35   : > { %959 = vmatprep.subr.bf16.mxu0 %v2320_v8 }
  0x36   : > { %780 = vmatpush1.bf16.msra.mxu1 %v2352_v22 }
  0x37   : > { %1140 = vmatprep.subr.bf16.mxu1 %v2320_v8 }
  0x91   : > { %v455_v1 = vpop.permute.xlu1 %454 }
  0xfa   : > { %v332_v33 = vpop.f32.mrb[0].mxu0 }
  0xfb   : > { %v333_v34 = vadd.f32 %v332_v33, %v247_v31  ;;  %v334_v35 = vpop.f32.mrb[1].mxu0 }
  0xfc   : > { %v335_v36 = vadd.f32 %v334_v35, %v251_v32  ;;  %v336_v37 = vpop.f32.mrb[2].mxu0  ;;  %v435_v40 = vpop.f32.mrb[0].mxu1 }
  0xfd   : > { %341 = vst [vmem:[#allocation3] sm:$0xff] %v333_v34  ;;  %v337_v38 = vadd.f32 %v336_v37, %v247_v31  ;;  %v338_v39 = vpop.f32.mrb[3].mxu0  ;;  %v437_v42 = vpop.f32.mrb[1].mxu1 }
  0xfe   : > { %342 = vst [vmem:[#allocation3 + $0x8] sm:$0xff] %v335_v36  ;;  %v339_v41 = vadd.f32 %v338_v39, %v251_v32  ;;  %v439_v43 = vpop.f32.mrb[2].mxu1  ;;  %v475_v45 = vrot.slane %v437_v42, 2 }
  0xff   : > { %343 = vst [vmem:[#allocation3 + $0x10] sm:$0xff] %v337_v38  ;;  %v440_v44 = vpop.f32.mrb[3].mxu1 }
 0x100   : > { %344 = vst [vmem:[#allocation3 + $0x18] sm:$0xff] %v339_v41 }
 0x104   : > { %v442_v46 = vld [vmem:[#allocation3] sm:$0x3]  ;;  %v626_v35 = vld [vmem:[#allocation3] sm:$0xc] }
 0x105   : > { %v445_v49 = vadd.f32 %v442_v46, %v435_v40 }
 0x107   : > { %v443_v47 = vld [vmem:[#allocation3 + $0x18] sm:$0xc0]  ;;  %v1938_v53 = vmul.f32 -1.442695, %v445_v49  ;;  %v627_v39 = vld [vmem:[#allocation3 + $0x18] sm:$0x30] }
 0x108   : > { %v477_v48 = vadd.f32 %v475_v45, %v443_v47 }
 0x10a   : > { %2080 = vtanh.f32 %v477_v48  ;;  %v1939_v52 = vmul.f32 -1.442695, %v477_v48 }
 0x10b   : > { %2082 = vtanh.f32 %v445_v49 }
 0x10c   : > { %2084 = vpow2.f32 %v1939_v52 }
 0x10d   : > { %2086 = vpow2.f32 %v1938_v53 }
 0x114   : > { %v2081_v50 = vpop.eup %2080 }
 0x115   : > { %489 = vrot.lane.b32.xlu0 %v2081_v50, %s2249_s8  ;;  %v2083_v51 = vpop.eup %2082 }
 0x116   : > { %v2085_v54 = vpop.eup %2084 }
 0x117   : > { %v481_v55 = vadd.f32 1.0, %v2085_v54  ;;  %v2087_v56 = vpop.eup %2086 }
 0x118   : > { %v449_v57 = vadd.f32 1.0, %v2087_v56 }
 0x119   : > { %459 = vrot.lane.b32.xlu0 %v2083_v51, %s2249_s8  ;;  %2088 = vrcp.f32 %v481_v55 }
 0x11a   : > { %2090 = vrcp.f32 %v449_v57 }
 0x123   : > { %v2089_v58 = vpop.eup %2088 }
 0x124   : > { %v2091_v61 = vpop.eup %2090  ;;  %v487_v2 = vmul.f32 %v2089_v58, %v485_v0 }
 0x125   : > { %v457_v6 = vmul.f32 %v2091_v61, %v455_v1 }
 0x187   : > { %v490_v59 = vpop.permute.xlu0 %489 }
 0x188   : > { %v492_v60 = vmul.f32 %v2089_v58, %v490_v59 }
 0x18a   : > { %494 = vrot.lane.b32.xlu1 %v492_v60, %s2248_s7 }
 0x18b   : > { %v460_v62 = vpop.permute.xlu0 %459 }
 0x18c   : > { %v462_v63 = vmul.f32 %v2091_v61, %v460_v62 }
 0x18e   : > { %464 = vrot.lane.b32.xlu0 %v462_v63, %s2248_s7 }
 0x1fc   : > { %v495_v3 = vpop.permute.xlu1 %494 }
 0x1fd   : > { %v497_v5 = vadd.f32 %v495_v3, %v487_v2 }
 0x1ff   : > { %2092 = vtanh.f32 %v497_v5  ;;  %v521_v27 = vrot.slane %v497_v5, 6 }
 0x200   : > { %v465_v7 = vpop.permute.xlu0 %464 }
 0x201   : > { %v467_v9 = vadd.f32 %v465_v7, %v457_v6 }
 0x203   : > { %2094 = vtanh.f32 %v467_v9 }
 0x209   : > { %v2093_v12 = vpop.eup %2092 }
 0x20a   : > { %500 = vrot.lane.b32.xlu1 %v2093_v12, %s2249_s8 }
 0x20d   : > { %v2095_v13 = vpop.eup %2094 }
 0x20e   : > { %470 = vrot.lane.b32.xlu0 %v2095_v13, %s2249_s8 }
 0x27c   : > { %v501_v16 = vpop.permute.xlu1 %500 }
 0x27d   : > { %v2389_v17 = vmul.f32 %v2089_v58, %v501_v16 }
 0x27f   : > { %v509_v19 = vrot.slane %v2389_v17, 6 }
 0x280   : > { %v471_v21 = vpop.permute.xlu0 %470 }
 0x281   : > { %v473_v23 = vmul.f32 %v2091_v61, %v471_v21  ;;  %510 = vrot.lane.b32.xlu0 %v509_v19, %s2249_s8 }
 0x283   : > { %505 = vrot.lane.b32.xlu1 %v473_v23, %s2248_s7 }
 0x287   : > { %517 = vrot.lane.b32.xlu1 %v467_v9, %s2250_s9 }
 0x2f3   : > { %v511_v24 = vpop.permute.xlu0 %510 }
 0x2f5   : > { %v506_v25 = vpop.permute.xlu1 %505 }
 0x2f6   : > { %v514_v26 = vsel %vm513_vm3, %v506_v25, %v511_v24  ;;  %526 = vst.msk [vmem:[#allocation6] sm:$0x3] %vm525_vm4, %v506_v25 }
 0x2f7   : > { %515 = vst.msk [vmem:[#allocation4] sm:$0x3] %vm345_vm1, %v514_v26 }
 0x2f9   : > { %v518_v28 = vpop.permute.xlu1 %517 }
 0x2fa   : > { %v523_v29 = vsel %vm513_vm3, %v518_v28, %v521_v27 }
 0x2fb   : > { %524 = vst.msk [vmem:[#allocation5] sm:$0x3] %vm345_vm1, %v523_v29  ;;  %v814_v29 = vld [vmem:[#allocation3] sm:$0x30] }
 0x2fe   : > { %v532_v30 = vld [vmem:[#allocation4] sm:$0x3] }
 0x2ff   : > { %v533_v31 = vpack.c.bf16 %v532_v30, %v532_v30 }
 0x301   : > { %1948 = vmatmul.mubr.msk.bf16.vlgmr.msra.gmra.mrb[4].mxu0 %vm294_vm2, %v533_v31 }
 0x302   : > { %960 = vmatpush1.bf16.msra.mxu0 %v2324_v10  ;;  %991 = vmatprep.mubr.bf16.mxu0 %v2246_v4  ;;  %v628_v44 = vld [vmem:[#allocation5] sm:$0x3] }
 0x303   : > { %961 = vmatprep.subr.bf16.mxu0 %v2329_v11  ;;  %v673_v58 = vrot.slane %v628_v44, 4 }
 0x306   : > { %962 = vmatpush1.bf16.msra.mxu0 %v2334_v14 }
 0x307   : > { %963 = vmatprep.subr.bf16.mxu0 %v2338_v15 }
 0x30a   : > { %964 = vmatpush1.bf16.msra.mxu0 %v2343_v18 }
 0x30b   : > { %965 = vmatprep.subr.bf16.mxu0 %v2347_v20 }
 0x30e   : > { %966 = vmatpush1.bf16.msra.mxu0 %v2352_v22 }
 0x30f   : > { %1321 = vmatprep.subr.bf16.mxu0 %v2320_v8  ;;  %v641_v8 = vrot.slane %v628_v44, 6 }
 0x3d4   : > { %v619_v32 = vpop.f32.mrb[4].mxu0 }
 0x3d5   : > { %v630_v33 = vrot.slane %v619_v32, 6  ;;  %v621_v34 = vpop.f32.mrb[5].mxu0 }
 0x3d6   : > { %v663_v36 = vrot.slane %v621_v34, 4  ;;  %v623_v37 = vpop.f32.mrb[6].mxu0 }
 0x3d7   : > { %v632_v38 = vadd.f32 %v630_v33, %v626_v35  ;;  %v624_v40 = vpop.f32.mrb[7].mxu0  ;;  %v815_v33 = vld [vmem:[#allocation3 + $0x18] sm:$0xc] }
 0x3d8   : > { %v665_v41 = vadd.f32 %v663_v36, %v627_v39 }
 0x3d9   : > { %2096 = vtanh.f32 %v632_v38  ;;  %v1949_v45 = vmul.f32 -1.442695, %v632_v38 }
 0x3da   : > { %2098 = vtanh.f32 %v665_v41  ;;  %v1950_v46 = vmul.f32 -1.442695, %v665_v41 }
 0x3db   : > { %2100 = vpow2.f32 %v1949_v45 }
 0x3dc   : > { %2102 = vpow2.f32 %v1950_v46 }
 0x3e3   : > { %v2097_v42 = vpop.eup %2096 }
 0x3e4   : > { %v2099_v43 = vpop.eup %2098  ;;  %647 = vrot.lane.b32.xlu1 %v2097_v42, %s2249_s8 }
 0x3e5   : > { %677 = vrot.lane.b32.xlu0 %v2099_v43, %s2249_s8  ;;  %v2101_v47 = vpop.eup %2100 }
 0x3e6   : > { %v2103_v48 = vpop.eup %2102  ;;  %v636_v49 = vadd.f32 1.0, %v2101_v47 }
 0x3e7   : > { %v669_v50 = vadd.f32 1.0, %v2103_v48 }
 0x3e8   : > { %2104 = vrcp.f32 %v636_v49 }
 0x3e9   : > { %642 = vrot.lane.b32.xlu0 %v641_v8, %s2248_s7  ;;  %2106 = vrcp.f32 %v669_v50 }
 0x3f2   : > { %v2105_v51 = vpop.eup %2104 }
 0x3f3   : > { %v2107_v53 = vpop.eup %2106 }
 0x3f4   : > { %v675_v61 = vmul.f32 %v2107_v53, %v673_v58 }
 0x456   : > { %v648_v52 = vpop.permute.xlu1 %647 }
 0x457   : > { %v650_v54 = vmul.f32 %v2105_v51, %v648_v52  ;;  %v678_v55 = vpop.permute.xlu0 %677 }
 0x458   : > { %v680_v56 = vmul.f32 %v2107_v53, %v678_v55 }
 0x459   : > { %652 = vrot.lane.b32.xlu0 %v650_v54, %s2248_s7 }
 0x45a   : > { %682 = vrot.lane.b32.xlu1 %v680_v56, %s2248_s7 }
 0x45b   : > { %v643_v57 = vpop.permute.xlu0 %642 }
 0x45c   : > { %v645_v59 = vmul.f32 %v2105_v51, %v643_v57 }
 0x4cb   : > { %v653_v60 = vpop.permute.xlu0 %652 }
 0x4cc   : > { %v655_v62 = vadd.f32 %v653_v60, %v645_v59  ;;  %v683_v63 = vpop.permute.xlu1 %682 }
 0x4cd   : > { %v685_v0 = vadd.f32 %v683_v63, %v675_v61 }
 0x4ce   : > { %2108 = vtanh.f32 %v655_v62 }
 0x4cf   : > { %2110 = vtanh.f32 %v685_v0  ;;  %v709_v13 = vrot.slane %v685_v0, 2 }
 0x4d8   : > { %v2109_v1 = vpop.eup %2108 }
 0x4d9   : > { %v2111_v2 = vpop.eup %2110  ;;  %658 = vrot.lane.b32.xlu0 %v2109_v1, %s2249_s8 }
 0x4da   : > { %688 = vrot.lane.b32.xlu1 %v2111_v2, %s2249_s8 }
 0x54b   : > { %v659_v3 = vpop.permute.xlu0 %658 }
 0x54c   : > { %v661_v5 = vmul.f32 %v2105_v51, %v659_v3  ;;  %v689_v6 = vpop.permute.xlu1 %688 }
 0x54d   : > { %v2417_v7 = vmul.f32 %v2107_v53, %v689_v6 }
 0x54e   : > { %693 = vrot.lane.b32.xlu1 %v661_v5, %s2248_s7 }
 0x54f   : > { %v697_v9 = vrot.slane %v2417_v7, 2 }
 0x551   : > { %698 = vrot.lane.b32.xlu0 %v697_v9, %s2249_s8 }
 0x552   : > { %705 = vrot.lane.b32.xlu1 %v655_v62, %s2250_s9 }
 0x5c0   : > { %v694_v12 = vpop.permute.xlu1 %693 }
 0x5c1   : > { %714 = vst.msk [vmem:[#allocation6] sm:$0xc] %vm713_vm5, %v694_v12 }
 0x5c3   : > { %v699_v16 = vpop.permute.xlu0 %698 }
 0x5c4   : > { %v701_v19 = vsel %vm513_vm3, %v694_v12, %v699_v16  ;;  %v706_v21 = vpop.permute.xlu1 %705 }
 0x5c5   : > { %703 = vst.msk [vmem:[#allocation4 - $0x2] sm:$0xc] %vm702_vm6, %v701_v19  ;;  %v711_v23 = vsel %vm513_vm3, %v706_v21, %v709_v13 }
 0x5c6   : > { %712 = vst.msk [vmem:[#allocation5 - $0x2] sm:$0xc] %vm702_vm6, %v711_v23 }
 0x5cc   : > { %v720_v24 = vld [vmem:[#allocation4] sm:$0x3] }
 0x5cd   : > { %v721_v25 = vpack.c.bf16 %v720_v24, %v720_v24  ;;  %v816_v38 = vld [vmem:[#allocation5] sm:$0x3]  ;;  %v1001_v24 = vld [vmem:[#allocation3 + $0x18] sm:$0x3] }
 0x5ce   : > { %v829_v39 = vrot.slane %v816_v38, 4  ;;  %v861_v52 = vrot.slane %v816_v38, 6 }
 0x5cf   : > { %1959 = vmatmul.mubr.msk.bf16.vlgmr.msra.gmra.mrb[4].mxu1 %vm294_vm2, %v721_v25  ;;  %v1000_v25 = vld [vmem:[#allocation3] sm:$0xc0] }
 0x5d0   : > { %1141 = vmatpush1.bf16.msra.mxu1 %v2324_v10  ;;  %1172 = vmatprep.mubr.bf16.mxu1 %v2246_v4 }
 0x5d1   : > { %1142 = vmatprep.subr.bf16.mxu1 %v2329_v11 }
 0x5d4   : > { %1143 = vmatpush1.bf16.msra.mxu1 %v2334_v14 }
 0x5d5   : > { %1144 = vmatprep.subr.bf16.mxu1 %v2338_v15 }
 0x5d8   : > { %1145 = vmatpush1.bf16.msra.mxu1 %v2343_v18 }
 0x5d9   : > { %1146 = vmatprep.subr.bf16.mxu1 %v2347_v20 }
 0x5dc   : > { %1147 = vmatpush1.bf16.msra.mxu1 %v2352_v22 }
 0x6a2   : > { %v807_v26 = vpop.f32.mrb[4].mxu1 }
 0x6a3   : > { %v818_v27 = vrot.slane %v807_v26, 4  ;;  %v809_v28 = vpop.f32.mrb[5].mxu1 }
 0x6a4   : > { %v851_v30 = vrot.slane %v809_v28, 6  ;;  %v811_v31 = vpop.f32.mrb[6].mxu1 }
 0x6a5   : > { %v820_v32 = vadd.f32 %v818_v27, %v814_v29  ;;  %v812_v34 = vpop.f32.mrb[7].mxu1 }
 0x6a6   : > { %v853_v35 = vadd.f32 %v851_v30, %v815_v33 }
 0x6a7   : > { %2112 = vtanh.f32 %v820_v32  ;;  %v1960_v40 = vmul.f32 -1.442695, %v820_v32 }
 0x6a8   : > { %2114 = vtanh.f32 %v853_v35  ;;  %v1961_v41 = vmul.f32 -1.442695, %v853_v35 }
 0x6a9   : > { %2116 = vpow2.f32 %v1960_v40 }
 0x6aa   : > { %2118 = vpow2.f32 %v1961_v41 }
 0x6b1   : > { %v2113_v36 = vpop.eup %2112 }
 0x6b2   : > { %v2115_v37 = vpop.eup %2114  ;;  %835 = vrot.lane.b32.xlu1 %v2113_v36, %s2249_s8 }
 0x6b3   : > { %865 = vrot.lane.b32.xlu0 %v2115_v37, %s2249_s8  ;;  %v2117_v42 = vpop.eup %2116 }
 0x6b4   : > { %v2119_v43 = vpop.eup %2118  ;;  %v824_v44 = vadd.f32 1.0, %v2117_v42 }
 0x6b5   : > { %v857_v8 = vadd.f32 1.0, %v2119_v43 }
 0x6b6   : > { %2120 = vrcp.f32 %v824_v44 }
 0x6b7   : > { %830 = vrot.lane.b32.xlu0 %v829_v39, %s2248_s7  ;;  %2122 = vrcp.f32 %v857_v8 }
 0x6c0   : > { %v2121_v45 = vpop.eup %2120 }
 0x6c1   : > { %v2123_v47 = vpop.eup %2122 }
 0x6c2   : > { %v863_v55 = vmul.f32 %v2123_v47, %v861_v52 }
 0x724   : > { %v836_v46 = vpop.permute.xlu1 %835 }
 0x725   : > { %v838_v48 = vmul.f32 %v2121_v45, %v836_v46  ;;  %v866_v49 = vpop.permute.xlu0 %865 }
 0x726   : > { %v868_v50 = vmul.f32 %v2123_v47, %v866_v49 }
 0x727   : > { %840 = vrot.lane.b32.xlu0 %v838_v48, %s2248_s7 }
 0x728   : > { %870 = vrot.lane.b32.xlu1 %v868_v50, %s2248_s7 }
 0x729   : > { %v831_v51 = vpop.permute.xlu0 %830 }
 0x72a   : > { %v833_v53 = vmul.f32 %v2121_v45, %v831_v51 }
 0x799   : > { %v841_v54 = vpop.permute.xlu0 %840 }
 0x79a   : > { %v843_v56 = vadd.f32 %v841_v54, %v833_v53  ;;  %v871_v57 = vpop.permute.xlu1 %870 }
 0x79b   : > { %v873_v58 = vadd.f32 %v871_v57, %v863_v55 }
 0x79c   : > { %2124 = vtanh.f32 %v843_v56 }
 0x79d   : > { %2126 = vtanh.f32 %v873_v58  ;;  %v897_v3 = vrot.slane %v873_v58, 6 }
 0x7a6   : > { %v2125_v59 = vpop.eup %2124 }
 0x7a7   : > { %v2127_v60 = vpop.eup %2126  ;;  %846 = vrot.lane.b32.xlu0 %v2125_v59, %s2249_s8 }
 0x7a8   : > { %876 = vrot.lane.b32.xlu1 %v2127_v60, %s2249_s8 }
 0x819   : > { %v847_v61 = vpop.permute.xlu0 %846 }
 0x81a   : > { %v849_v62 = vmul.f32 %v2121_v45, %v847_v61  ;;  %v877_v63 = vpop.permute.xlu1 %876  ;;  %v1181_v61 = vld [vmem:[#allocation3 + $0x10] sm:$0x3] }
 0x81b   : > { %v2444_v0 = vmul.f32 %v2123_v47, %v877_v63 }
 0x81c   : > { %881 = vrot.lane.b32.xlu1 %v849_v62, %s2248_s7 }
 0x81d   : > { %v885_v1 = vrot.slane %v2444_v0, 6 }
 0x81f   : > { %886 = vrot.lane.b32.xlu0 %v885_v1, %s2249_s8 }
 0x820   : > { %893 = vrot.lane.b32.xlu1 %v843_v56, %s2250_s9 }
 0x88e   : > { %v882_v2 = vpop.permute.xlu1 %881 }
 0x88f   : > { %901 = vst.msk [vmem:[#allocation6] sm:$0x30] %vm718_vm7, %v882_v2 }
 0x891   : > { %v887_v5 = vpop.permute.xlu0 %886 }
 0x892   : > { %v889_v6 = vsel %vm513_vm3, %v882_v2, %v887_v5  ;;  %v894_v9 = vpop.permute.xlu1 %893 }
 0x893   : > { %891 = vst.msk [vmem:[#allocation4 - $0x4] sm:$0x30] %vm890_vm8, %v889_v6  ;;  %v899_v12 = vsel %vm513_vm3, %v894_v9, %v897_v3  ;;  %v1182_v3 = vld [vmem:[#allocation3 + $0x8] sm:$0xc0] }
 0x894   : > { %900 = vst.msk [vmem:[#allocation5 - $0x4] sm:$0x30] %vm890_vm8, %v899_v12 }
 0x89a   : > { %v906_v13 = vld [vmem:[#allocation4] sm:$0x3] }
 0x89b   : > { %v907_v16 = vpack.c.bf16 %v906_v13, %v906_v13 }
 0x89d   : > { %1970 = vmatmul.mubr.msk.bf16.vlgmr.msra.gmra.mrb[8].mxu0 %vm294_vm2, %v907_v16 }
 0x89e   : > { %1322 = vmatpush1.bf16.msra.mxu0 %v2324_v10  ;;  %1353 = vmatprep.mubr.bf16.mxu0 %v2246_v4 }
 0x89f   : > { %1323 = vmatprep.subr.bf16.mxu0 %v2329_v11 }
 0x8a2   : > { %1324 = vmatpush1.bf16.msra.mxu0 %v2334_v14  ;;  %v1002_v14 = vld [vmem:[#allocation5] sm:$0x3] }
 0x8a3   : > { %1325 = vmatprep.subr.bf16.mxu0 %v2338_v15 }
 0x8a6   : > { %1326 = vmatpush1.bf16.msra.mxu0 %v2343_v18  ;;  %v1015_v18 = vrot.slane %v1002_v14, 2 }
 0x8a7   : > { %1327 = vmatprep.subr.bf16.mxu0 %v2347_v20 }
 0x8aa   : > { %1328 = vmatpush1.bf16.msra.mxu0 %v2352_v22 }
 0x970   : > { %v993_v19 = vpop.f32.mrb[8].mxu0 }
 0x971   : > { %v1004_v21 = vrot.slane %v993_v19, 2  ;;  %v995_v23 = vpop.f32.mrb[9].mxu0 }
 0x972   : > { %v1036_v10 = vadd.f32 %v1001_v24, %v995_v23  ;;  %v997_v26 = vpop.f32.mrb[10].mxu0 }
 0x973   : > { %v1006_v27 = vadd.f32 %v1004_v21, %v1000_v25  ;;  %v998_v28 = vpop.f32.mrb[11].mxu0 }
 0x974   : > { %2128 = vtanh.f32 %v1036_v10  ;;  %v1972_v20 = vmul.f32 -1.442695, %v1036_v10 }
 0x975   : > { %2130 = vtanh.f32 %v1006_v27  ;;  %v1971_v22 = vmul.f32 -1.442695, %v1006_v27 }
 0x976   : > { %2132 = vpow2.f32 %v1972_v20 }
 0x977   : > { %2134 = vpow2.f32 %v1971_v22 }
 0x97e   : > { %v2129_v11 = vpop.eup %2128 }
 0x97f   : > { %v2131_v15 = vpop.eup %2130  ;;  %1046 = vrot.lane.b32.xlu0 %v2129_v11, %s2249_s8 }
 0x980   : > { %1021 = vrot.lane.b32.xlu1 %v2131_v15, %s2249_s8  ;;  %v2133_v29 = vpop.eup %2132 }
 0x981   : > { %v2135_v30 = vpop.eup %2134  ;;  %v1040_v31 = vadd.f32 1.0, %v2133_v29 }
 0x982   : > { %v1010_v32 = vadd.f32 1.0, %v2135_v30 }
 0x983   : > { %1016 = vrot.lane.b32.xlu0 %v1015_v18, %s2248_s7  ;;  %2136 = vrcp.f32 %v1040_v31 }
 0x984   : > { %2138 = vrcp.f32 %v1010_v32 }
 0x98d   : > { %v2137_v33 = vpop.eup %2136 }
 0x98e   : > { %v2139_v35 = vpop.eup %2138  ;;  %v1044_v40 = vmul.f32 %v2137_v33, %v1002_v14 }
 0x9f1   : > { %v1047_v34 = vpop.permute.xlu0 %1046 }
 0x9f2   : > { %v1049_v36 = vmul.f32 %v2137_v33, %v1047_v34  ;;  %v1022_v37 = vpop.permute.xlu1 %1021 }
 0x9f3   : > { %v1024_v38 = vmul.f32 %v2139_v35, %v1022_v37 }
 0x9f4   : > { %1051 = vrot.lane.b32.xlu1 %v1049_v36, %s2248_s7 }
 0x9f5   : > { %1026 = vrot.lane.b32.xlu0 %v1024_v38, %s2248_s7  ;;  %v1017_v39 = vpop.permute.xlu0 %1016 }
 0x9f6   : > { %v1019_v41 = vmul.f32 %v2139_v35, %v1017_v39 }
 0xa66   : > { %v1052_v42 = vpop.permute.xlu1 %1051 }
 0xa67   : > { %v1054_v43 = vadd.f32 %v1052_v42, %v1044_v40  ;;  %v1027_v44 = vpop.permute.xlu0 %1026 }
 0xa68   : > { %v1029_v8 = vadd.f32 %v1027_v44, %v1019_v41 }
 0xa69   : > { %2140 = vtanh.f32 %v1054_v43  ;;  %v1078_v55 = vrot.slane %v1054_v43, 2 }
 0xa6a   : > { %2142 = vtanh.f32 %v1029_v8 }
 0xa73   : > { %v2141_v45 = vpop.eup %2140 }
 0xa74   : > { %v2143_v46 = vpop.eup %2142  ;;  %1057 = vrot.lane.b32.xlu1 %v2141_v45, %s2249_s8 }
 0xa75   : > { %1032 = vrot.lane.b32.xlu0 %v2143_v46, %s2249_s8 }
 0xae6   : > { %v1058_v47 = vpop.permute.xlu1 %1057 }
 0xae7   : > { %v2471_v48 = vmul.f32 %v2137_v33, %v1058_v47  ;;  %v1033_v49 = vpop.permute.xlu0 %1032 }
 0xae8   : > { %v1035_v50 = vmul.f32 %v2139_v35, %v1033_v49 }
 0xae9   : > { %v1066_v51 = vrot.slane %v2471_v48, 2 }
 0xaea   : > { %1062 = vrot.lane.b32.xlu1 %v1035_v50, %s2248_s7 }
 0xaeb   : > { %1067 = vrot.lane.b32.xlu0 %v1066_v51, %s2249_s8  ;;  %v1362_v51 = vld [vmem:[#allocation3 + $0x10] sm:$0xc] }
 0xaee   : > { %1074 = vrot.lane.b32.xlu1 %v1029_v8, %s2250_s9 }
 0xb5c   : > { %v1063_v52 = vpop.permute.xlu1 %1062 }
 0xb5d   : > { %1082 = vst.msk [vmem:[#allocation6] sm:$0xc0] %vm530_vm9, %v1063_v52  ;;  %v1068_v53 = vpop.permute.xlu0 %1067 }
 0xb5e   : > { %v1070_v54 = vsel %vm513_vm3, %v1063_v52, %v1068_v53 }
 0xb5f   : > { %1072 = vst.msk [vmem:[#allocation4 - $0x6] sm:$0xc0] %vm1071_vm10, %v1070_v54 }
 0xb60   : > { %v1075_v56 = vpop.permute.xlu1 %1074 }
 0xb61   : > { %v1080_v57 = vsel %vm513_vm3, %v1075_v56, %v1078_v55  ;;  %v1363_v55 = vld [vmem:[#allocation3 + $0x8] sm:$0x30] }
 0xb62   : > { %1081 = vst.msk [vmem:[#allocation5 - $0x6] sm:$0xc0] %vm1071_vm10, %v1080_v57 }
 0xb66   : > { %v1087_v58 = vld [vmem:[#allocation4] sm:$0x3] }
 0xb67   : > { %v1088_v59 = vpack.c.bf16 %v1087_v58, %v1087_v58 }
 0xb69   : > { %1981 = vmatmul.mubr.msk.bf16.vlgmr.msra.gmra.mrb[8].mxu1 %vm294_vm2, %v1088_v59  ;;  %v1183_v13 = vld [vmem:[#allocation5] sm:$0x3] }
 0xb6a   : > { %1538 = vmatprep.mubr.bf16.mxu1 %v2246_v4  ;;  %v1224_v22 = vrot.slane %v1183_v13, 2 }
 0xc3c   : > { %v1174_v60 = vpop.f32.mrb[8].mxu1 }
 0xc3d   : > { %v1184_v62 = vadd.f32 %v1181_v61, %v1174_v60  ;;  %v1176_v63 = vpop.f32.mrb[9].mxu1 }
 0xc3e   : > { %v1214_v1 = vrot.slane %v1176_v63, 2  ;;  %v1178_v2 = vpop.f32.mrb[10].mxu1 }
 0xc3f   : > { %2144 = vtanh.f32 %v1184_v62  ;;  %v1179_v5 = vpop.f32.mrb[11].mxu1  ;;  %v1982_v16 = vmul.f32 -1.442695, %v1184_v62 }
 0xc40   : > { %v1216_v6 = vadd.f32 %v1214_v1, %v1182_v3 }
 0xc42   : > { %2146 = vtanh.f32 %v1216_v6  ;;  %v1983_v19 = vmul.f32 -1.442695, %v1216_v6 }
 0xc43   : > { %2148 = vpow2.f32 %v1982_v16 }
 0xc44   : > { %2150 = vpow2.f32 %v1983_v19 }
 0xc49   : > { %v2145_v9 = vpop.eup %2144 }
 0xc4a   : > { %1198 = vrot.lane.b32.xlu1 %v2145_v9, %s2249_s8 }
 0xc4c   : > { %v2147_v12 = vpop.eup %2146 }
 0xc4d   : > { %1228 = vrot.lane.b32.xlu0 %v2147_v12, %s2249_s8  ;;  %v2149_v21 = vpop.eup %2148 }
 0xc4e   : > { %v2151_v23 = vpop.eup %2150  ;;  %v1188_v24 = vadd.f32 1.0, %v2149_v21 }
 0xc4f   : > { %v1220_v25 = vadd.f32 1.0, %v2151_v23 }
 0xc50   : > { %2152 = vrcp.f32 %v1188_v24 }
 0xc51   : > { %1193 = vrot.lane.b32.xlu0 %v1183_v13, %s2248_s7  ;;  %2154 = vrcp.f32 %v1220_v25 }
 0xc5a   : > { %v2153_v10 = vpop.eup %2152 }
 0xc5b   : > { %v2155_v28 = vpop.eup %2154 }
 0xc5c   : > { %v1226_v30 = vmul.f32 %v2155_v28, %v1224_v22  ;;  %v2074_v22 = vld [vmem:[%s2297_s25 + $0x20] ss:$8 sps:$4 sm:$0xff]  }
 0xcbc   : > { %v1199_v26 = vpop.permute.xlu1 %1198 }
 0xcbd   : > { %v1201_v27 = vmul.f32 %v2153_v10, %v1199_v26 }
 0xcbf   : > { %v1229_v11 = vpop.permute.xlu0 %1228  ;;  %1203 = vrot.lane.b32.xlu0 %v1201_v27, %s2248_s7 }
 0xcc0   : > { %v1231_v14 = vmul.f32 %v2155_v28, %v1229_v11  ;;  %v2070_v11 = vld [vmem:[%s2297_s25 + $0x4] ss:$8 sps:$4 sm:$0xff]  }
 0xcc1   : > { %1506 = vmatprep.subr.bf16.mxu1 %v2070_v11  ;;  %1691 = vmatprep.subr.bf16.mxu0 %v2070_v11 }
 0xcc2   : > { %1233 = vrot.lane.b32.xlu1 %v1231_v14, %s2248_s7 }
 0xcc3   : > { %v1194_v15 = vpop.permute.xlu0 %1193 }
 0xcc4   : > { %v1196_v18 = vmul.f32 %v2153_v10, %v1194_v15 }
 0xd31   : > { %v1204_v20 = vpop.permute.xlu0 %1203 }
 0xd32   : > { %v1206_v29 = vadd.f32 %v1204_v20, %v1196_v18  ;;  %v2071_v18 = vld [vmem:[%s2297_s25 + $0x10] ss:$8 sps:$4 sm:$0xff]   ;;  %v2073_v20 = vld [vmem:[%s2297_s25 + $0x14] ss:$8 sps:$4 sm:$0xff]  }
 0xd34   : > { %2156 = vtanh.f32 %v1206_v29  ;;  %v1234_v31 = vpop.permute.xlu1 %1233 }
 0xd35   : > { %v1236_v32 = vadd.f32 %v1234_v31, %v1226_v30  ;;  %v2079_v30 = vld [vmem:[%s2297_s25 + $0x34] ss:$8 sps:$4 sm:$0xff]   ;;  %v2077_v31 = vld [vmem:[%s2297_s25 + $0x30] ss:$8 sps:$4 sm:$0xff]  }
 0xd37   : > { %2158 = vtanh.f32 %v1236_v32  ;;  %v1259_v41 = vrot.slane %v1236_v32, 6 }
 0xd3e   : > { %v2157_v33 = vpop.eup %2156 }
 0xd3f   : > { %1209 = vrot.lane.b32.xlu0 %v2157_v33, %s2249_s8 }
 0xd41   : > { %v2159_v34 = vpop.eup %2158 }
 0xd42   : > { %1239 = vrot.lane.b32.xlu1 %v2159_v34, %s2249_s8 }
 0xdb1   : > { %v1210_v35 = vpop.permute.xlu0 %1209 }
 0xdb2   : > { %v1212_v36 = vmul.f32 %v2153_v10, %v1210_v35 }
 0xdb4   : > { %1244 = vrot.lane.b32.xlu1 %v1212_v36, %s2248_s7  ;;  %v1240_v37 = vpop.permute.xlu1 %1239 }
 0xdb5   : > { %v2492_v38 = vmul.f32 %v2155_v28, %v1240_v37  ;;  %v2068_v28 = vld [vmem:[%s2297_s25] ss:$8 sps:$4 sm:$0xff]  }
 0xdb6   : > { %1507 = vmatpush1.bf16.msra.mxu1 %v2068_v28 }
 0xdb7   : > { %v1248_v39 = vrot.slane %v2492_v38, 6  ;;  %1508 = vmatprep.subr.bf16.mxu1 %v2073_v20 }
 0xdb8   : > { %1255 = vrot.lane.b32.xlu1 %v1206_v29, %s2250_s9  ;;  %v2076_v29 = vld [vmem:[%s2297_s25 + $0x24] ss:$8 sps:$4 sm:$0xff]  }
 0xdb9   : > { %1249 = vrot.lane.b32.xlu0 %v1248_v39, %s2249_s8 }
 0xdba   : > { %1509 = vmatpush1.bf16.msra.mxu1 %v2071_v18 }
 0xdbb   : > { %1510 = vmatprep.subr.bf16.mxu1 %v2076_v29 }
 0xdbe   : > { %1511 = vmatpush1.bf16.msra.mxu1 %v2074_v22 }
 0xdbf   : > { %1512 = vmatprep.subr.bf16.mxu1 %v2079_v30 }
 0xdc2   : > { %1513 = vmatpush1.bf16.msra.mxu1 %v2077_v31 }
 0xe26   : > { %v1245_v40 = vpop.permute.xlu1 %1244 }
 0xe27   : > { %1263 = vst.msk [vmem:[#allocation6 + $0x8] sm:$0x3] %vm525_vm4, %v1245_v40 }
 0xe2a   : > { %v1256_v42 = vpop.permute.xlu1 %1255 }
 0xe2b   : > { %v1261_v43 = vsel %vm513_vm3, %v1256_v42, %v1259_v41  ;;  %v1250_v44 = vpop.permute.xlu0 %1249 }
 0xe2c   : > { %1262 = vst.msk [vmem:[#allocation5] sm:$0x3] %vm345_vm1, %v1261_v43  ;;  %v1252_v8 = vsel %vm513_vm3, %v1245_v40, %v1250_v44 }
 0xe2d   : > { %1253 = vst.msk [vmem:[#allocation4] sm:$0x3] %vm345_vm1, %v1252_v8 }
 0xe33   : > { %v1364_v60 = vld [vmem:[#allocation5] sm:$0x3] }
 0xe34   : > { %v1268_v45 = vld [vmem:[#allocation4] sm:$0x3]  ;;  %v1409_v21 = vrot.slane %v1364_v60, 4 }
 0xe35   : > { %v1269_v46 = vpack.c.bf16 %v1268_v45, %v1268_v45 }
 0xe37   : > { %1992 = vmatmul.mubr.msk.bf16.vlgmr.msra.gmra.mrb[12].mxu0 %vm294_vm2, %v1269_v46 }
 0xe38   : > { %1723 = vmatprep.mubr.bf16.mxu0 %v2246_v4  ;;  %v1377_v4 = vrot.slane %v1364_v60, 6  ;;  %1692 = vmatpush1.bf16.msra.mxu0 %v2068_v28 }
 0xe39   : > { %1693 = vmatprep.subr.bf16.mxu0 %v2073_v20 }
 0xe3c   : > { %1694 = vmatpush1.bf16.msra.mxu0 %v2071_v18 }
 0xe3d   : > { %1695 = vmatprep.subr.bf16.mxu0 %v2076_v29 }
 0xe40   : > { %1696 = vmatpush1.bf16.msra.mxu0 %v2074_v22 }
 0xe41   : > { %1697 = vmatprep.subr.bf16.mxu0 %v2079_v30 }
 0xe44   : > { %1698 = vmatpush1.bf16.msra.mxu0 %v2077_v31 }
 0xf0a   : > { %v1355_v47 = vpop.f32.mrb[12].mxu0 }
 0xf0b   : > { %v1366_v49 = vrot.slane %v1355_v47, 6  ;;  %v1357_v50 = vpop.f32.mrb[13].mxu0 }
 0xf0c   : > { %v1399_v52 = vrot.slane %v1357_v50, 4  ;;  %v1359_v53 = vpop.f32.mrb[14].mxu0 }
 0xf0d   : > { %v1368_v54 = vadd.f32 %v1366_v49, %v1362_v51  ;;  %v1360_v56 = vpop.f32.mrb[15].mxu0  ;;  %v1547_v49 = vld [vmem:[#allocation3 + $0x10] sm:$0x30]  ;;  %v1548_v53 = vld [vmem:[#allocation3 + $0x8] sm:$0xc] }
 0xf0e   : > { %v1401_v57 = vadd.f32 %v1399_v52, %v1363_v55 }
 0xf0f   : > { %2160 = vtanh.f32 %v1368_v54  ;;  %v1993_v61 = vmul.f32 -1.442695, %v1368_v54 }
 0xf10   : > { %2162 = vtanh.f32 %v1401_v57  ;;  %v1994_v62 = vmul.f32 -1.442695, %v1401_v57 }
 0xf11   : > { %2164 = vpow2.f32 %v1993_v61 }
 0xf12   : > { %2166 = vpow2.f32 %v1994_v62 }
 0xf19   : > { %v2161_v58 = vpop.eup %2160 }
 0xf1a   : > { %v2163_v59 = vpop.eup %2162  ;;  %1383 = vrot.lane.b32.xlu1 %v2161_v58, %s2249_s8 }
 0xf1b   : > { %1413 = vrot.lane.b32.xlu0 %v2163_v59, %s2249_s8  ;;  %v2165_v63 = vpop.eup %2164 }
 0xf1c   : > { %v2167_v1 = vpop.eup %2166  ;;  %v1372_v2 = vadd.f32 1.0, %v2165_v63 }
 0xf1d   : > { %v1405_v3 = vadd.f32 1.0, %v2167_v1 }
 0xf1e   : > { %2168 = vrcp.f32 %v1372_v2 }
 0xf1f   : > { %1378 = vrot.lane.b32.xlu0 %v1377_v4, %s2248_s7  ;;  %2170 = vrcp.f32 %v1405_v3 }
 0xf28   : > { %v2169_v5 = vpop.eup %2168 }
 0xf29   : > { %v2171_v9 = vpop.eup %2170 }
 0xf2a   : > { %v1411_v25 = vmul.f32 %v2171_v9, %v1409_v21 }
 0xf8c   : > { %v1384_v6 = vpop.permute.xlu1 %1383 }
 0xf8d   : > { %v1386_v12 = vmul.f32 %v2169_v5, %v1384_v6  ;;  %v1414_v13 = vpop.permute.xlu0 %1413 }
 0xf8e   : > { %v1416_v16 = vmul.f32 %v2171_v9, %v1414_v13 }
 0xf8f   : > { %1388 = vrot.lane.b32.xlu0 %v1386_v12, %s2248_s7 }
 0xf90   : > { %1418 = vrot.lane.b32.xlu1 %v1416_v16, %s2248_s7 }
 0xf91   : > { %v1379_v19 = vpop.permute.xlu0 %1378 }
 0xf92   : > { %v1381_v23 = vmul.f32 %v2169_v5, %v1379_v19 }
0x1001   : > { %v1389_v24 = vpop.permute.xlu0 %1388 }
0x1002   : > { %v1391_v10 = vadd.f32 %v1389_v24, %v1381_v23  ;;  %v1419_v26 = vpop.permute.xlu1 %1418 }
0x1003   : > { %v1421_v27 = vadd.f32 %v1419_v26, %v1411_v25 }
0x1004   : > { %2172 = vtanh.f32 %v1391_v10 }
0x1005   : > { %2174 = vtanh.f32 %v1421_v27  ;;  %v1444_v39 = vrot.slane %v1421_v27, 2 }
0x100e   : > { %v2173_v14 = vpop.eup %2172 }
0x100f   : > { %v2175_v15 = vpop.eup %2174  ;;  %1394 = vrot.lane.b32.xlu0 %v2173_v14, %s2249_s8 }
0x1010   : > { %1424 = vrot.lane.b32.xlu1 %v2175_v15, %s2249_s8 }
0x1081   : > { %v1395_v32 = vpop.permute.xlu0 %1394 }
0x1082   : > { %v1397_v33 = vmul.f32 %v2169_v5, %v1395_v32  ;;  %v1425_v34 = vpop.permute.xlu1 %1424 }
0x1083   : > { %v2519_v35 = vmul.f32 %v2171_v9, %v1425_v34 }
0x1084   : > { %1429 = vrot.lane.b32.xlu1 %v1397_v33, %s2248_s7 }
0x1085   : > { %v1433_v36 = vrot.slane %v2519_v35, 2 }
0x1087   : > { %1434 = vrot.lane.b32.xlu0 %v1433_v36, %s2249_s8 }
0x1088   : > { %1440 = vrot.lane.b32.xlu1 %v1391_v10, %s2250_s9 }
0x10f6   : > { %v1430_v37 = vpop.permute.xlu1 %1429 }
0x10f7   : > { %1448 = vst.msk [vmem:[#allocation6 + $0x8] sm:$0xc] %vm713_vm5, %v1430_v37 }
0x10f9   : > { %v1435_v40 = vpop.permute.xlu0 %1434 }
0x10fa   : > { %v1437_v41 = vsel %vm513_vm3, %v1430_v37, %v1435_v40  ;;  %v1441_v42 = vpop.permute.xlu1 %1440  ;;  %v1733_v40 = vld [vmem:[#allocation3 + $0x8] sm:$0x3] }
0x10fb   : > { %1438 = vst.msk [vmem:[#allocation4 - $0x2] sm:$0xc] %vm702_vm6, %v1437_v41  ;;  %v1446_v43 = vsel %vm513_vm3, %v1441_v42, %v1444_v39 }
0x10fc   : > { %1447 = vst.msk [vmem:[#allocation5 - $0x2] sm:$0xc] %vm702_vm6, %v1446_v43  ;;  %v1732_v43 = vld [vmem:[#allocation3 + $0x10] sm:$0xc0] }
0x1102   : > { %v1453_v44 = vld [vmem:[#allocation4] sm:$0x3] }
0x1103   : > { %v1454_v8 = vpack.c.bf16 %v1453_v44, %v1453_v44  ;;  %v1549_v58 = vld [vmem:[#allocation5] sm:$0x3] }
0x1104   : > { %v1562_v59 = vrot.slane %v1549_v58, 4  ;;  %v1594_v16 = vrot.slane %v1549_v58, 6 }
0x1105   : > { %2003 = vmatmul.mubr.msk.bf16.vlgmr.msra.gmra.mrb[12].mxu1 %vm294_vm2, %v1454_v8 }
0x11d8   : > { %v1540_v45 = vpop.f32.mrb[12].mxu1 }
0x11d9   : > { %v1551_v46 = vrot.slane %v1540_v45, 4  ;;  %v1542_v47 = vpop.f32.mrb[13].mxu1 }
0x11da   : > { %v1584_v50 = vrot.slane %v1542_v47, 6  ;;  %v1544_v51 = vpop.f32.mrb[14].mxu1 }
0x11db   : > { %v1553_v52 = vadd.f32 %v1551_v46, %v1547_v49  ;;  %v1545_v54 = vpop.f32.mrb[15].mxu1 }
0x11dc   : > { %v1586_v55 = vadd.f32 %v1584_v50, %v1548_v53 }
0x11dd   : > { %2176 = vtanh.f32 %v1553_v52  ;;  %v2004_v60 = vmul.f32 -1.442695, %v1553_v52 }
0x11de   : > { %2178 = vtanh.f32 %v1586_v55  ;;  %v2005_v4 = vmul.f32 -1.442695, %v1586_v55 }
0x11df   : > { %2180 = vpow2.f32 %v2004_v60 }
0x11e0   : > { %2182 = vpow2.f32 %v2005_v4 }
0x11e7   : > { %v2177_v56 = vpop.eup %2176 }
0x11e8   : > { %v2179_v57 = vpop.eup %2178  ;;  %1568 = vrot.lane.b32.xlu1 %v2177_v56, %s2249_s8 }
0x11e9   : > { %1598 = vrot.lane.b32.xlu0 %v2179_v57, %s2249_s8  ;;  %v2181_v61 = vpop.eup %2180 }
0x11ea   : > { %v2183_v62 = vpop.eup %2182  ;;  %v1557_v63 = vadd.f32 1.0, %v2181_v61 }
0x11eb   : > { %v1590_v1 = vadd.f32 1.0, %v2183_v62 }
0x11ec   : > { %2184 = vrcp.f32 %v1557_v63 }
0x11ed   : > { %1563 = vrot.lane.b32.xlu0 %v1562_v59, %s2248_s7  ;;  %2186 = vrcp.f32 %v1590_v1 }
0x11f6   : > { %v2185_v2 = vpop.eup %2184 }
0x11f7   : > { %v2187_v5 = vpop.eup %2186 }
0x11f8   : > { %v1596_v23 = vmul.f32 %v2187_v5, %v1594_v16 }
0x125a   : > { %v1569_v3 = vpop.permute.xlu1 %1568 }
0x125b   : > { %v1571_v6 = vmul.f32 %v2185_v2, %v1569_v3  ;;  %v1599_v9 = vpop.permute.xlu0 %1598 }
0x125c   : > { %v1601_v12 = vmul.f32 %v2187_v5, %v1599_v9 }
0x125d   : > { %1573 = vrot.lane.b32.xlu0 %v1571_v6, %s2248_s7 }
0x125e   : > { %1603 = vrot.lane.b32.xlu1 %v1601_v12, %s2248_s7 }
0x125f   : > { %v1564_v13 = vpop.permute.xlu0 %1563 }
0x1260   : > { %v1566_v19 = vmul.f32 %v2185_v2, %v1564_v13 }
0x12cf   : > { %v1574_v21 = vpop.permute.xlu0 %1573 }
0x12d0   : > { %v1576_v24 = vadd.f32 %v1574_v21, %v1566_v19  ;;  %v1604_v25 = vpop.permute.xlu1 %1603 }
0x12d1   : > { %v1606_v10 = vadd.f32 %v1604_v25, %v1596_v23 }
0x12d2   : > { %2188 = vtanh.f32 %v1576_v24 }
0x12d3   : > { %2190 = vtanh.f32 %v1606_v10  ;;  %v1629_v30 = vrot.slane %v1606_v10, 6 }
0x12dc   : > { %v2189_v26 = vpop.eup %2188 }
0x12dd   : > { %v2191_v27 = vpop.eup %2190  ;;  %1579 = vrot.lane.b32.xlu0 %v2189_v26, %s2249_s8 }
0x12de   : > { %1609 = vrot.lane.b32.xlu1 %v2191_v27, %s2249_s8 }
0x134f   : > { %v1580_v28 = vpop.permute.xlu0 %1579 }
0x1350   : > { %v1582_v11 = vmul.f32 %v2185_v2, %v1580_v28  ;;  %v1610_v14 = vpop.permute.xlu1 %1609 }
0x1351   : > { %v2538_v15 = vmul.f32 %v2187_v5, %v1610_v14 }
0x1352   : > { %1614 = vrot.lane.b32.xlu1 %v1582_v11, %s2248_s7 }
0x1353   : > { %v1618_v18 = vrot.slane %v2538_v15, 6 }
0x1355   : > { %1619 = vrot.lane.b32.xlu0 %v1618_v18, %s2249_s8 }
0x1359   : > { %1625 = vrot.lane.b32.xlu0 %v1576_v24, %s2250_s9 }
0x13c4   : > { %v1615_v20 = vpop.permute.xlu1 %1614 }
0x13c5   : > { %1633 = vst.msk [vmem:[#allocation6 + $0x8] sm:$0x30] %vm718_vm7, %v1615_v20 }
0x13c7   : > { %v1620_v22 = vpop.permute.xlu0 %1619 }
0x13c8   : > { %v1622_v29 = vsel %vm513_vm3, %v1615_v20, %v1620_v22 }
0x13c9   : > { %1623 = vst.msk [vmem:[#allocation4 - $0x4] sm:$0x30] %vm890_vm8, %v1622_v29  ;;  %v1818_v29 = vld [vmem:[#allocation6] sm:$0xff] }
0x13cb   : > { %v1626_v31 = vpop.permute.xlu0 %1625 }
0x13cc   : > { %v1631_v32 = vsel %vm513_vm3, %v1626_v31, %v1629_v30 }
0x13cd   : > { %1632 = vst.msk [vmem:[#allocation5 - $0x4] sm:$0x30] %vm890_vm8, %v1631_v32 }
0x13d0   : > { %v1638_v33 = vld [vmem:[#allocation4] sm:$0x3] }
0x13d1   : > { %v1639_v34 = vpack.c.bf16 %v1638_v33, %v1638_v33 }
0x13d3   : > { %2014 = vmatmul.mubr.msk.bf16.vlgmr.msra.gmra.mrb[16].mxu0 %vm294_vm2, %v1639_v34 }
0x13d4   : > { %v1734_v47 = vld [vmem:[#allocation5] sm:$0x3] }
0x13d5   : > { %v1747_v49 = vrot.slane %v1734_v47, 2 }
0x14a6   : > { %v1725_v36 = vpop.f32.mrb[16].mxu0 }
0x14a7   : > { %v1736_v37 = vrot.slane %v1725_v36, 2  ;;  %v1727_v39 = vpop.f32.mrb[17].mxu0 }
0x14a8   : > { %v1768_v41 = vadd.f32 %v1733_v40, %v1727_v39  ;;  %v1729_v42 = vpop.f32.mrb[18].mxu0 }
0x14a9   : > { %v1730_v44 = vpop.f32.mrb[19].mxu0  ;;  %v1738_v8 = vadd.f32 %v1736_v37, %v1732_v43 }
0x14aa   : > { %2192 = vtanh.f32 %v1768_v41  ;;  %v2016_v50 = vmul.f32 -1.442695, %v1768_v41 }
0x14ab   : > { %2194 = vtanh.f32 %v1738_v8  ;;  %v2015_v51 = vmul.f32 -1.442695, %v1738_v8 }
0x14ac   : > { %2196 = vpow2.f32 %v2016_v50 }
0x14ad   : > { %2198 = vpow2.f32 %v2015_v51 }
0x14b4   : > { %v2193_v45 = vpop.eup %2192 }
0x14b5   : > { %1778 = vrot.lane.b32.xlu1 %v2193_v45, %s2249_s8  ;;  %v2195_v46 = vpop.eup %2194 }
0x14b6   : > { %v2197_v52 = vpop.eup %2196 }
0x14b7   : > { %v1772_v53 = vadd.f32 1.0, %v2197_v52  ;;  %v2199_v54 = vpop.eup %2198 }
0x14b8   : > { %v1742_v55 = vadd.f32 1.0, %v2199_v54 }
0x14b9   : > { %1753 = vrot.lane.b32.xlu1 %v2195_v46, %s2249_s8  ;;  %2200 = vrcp.f32 %v1772_v53 }
0x14ba   : > { %2202 = vrcp.f32 %v1742_v55 }
0x14bd   : > { %1748 = vrot.lane.b32.xlu1 %v1747_v49, %s2248_s7 }
0x14c3   : > { %v2201_v56 = vpop.eup %2200 }
0x14c4   : > { %v2203_v59 = vpop.eup %2202  ;;  %v1776_v61 = vmul.f32 %v2201_v56, %v1734_v47 }
0x1527   : > { %v1779_v57 = vpop.permute.xlu1 %1778 }
0x1528   : > { %v1781_v58 = vmul.f32 %v2201_v56, %v1779_v57 }
0x152a   : > { %1783 = vrot.lane.b32.xlu0 %v1781_v58, %s2248_s7 }
0x152b   : > { %v1754_v60 = vpop.permute.xlu1 %1753 }
0x152c   : > { %v1756_v4 = vmul.f32 %v2203_v59, %v1754_v60 }
0x152e   : > { %1758 = vrot.lane.b32.xlu0 %v1756_v4, %s2248_s7 }
0x152f   : > { %v1749_v62 = vpop.permute.xlu1 %1748 }
0x1530   : > { %v1751_v2 = vmul.f32 %v2203_v59, %v1749_v62 }
0x1532   : > { %715 = vrot.lane.b32.xlu0 %v2417_v7, %s2248_s7 }
0x1536   : > { %1083 = vrot.lane.b32.xlu0 %v2471_v48, %s2248_s7 }
0x153a   : > { %1449 = vrot.lane.b32.xlu0 %v2519_v35, %s2248_s7 }
0x159c   : > { %v1784_v63 = vpop.permute.xlu0 %1783 }
0x159d   : > { %v1786_v1 = vadd.f32 %v1784_v63, %v1776_v61 }
0x159f   : > { %2204 = vtanh.f32 %v1786_v1  ;;  %v1809_v28 = vrot.slane %v1786_v1, 2 }
0x15a0   : > { %v1759_v3 = vpop.permute.xlu0 %1758 }
0x15a1   : > { %v1761_v5 = vadd.f32 %v1759_v3, %v1751_v2 }
0x15a3   : > { %2206 = vtanh.f32 %v1761_v5 }
0x15a4   : > { %v716_v6 = vpop.permute.xlu0 %715 }
0x15a5   : > { %719 = vst.msk [vmem:[#allocation7 + $0x8] sm:$0x30] %vm718_vm7, %v716_v6 }
0x15a8   : > { %v1084_v9 = vpop.permute.xlu0 %1083 }
0x15a9   : > { %v2205_v7 = vpop.eup %2204  ;;  %1086 = vst.msk [vmem:[#allocation7 + $0x8] sm:$0x3] %vm525_vm4, %v1084_v9 }
0x15aa   : > { %1789 = vrot.lane.b32.xlu1 %v2205_v7, %s2249_s8 }
0x15ac   : > { %v1450_v48 = vpop.permute.xlu0 %1449 }
0x15ad   : > { %v2207_v35 = vpop.eup %2206  ;;  %1452 = vst.msk [vmem:[#allocation7] sm:$0x30] %vm718_vm7, %v1450_v48 }
0x15ae   : > { %1764 = vrot.lane.b32.xlu0 %v2207_v35, %s2249_s8  ;;  %527 = vrot.lane.b32.xlu1 %v2389_v17, %s2248_s7 }
0x15b2   : > { %902 = vrot.lane.b32.xlu1 %v2444_v0, %s2248_s7 }
0x15b6   : > { %1264 = vrot.lane.b32.xlu1 %v2492_v38, %s2248_s7 }
0x15ba   : > { %1634 = vrot.lane.b32.xlu1 %v2538_v15, %s2248_s7 }
0x161c   : > { %v1790_v12 = vpop.permute.xlu1 %1789 }
0x161d   : > { %v1792_v13 = vmul.f32 %v2201_v56, %v1790_v12 }
0x161f   : > { %1814 = vrot.lane.b32.xlu0 %v1792_v13, %s2248_s7  ;;  %v1798_v21 = vrot.slane %v1792_v13, 2 }
0x1620   : > { %v1765_v16 = vpop.permute.xlu0 %1764  ;;  %v528_v19 = vpop.permute.xlu1 %527 }
0x1621   : > { %v1767_v23 = vmul.f32 %v2203_v59, %v1765_v16  ;;  %531 = vst.msk [vmem:[#allocation7 + $0x8] sm:$0xc0] %vm530_vm9, %v528_v19 }
0x1623   : > { %1794 = vrot.lane.b32.xlu1 %v1767_v23, %s2248_s7  ;;  %1799 = vrot.lane.b32.xlu0 %v1798_v21, %s2249_s8 }
0x1624   : > { %v903_v17 = vpop.permute.xlu1 %902 }
0x1625   : > { %905 = vst.msk [vmem:[#allocation7 + $0x8] sm:$0xc] %vm713_vm5, %v903_v17 }
0x1627   : > { %1805 = vrot.lane.b32.xlu1 %v1761_v5, %s2250_s9 }
0x1628   : > { %v1265_v0 = vpop.permute.xlu1 %1264 }
0x1629   : > { %1267 = vst.msk [vmem:[#allocation7] sm:$0xc0] %vm530_vm9, %v1265_v0 }
0x162c   : > { %v1635_v38 = vpop.permute.xlu1 %1634  ;;  %v1821_v24 = vld [vmem:[#allocation7 + $0x8] sm:$0xff] }
0x162d   : > { %1637 = vst.msk [vmem:[#allocation7] sm:$0xc] %vm713_vm5, %v1635_v38  ;;  %1826 = vrot.lane.b32.xlu1 %v1821_v24, %s2248_s7 }
0x1691   : > { %v1815_v25 = vpop.permute.xlu0 %1814 }
0x1692   : > { %1817 = vst.msk [vmem:[#allocation7] sm:$0x3] %vm525_vm4, %v1815_v25 }
0x1695   : > { %v1800_v10 = vpop.permute.xlu0 %1799  ;;  %v1795_v26 = vpop.permute.xlu1 %1794 }
0x1696   : > { %v1802_v27 = vsel %vm513_vm3, %v1795_v26, %v1800_v10  ;;  %1813 = vst.msk [vmem:[#allocation6 + $0x8] sm:$0xc0] %vm530_vm9, %v1795_v26 }
0x1697   : > { %1803 = vst.msk [vmem:[#allocation4 - $0x6] sm:$0xc0] %vm1071_vm10, %v1802_v27 }
0x1699   : > { %v1806_v11 = vpop.permute.xlu1 %1805  ;;  %v1820_v14 = vld [vmem:[#allocation7] sm:$0xff] }
0x169a   : > { %v1811_v15 = vsel %vm513_vm3, %v1806_v11, %v1809_v28  ;;  %1824 = vrot.lane.b32.xlu0 %v1820_v14, %s2248_s7 }
0x169b   : > { %1812 = vst.msk [vmem:[#allocation5 - $0x6] sm:$0xc0] %vm1071_vm10, %v1811_v15 }
0x169d   : > { %v1819_v18 = vld [vmem:[#allocation6 + $0x8] sm:$0xff] }
0x169f   : > { %v1827_v20 = vpop.permute.xlu1 %1826 }
0x16a0   : > { %v1831_v22 = vsel %vm513_vm3, %v1819_v18, %v1827_v20 }
0x16a1   : > { %1833 = vst.msk [vmem:[#allocation2 + $0x8] sm:$0xff] %vm294_vm2, %v1831_v22 }
0x16a8   : > { %v1838_v32 = vld [vmem:[#allocation2 + $0xe] sm:$0x3] (!%p2017_p5) }
0x16a9   : > { %1839 = vst.msk [vmem:[#allocation8] sm:$0x3] (!%p2017_p5), %vm345_vm1, %v1838_v32 }
0x1708   : > { %1837 = sbr.rel (%p2017_p5) target bundleno = 5903 (0x170f), region = 44 }
0x170c   : > { %v1825_v30 = vpop.permute.xlu0 %1824 }
0x170d   : > { %v1830_v31 = vsel %vm513_vm3, %v1818_v29, %v1825_v30 }
0x170e   : > { %1832 = vst.msk [vmem:[#allocation2] sm:$0xff] %vm294_vm2, %v1830_v31 }
0x170f PF: > { %p2028_p6 = scmp.eq.s32.totalorder %s2283_s16, 1  ;;  %s2251_s10 = smov [#allocation8]  }
0x1710   : > { %s1847_s11 = sshll.u32 %s2251_s10, 4  ;;  %s1848_s11 = int_to_ptr.vmem [resolvable:$true] %s1847_s11 }
0x1711   : > { %s2208_s12 = scalar_lea.vmem %s1848_s11, 32  ;;  %p2215_p10 = scmp.lt.s32.totalorder %s1848_s11, %s1848_s11 }
0x1712   : > { %p2209_p7 = scmp.ne.s32.totalorder %s1848_s11, %s2208_s12  ;;  %p2216_p11 = scmp.lt.s32.totalorder %s2208_s12, %s2208_s12 }
0x1714   : > { %p2210_p8 = pnand %p2209_p7, %p2028_p6  ;;  %p2217_p12 = por %p2216_p11, %p2215_p10 }
0x1716   : > { %p2211_p9 = pneg %p2210_p8 }
0x1718   : > { %p2218_p13 = pnand %p2217_p12, %p2211_p9 }
0x171a   : > { %2221 = shalt.err (!%p2218_p13)
}
0x171b   : > { %s2222_s17 = scalar_lea.hbm %s2626_s4, 32 }
0x171c   : > { %p2223_p0 = scmp.ne.s32.totalorder %s2626_s4, %s2222_s17  ;;  %p2228_p3 = scmp.lt.u32.totalorder %s2222_s17, %s2626_s4 }
0x171e   : > { %p2224_p1 = pnand %p2223_p0, %p2028_p6 }
0x1720   : > { %p2225_p2 = pneg %p2224_p1 }
0x1722   : > { %p2230_p4 = pnand %p2228_p3, %p2225_p2 }
0x1724   : > { %2233 = shalt.err (!%p2230_p4)
}
0x1725   : > { %2025 = dma.vmem_to_hbm [thread:$0]  (%p2028_p6), %s1848_s11, 32, %s2626_s4, [#allocation9]  }
0x1726   : > { %2239 = dma.done.wait (%p2028_p6), [#allocation9], 32  }
0x1727   : > { %2241 = vsyncadd (%p2028_p6), [#allocation9], 4294967264 }
0x1728 PF: > { %s15_s15 = sadd.s32 1, %s2244_s15  }
0x1729   : > { %p12_p5 = scmp.ge.s32.totalorder %s15_s15, 4  }
0x172b   :  { %14 = sbr.rel (!%p12_p5) target bundleno = 1 (0x1), region = 77 }
0x1732   :  { %1860 = vsyncpa [#allocation9], 1 }
0x1733   :  { %1862 = vsyncpa [#allocation9 + $0x1], 1 }

</bundles_post_ra>
